<compile_context>
chip_gen: v7x
topology: tpu7x:2x2x1
jax: 0.10.0
libtpu: 0.0.40
codegen_flags: <defaults>
</compile_context>

<pallas_src>
import functools

import jax
import jax.numpy as jnp
from jax import lax
from jax.experimental import pallas as pl
from jax.experimental.pallas import tpu as pltpu


def _decoder_kernel(x_ref, w1_ref, b1_ref, w2_ref, b2_ref, w3t_ref, b3t_ref,
                    out_ref, xpad_ref, y1p_ref, *, R, H, W, c_in, c_out):
    """Grid = (batch, row_block).  One step = R output rows of one image.

    x_ref    : (1, H, W, c_in)    bf16 NHWC input, resident across row blocks
    w1_ref   : (9*c_in, 128)      bf16 conv1 weights (im2col layout, BN1 folded)
    b1_ref   : (1, 128)           f32  BN1 folded bias
    w2_ref   : (3, 3*128, 64)     bf16 conv2 weights (per-dy K=384 slabs, BN2 folded)
    b2_ref   : (1, 64)            f32  BN2 folded bias
    w3t_ref  : (c_out, 64)        bf16 1x1 conv weights, transposed
    b3t_ref  : (c_out, 1)         f32  1x1 conv bias (column vector)
    out_ref  : (1, c_out, R*W)    f32  lane-dense output block
    xpad_ref : (H+4, W+2, c_in)   bf16 scratch: zero-bordered full input image
    y1p_ref  : (R+2, W+2, 128)    bf16 scratch: zero-column-bordered conv1 act
    """
    f32 = jnp.float32
    bf16 = jnp.bfloat16
    rb = pl.program_id(1)
    row0 = pl.multiple_of(rb * R, R)            # first output row of this block

    # ---- fill the zero-padded input scratch once per image (rb == 0) -------
    @pl.when(rb == 0)
    def _():
        xpad_ref[...] = jnp.zeros(xpad_ref.shape, bf16)
        xpad_ref[2:H + 2, 1:W + 1, :] = x_ref[0]

    # ---- conv1: 3x3, pad=1, no bias, BN1 scale folded -----------------------
    # One K=9*c_in matmul over R+2 rows (1-row halo needed by conv2).  Halo
    # rows that fall outside the image are masked to zero so they act exactly
    # as conv2's zero padding.
    taps = [xpad_ref[pl.ds(row0 + dy, R + 2), dx:dx + W, :]
            for dy in range(3) for dx in range(3)]
    col1 = jnp.concatenate(taps, axis=-1).reshape((R + 2) * W, 9 * c_in)
    y1 = jnp.dot(col1, w1_ref[...], preferred_element_type=f32) + b1_ref[...]
    y1 = jnp.maximum(y1, 0.0).reshape(R + 2, W, 128)
    r_glob = row0 - 1 + lax.broadcasted_iota(jnp.int32, (R + 2, 1, 1), 0)
    y1 = jnp.where((r_glob >= 0) & (r_glob < H), y1, 0.0)

    # Column-zero-padded bf16 activation scratch feeding conv2.
    y1p_ref[:, 1:W + 1, :] = y1.astype(bf16)
    y1p_ref[:, 0:1, :] = jnp.zeros((R + 2, 1, 128), bf16)
    y1p_ref[:, W + 1:W + 2, :] = jnp.zeros((R + 2, 1, 128), bf16)

    # ---- conv2: 3x3, pad=1, no bias, BN2 scale folded -----------------------
    # No (M, 1152) im2col: one K=384 matmul per kernel row (dy), reading
    # shifted windows straight from the padded scratch (full MXU depth on
    # v6e/v7x, only 3x M x 128 live at a time).
    acc = None
    for dy in range(3):
        grp = jnp.concatenate(
            [y1p_ref[dy:dy + R, dx:dx + W, :] for dx in range(3)],
            axis=-1).reshape(R * W, 3 * 128)
        part = jnp.dot(grp, w2_ref[dy], preferred_element_type=f32)
        acc = part if acc is None else acc + part
    y2 = jnp.maximum(acc + b2_ref[...], 0.0)                      # (R*W, 64) f32

    # ---- conv3: 1x1 with bias, transposed so H*W sits on the lane axis -----
    # y2 is only (R*W, 64) per step, so this contraction is cheap even if the
    # lowering materializes a small transpose; the payoff is an unmasked,
    # lane-dense (c_out, R*W) store.
    y3t = lax.dot_general(w3t_ref[...], y2.astype(bf16),
                          dimension_numbers=(((1,), (1,)), ((), ())),
                          preferred_element_type=f32) + b3t_ref[...]
    out_ref[0] = y3t.astype(out_ref.dtype)                        # (c_out, R*W)


def reconstruction_decoder(ego_bev, sparse_collab_bev, params):
    """ego_bev: (N, c_ego, H, W), sparse_collab_bev: (N, c_sp, H, W)  [NCHW].

    Returns (N, c_out, H, W) [NCHW], matching the torch module's forward.
    """
    w1, s1, b1, w2, s2, b2, w3, b3 = params

    # Glue: channel concat + NCHW -> NHWC; input DMA'd in bf16 (halves bytes).
    fused = jnp.concatenate([ego_bev, sparse_collab_bev], axis=1)    # (N, Cin, H, W)
    x = jnp.transpose(fused, (0, 2, 3, 1)).astype(jnp.bfloat16)      # (N, H, W, Cin)
    N, H, W, c_in = x.shape
    c_out = w3.shape[-1]

    # Fold BN scales into the conv weights; bf16 MXU operands, f32 biases.
    w1f = (w1 * s1.reshape(1, 1, 1, 128)).reshape(9 * c_in, 128).astype(jnp.bfloat16)
    w2f = (w2 * s2.reshape(1, 1, 1, 64)).reshape(3, 3 * 128, 64).astype(jnp.bfloat16)
    w3t = jnp.transpose(w3).astype(jnp.bfloat16)                     # (c_out, 64)
    b1r = b1.reshape(1, 128).astype(jnp.float32)
    b2r = b2.reshape(1, 64).astype(jnp.float32)
    b3t = b3.reshape(c_out, 1).astype(jnp.float32)

    # Row block: keep the lane-dense output block a multiple of 128 lanes.
    R = 8 if (H % 8 == 0 and (8 * W) % 128 == 0) else H
    assert H % R == 0
    grid = (N, H // R)

    kernel = functools.partial(_decoder_kernel, R=R, H=H, W=W,
                               c_in=c_in, c_out=c_out)

    flops = 2 * N * H * W * (9 * c_in * 128 + 9 * 128 * 64 + 64 * c_out)
    bytes_accessed = (x.size * 2 + N * c_out * H * W * 4
                      + (w1f.size + w2f.size + w3t.size) * 2
                      + (b1r.size + b2r.size + b3t.size) * 4)

    out = pl.pallas_call(
        kernel,
        out_shape=jax.ShapeDtypeStruct((N, c_out, H * W), jnp.float32),
        grid_spec=pltpu.PrefetchScalarGridSpec(
            num_scalar_prefetch=0,
            grid=grid,
            in_specs=[
                # full image per batch element, resident across the row axis
                pl.BlockSpec((1, H, W, c_in), lambda n, r: (n, 0, 0, 0)),
                pl.BlockSpec(w1f.shape, lambda n, r: (0, 0)),
                pl.BlockSpec(b1r.shape, lambda n, r: (0, 0)),
                pl.BlockSpec(w2f.shape, lambda n, r: (0, 0, 0)),
                pl.BlockSpec(b2r.shape, lambda n, r: (0, 0)),
                pl.BlockSpec(w3t.shape, lambda n, r: (0, 0)),
                pl.BlockSpec(b3t.shape, lambda n, r: (0, 0)),
            ],
            out_specs=pl.BlockSpec((1, c_out, R * W), lambda n, r: (n, 0, r)),
            scratch_shapes=[
                pltpu.VMEM((H + 4, W + 2, c_in), jnp.bfloat16),   # padded input
                pltpu.VMEM((R + 2, W + 2, 128), jnp.bfloat16),    # padded conv1 act
            ],
        ),
        compiler_params=pltpu.CompilerParams(
            # batch axis parallel (shards across v7x's 2 TensorCores); the
            # row-block axis carries the xpad scratch fill -> arbitrary.
            dimension_semantics=("parallel", "arbitrary"),
            vmem_limit_bytes=48 * 1024 * 1024,    # fits v7x's 64 MiB physical VMEM
        ),
        cost_estimate=pl.CostEstimate(flops=flops, transcendentals=0,
                                      bytes_accessed=bytes_accessed),
    )(x, w1f, b1r, w2f, b2r, w3t, b3t)

    # (N, c_out, H*W) is already channel-major: free reshape back to NCHW.
    return out.reshape(N, c_out, H, W)


def init_params(key, c_in, c_out, eps=1e-5):
    """Deterministic synthetic parameters (shapes from the torch __init__)."""
    k1, k2, k3, k4, k5, k6, k7, k8 = jax.random.split(key, 8)
    # conv weights in HWIO layout
    w1 = jax.random.normal(k1, (3, 3, c_in, 128), jnp.float32) * 0.05
    w2 = jax.random.normal(k2, (3, 3, 128, 64), jnp.float32) * 0.05
    w3 = jax.random.normal(k3, (64, c_out), jnp.float32) * 0.05
    b3 = jax.random.normal(k4, (1, c_out), jnp.float32) * 0.05

    # BN params (inference mode), folded into per-channel scale/bias
    def fold_bn(kg, kb, c):
        gamma = 1.0 + 0.1 * jax.random.normal(kg, (c,), jnp.float32)
        beta = 0.1 * jax.random.normal(kb, (c,), jnp.float32)
        running_mean = jnp.zeros((c,), jnp.float32)
        running_var = jnp.ones((c,), jnp.float32)
        scale = gamma / jnp.sqrt(running_var + eps)
        bias = beta - running_mean * scale
        return scale.reshape(1, c), bias.reshape(1, c)

    s1, b1 = fold_bn(k5, k6, 128)
    s2, b2 = fold_bn(k7, k8, 64)
    return (w1, s1, b1, w2, s2, b2, w3, b3)


def reference_decoder(ego_bev, sparse_collab_bev, params):
    """Pure-JAX f32 reference (lax conv) for correctness checking."""
    w1, s1, b1, w2, s2, b2, w3, b3 = params
    x = jnp.concatenate([ego_bev, sparse_collab_bev], axis=1).astype(jnp.float32)
    dn = lax.conv_dimension_numbers(x.shape, w1.shape, ("NCHW", "HWIO", "NCHW"))

    def conv3(x, w):
        return lax.conv_general_dilated(x, w, (1, 1), ((1, 1), (1, 1)),
                                        dimension_numbers=dn)

    y = conv3(x, w1)
    y = jnp.maximum(y * s1.reshape(1, -1, 1, 1) + b1.reshape(1, -1, 1, 1), 0.0)
    y = conv3(y, w2)
    y = jnp.maximum(y * s2.reshape(1, -1, 1, 1) + b2.reshape(1, -1, 1, 1), 0.0)
    y = jnp.einsum("nchw,co->nohw", y, w3) + b3.reshape(1, -1, 1, 1)
    return y


if __name__ == "__main__":
    key = jax.random.PRNGKey(0)
    k_ego, k_sp, k_params = jax.random.split(key, 3)

    N, c_in_ego, c_in_sparse, c_out, H, W = 2, 4, 4, 8, 16, 16
    ego_bev = jax.random.normal(k_ego, (N, c_in_ego, H, W), jnp.float32)
    sparse_collab_bev = jax.random.normal(k_sp, (N, c_in_sparse, H, W), jnp.float32)

    params = init_params(k_params, c_in_ego + c_in_sparse, c_out)

    out = reconstruction_decoder(ego_bev, sparse_collab_bev, params)
    out = jax.block_until_ready(out)

    ref = jax.block_until_ready(reference_decoder(ego_bev, sparse_collab_bev, params))
    assert out.shape == (N, c_out, H, W), out.shape
    # bf16 MXU operands with f32 accumulation -> ~1e-2-level tolerance.
    assert jnp.allclose(out, ref, atol=3e-2, rtol=3e-2), float(jnp.max(jnp.abs(out - ref)))

    print("KERNEL_OK")
</pallas_src>

<mosaic_0001>
module attributes {stable_mosaic.version = 11 : i64} {
  func.func @_decoder_kernel(%arg0: i32, %arg1: i32, %arg2: memref<1x16x16x8xbf16, #tpu.memory_space<vmem>>, %arg3: memref<72x128xbf16, #tpu.memory_space<vmem>>, %arg4: memref<1x128xf32, #tpu.memory_space<vmem>>, %arg5: memref<3x384x64xbf16, #tpu.memory_space<vmem>>, %arg6: memref<1x64xf32, #tpu.memory_space<vmem>>, %arg7: memref<8x64xbf16, #tpu.memory_space<vmem>>, %arg8: memref<8x1xf32, #tpu.memory_space<vmem>>, %arg9: memref<1x8x128xf32, #tpu.memory_space<vmem>>, %arg10: memref<20x18x8xbf16, #tpu.memory_space<vmem>>, %arg11: memref<10x18x128xbf16, #tpu.memory_space<vmem>>) attributes {dimension_semantics = [#tpu.dimension_semantics<parallel>, #tpu.dimension_semantics<arbitrary>], iteration_bounds = array<i64: 2, 2>, scalar_prefetch = 0 : i64, scratch_operands = 2 : i64, tpu.core_type = #tpu.core_type<tc>, window_params = [{transform_indices = @transform_0, window_bounds = array<i64: 1, 16, 16, 8>}, {pipeline_mode = #tpu.pipeline_mode<synchronous>, transform_indices = @transform_1, window_bounds = array<i64: 72, 128>}, {pipeline_mode = #tpu.pipeline_mode<synchronous>, transform_indices = @transform_2, window_bounds = array<i64: 1, 128>}, {pipeline_mode = #tpu.pipeline_mode<synchronous>, transform_indices = @transform_3, window_bounds = array<i64: 3, 384, 64>}, {pipeline_mode = #tpu.pipeline_mode<synchronous>, transform_indices = @transform_4, window_bounds = array<i64: 1, 64>}, {pipeline_mode = #tpu.pipeline_mode<synchronous>, transform_indices = @transform_5, window_bounds = array<i64: 8, 64>}, {pipeline_mode = #tpu.pipeline_mode<synchronous>, transform_indices = @transform_6, window_bounds = array<i64: 8, 1>}, {transform_indices = @transform_7, window_bounds = array<i64: 1, 8, 128>}]} {
    %c8_i32 = arith.constant 8 : i32
    %0 = arith.muli %arg1, %c8_i32 : i32
    %1 = tpu.assume_multiple %0, 8 : i32
    %c0_i32 = arith.constant 0 : i32
    %2 = arith.cmpi eq, %arg1, %c0_i32 : i32
    %3 = arith.extui %2 : i1 to i32
    %c0_i32_0 = arith.constant 0 : i32
    %4 = arith.cmpi ne, %3, %c0_i32_0 : i32
    scf.if %4 {
      %cst_91 = arith.constant 0.000000e+00 : bf16
      %101 = vector.broadcast %cst_91 : bf16 to vector<20x18x8xbf16>
      %c0_92 = arith.constant 0 : index
      %c0_93 = arith.constant 0 : index
      %c0_94 = arith.constant 0 : index
      %102 = vector.load %arg10[%c0_92, %c0_93, %c0_94] : memref<20x18x8xbf16, #tpu.memory_space<vmem>>, vector<20x18x8xbf16>
      tpu.vector_store %arg10[%c0_92, %c0_93, %c0_94], %101 {strides = array<i32>} : memref<20x18x8xbf16, #tpu.memory_space<vmem>>, vector<20x18x8xbf16>,
      %c0_95 = arith.constant 0 : index
      %c0_96 = arith.constant 0 : index
      %c0_97 = arith.constant 0 : index
      %c0_98 = arith.constant 0 : index
      %103 = vector.load %arg2[%c0_95, %c0_96, %c0_97, %c0_98] : memref<1x16x16x8xbf16, #tpu.memory_space<vmem>>, vector<1x16x16x8xbf16>
      %104 = vector.shape_cast %103 : vector<1x16x16x8xbf16> to vector<16x16x8xbf16>
      %c2_99 = arith.constant 2 : index
      %c1_100 = arith.constant 1 : index
      %c0_101 = arith.constant 0 : index
      %105 = vector.load %arg10[%c2_99, %c1_100, %c0_101] : memref<20x18x8xbf16, #tpu.memory_space<vmem>>, vector<16x16x8xbf16>
      tpu.vector_store %arg10[%c2_99, %c1_100, %c0_101], %104 {strides = array<i32>} : memref<20x18x8xbf16, #tpu.memory_space<vmem>>, vector<16x16x8xbf16>,
    } else {
    }
    %c0_i32_1 = arith.constant 0 : i32
    %5 = arith.addi %1, %c0_i32_1 : i32
    %6 = arith.index_cast %5 : i32 to index
    %c0 = arith.constant 0 : index
    %c0_2 = arith.constant 0 : index
    %7 = vector.load %arg10[%6, %c0, %c0_2] : memref<20x18x8xbf16, #tpu.memory_space<vmem>>, vector<10x16x8xbf16>
    %c0_i32_3 = arith.constant 0 : i32
    %8 = arith.addi %1, %c0_i32_3 : i32
    %9 = arith.index_cast %8 : i32 to index
    %c1 = arith.constant 1 : index
    %c0_4 = arith.constant 0 : index
    %10 = vector.load %arg10[%9, %c1, %c0_4] : memref<20x18x8xbf16, #tpu.memory_space<vmem>>, vector<10x16x8xbf16>
    %c0_i32_5 = arith.constant 0 : i32
    %11 = arith.addi %1, %c0_i32_5 : i32
    %12 = arith.index_cast %11 : i32 to index
    %c2 = arith.constant 2 : index
    %c0_6 = arith.constant 0 : index
    %13 = vector.load %arg10[%12, %c2, %c0_6] : memref<20x18x8xbf16, #tpu.memory_space<vmem>>, vector<10x16x8xbf16>
    %c1_i32 = arith.constant 1 : i32
    %14 = arith.addi %1, %c1_i32 : i32
    %15 = arith.index_cast %14 : i32 to index
    %c0_7 = arith.constant 0 : index
    %c0_8 = arith.constant 0 : index
    %16 = vector.load %arg10[%15, %c0_7, %c0_8] : memref<20x18x8xbf16, #tpu.memory_space<vmem>>, vector<10x16x8xbf16>
    %c1_i32_9 = arith.constant 1 : i32
    %17 = arith.addi %1, %c1_i32_9 : i32
    %18 = arith.index_cast %17 : i32 to index
    %c1_10 = arith.constant 1 : index
    %c0_11 = arith.constant 0 : index
    %19 = vector.load %arg10[%18, %c1_10, %c0_11] : memref<20x18x8xbf16, #tpu.memory_space<vmem>>, vector<10x16x8xbf16>
    %c1_i32_12 = arith.constant 1 : i32
    %20 = arith.addi %1, %c1_i32_12 : i32
    %21 = arith.index_cast %20 : i32 to index
    %c2_13 = arith.constant 2 : index
    %c0_14 = arith.constant 0 : index
    %22 = vector.load %arg10[%21, %c2_13, %c0_14] : memref<20x18x8xbf16, #tpu.memory_space<vmem>>, vector<10x16x8xbf16>
    %c2_i32 = arith.constant 2 : i32
    %23 = arith.addi %1, %c2_i32 : i32
    %24 = arith.index_cast %23 : i32 to index
    %c0_15 = arith.constant 0 : index
    %c0_16 = arith.constant 0 : index
    %25 = vector.load %arg10[%24, %c0_15, %c0_16] : memref<20x18x8xbf16, #tpu.memory_space<vmem>>, vector<10x16x8xbf16>
    %c2_i32_17 = arith.constant 2 : i32
    %26 = arith.addi %1, %c2_i32_17 : i32
    %27 = arith.index_cast %26 : i32 to index
    %c1_18 = arith.constant 1 : index
    %c0_19 = arith.constant 0 : index
    %28 = vector.load %arg10[%27, %c1_18, %c0_19] : memref<20x18x8xbf16, #tpu.memory_space<vmem>>, vector<10x16x8xbf16>
    %c2_i32_20 = arith.constant 2 : i32
    %29 = arith.addi %1, %c2_i32_20 : i32
    %30 = arith.index_cast %29 : i32 to index
    %c2_21 = arith.constant 2 : index
    %c0_22 = arith.constant 0 : index
    %31 = vector.load %arg10[%30, %c2_21, %c0_22] : memref<20x18x8xbf16, #tpu.memory_space<vmem>>, vector<10x16x8xbf16>
    %32 = tpu.concatenate %7, %10, %13, %16, %19, %22, %25, %28, %31 in 2 : vector<10x16x8xbf16>, vector<10x16x8xbf16>, vector<10x16x8xbf16>, vector<10x16x8xbf16>, vector<10x16x8xbf16>, vector<10x16x8xbf16>, vector<10x16x8xbf16>, vector<10x16x8xbf16>, vector<10x16x8xbf16> -> vector<10x16x72xbf16>
    %33 = vector.shape_cast %32 : vector<10x16x72xbf16> to vector<160x72xbf16>
    %c0_23 = arith.constant 0 : index
    %c0_24 = arith.constant 0 : index
    %34 = vector.load %arg3[%c0_23, %c0_24] : memref<72x128xbf16, #tpu.memory_space<vmem>>, vector<72x128xbf16>
    %cst = arith.constant dense<0.000000e+00> : vector<160x128xf32>
    %35 = tpu.matmul %33, %34, %cst {dimension_numbers = #tpu.dot_dimension_numbers<[1], [0], [0], [1], [0, 0, 1, 1], [], []>} : vector<160x72xbf16>, vector<72x128xbf16>, vector<160x128xf32> -> vector<160x128xf32>
    %c0_25 = arith.constant 0 : index
    %c0_26 = arith.constant 0 : index
    %36 = vector.load %arg4[%c0_25, %c0_26] : memref<1x128xf32, #tpu.memory_space<vmem>>, vector<1x128xf32>
    %37 = vector.broadcast %36 : vector<1x128xf32> to vector<160x128xf32>
    %38 = arith.addf %35, %37 : vector<160x128xf32>
    %cst_27 = arith.constant 0.000000e+00 : f32
    %39 = vector.broadcast %cst_27 : f32 to vector<160x128xf32>
    %40 = arith.maximumf %38, %39 : vector<160x128xf32>
    %41 = vector.shape_cast %40 : vector<160x128xf32> to vector<10x16x128xf32>
    %c1_i32_28 = arith.constant 1 : i32
    %42 = arith.subi %1, %c1_i32_28 : i32
    %43 = tpu.iota {dimensions = array<i32: 0>} : vector<10x1x1xi32>
    %44 = vector.broadcast %42 : i32 to vector<10x1x1xi32>
    %45 = arith.addi %44, %43 : vector<10x1x1xi32>
    %c0_i32_29 = arith.constant 0 : i32
    %46 = vector.broadcast %c0_i32_29 : i32 to vector<10x1x1xi32>
    %47 = arith.cmpi sge, %45, %46 : vector<10x1x1xi32>
    %c16_i32 = arith.constant 16 : i32
    %48 = vector.broadcast %c16_i32 : i32 to vector<10x1x1xi32>
    %49 = arith.cmpi slt, %45, %48 : vector<10x1x1xi32>
    %50 = arith.andi %47, %49 : vector<10x1x1xi1>
    %cst_30 = arith.constant 0.000000e+00 : f32
    %51 = vector.shape_cast %50 : vector<10x1x1xi1> to vector<10x1x1xi1>
    %52 = vector.broadcast %51 : vector<10x1x1xi1> to vector<10x16x128xi1>
    %53 = vector.broadcast %cst_30 : f32 to vector<10x16x128xf32>
    %54 = arith.select %52, %41, %53 : vector<10x16x128xi1>, vector<10x16x128xf32>
    %55 = arith.truncf %54 : vector<10x16x128xf32> to vector<10x16x128xbf16>
    %c0_31 = arith.constant 0 : index
    %c1_32 = arith.constant 1 : index
    %c0_33 = arith.constant 0 : index
    %56 = vector.load %arg11[%c0_31, %c1_32, %c0_33] : memref<10x18x128xbf16, #tpu.memory_space<vmem>>, vector<10x16x128xbf16>
    tpu.vector_store %arg11[%c0_31, %c1_32, %c0_33], %55 {strides = array<i32>} : memref<10x18x128xbf16, #tpu.memory_space<vmem>>, vector<10x16x128xbf16>,
    %cst_34 = arith.constant 0.000000e+00 : bf16
    %57 = vector.broadcast %cst_34 : bf16 to vector<10x1x128xbf16>
    %c0_35 = arith.constant 0 : index
    %c0_36 = arith.constant 0 : index
    %c0_37 = arith.constant 0 : index
    %58 = vector.load %arg11[%c0_35, %c0_36, %c0_37] : memref<10x18x128xbf16, #tpu.memory_space<vmem>>, vector<10x1x128xbf16>
    tpu.vector_store %arg11[%c0_35, %c0_36, %c0_37], %57 {strides = array<i32>} : memref<10x18x128xbf16, #tpu.memory_space<vmem>>, vector<10x1x128xbf16>,
    %cst_38 = arith.constant 0.000000e+00 : bf16
    %59 = vector.broadcast %cst_38 : bf16 to vector<10x1x128xbf16>
    %c0_39 = arith.constant 0 : index
    %c17 = arith.constant 17 : index
    %c0_40 = arith.constant 0 : index
    %60 = vector.load %arg11[%c0_39, %c17, %c0_40] : memref<10x18x128xbf16, #tpu.memory_space<vmem>>, vector<10x1x128xbf16>
    tpu.vector_store %arg11[%c0_39, %c17, %c0_40], %59 {strides = array<i32>} : memref<10x18x128xbf16, #tpu.memory_space<vmem>>, vector<10x1x128xbf16>,
    %c0_41 = arith.constant 0 : index
    %c0_42 = arith.constant 0 : index
    %c0_43 = arith.constant 0 : index
    %61 = vector.load %arg11[%c0_41, %c0_42, %c0_43] : memref<10x18x128xbf16, #tpu.memory_space<vmem>>, vector<8x16x128xbf16>
    %c0_44 = arith.constant 0 : index
    %c1_45 = arith.constant 1 : index
    %c0_46 = arith.constant 0 : index
    %62 = vector.load %arg11[%c0_44, %c1_45, %c0_46] : memref<10x18x128xbf16, #tpu.memory_space<vmem>>, vector<8x16x128xbf16>
    %c0_47 = arith.constant 0 : index
    %c2_48 = arith.constant 2 : index
    %c0_49 = arith.constant 0 : index
    %63 = vector.load %arg11[%c0_47, %c2_48, %c0_49] : memref<10x18x128xbf16, #tpu.memory_space<vmem>>, vector<8x16x128xbf16>
    %64 = tpu.concatenate %61, %62, %63 in 2 : vector<8x16x128xbf16>, vector<8x16x128xbf16>, vector<8x16x128xbf16> -> vector<8x16x384xbf16>
    %65 = vector.shape_cast %64 : vector<8x16x384xbf16> to vector<128x384xbf16>
    %c0_50 = arith.constant 0 : index
    %c0_51 = arith.constant 0 : index
    %c0_52 = arith.constant 0 : index
    %66 = vector.load %arg5[%c0_50, %c0_51, %c0_52] : memref<3x384x64xbf16, #tpu.memory_space<vmem>>, vector<1x384x64xbf16>
    %67 = vector.shape_cast %66 : vector<1x384x64xbf16> to vector<384x64xbf16>
    %cst_53 = arith.constant dense<0.000000e+00> : vector<128x64xf32>
    %68 = tpu.matmul %65, %67, %cst_53 {dimension_numbers = #tpu.dot_dimension_numbers<[1], [0], [0], [1], [0, 0, 1, 1], [], []>} : vector<128x384xbf16>, vector<384x64xbf16>, vector<128x64xf32> -> vector<128x64xf32>
    %c1_54 = arith.constant 1 : index
    %c0_55 = arith.constant 0 : index
    %c0_56 = arith.constant 0 : index
    %69 = vector.load %arg11[%c1_54, %c0_55, %c0_56] : memref<10x18x128xbf16, #tpu.memory_space<vmem>>, vector<8x16x128xbf16>
    %c1_57 = arith.constant 1 : index
    %c1_58 = arith.constant 1 : index
    %c0_59 = arith.constant 0 : index
    %70 = vector.load %arg11[%c1_57, %c1_58, %c0_59] : memref<10x18x128xbf16, #tpu.memory_space<vmem>>, vector<8x16x128xbf16>
    %c1_60 = arith.constant 1 : index
    %c2_61 = arith.constant 2 : index
    %c0_62 = arith.constant 0 : index
    %71 = vector.load %arg11[%c1_60, %c2_61, %c0_62] : memref<10x18x128xbf16, #tpu.memory_space<vmem>>, vector<8x16x128xbf16>
    %72 = tpu.concatenate %69, %70, %71 in 2 : vector<8x16x128xbf16>, vector<8x16x128xbf16>, vector<8x16x128xbf16> -> vector<8x16x384xbf16>
    %73 = vector.shape_cast %72 : vector<8x16x384xbf16> to vector<128x384xbf16>
    %c1_63 = arith.constant 1 : index
    %c0_64 = arith.constant 0 : index
    %c0_65 = arith.constant 0 : index
    %74 = vector.load %arg5[%c1_63, %c0_64, %c0_65] : memref<3x384x64xbf16, #tpu.memory_space<vmem>>, vector<1x384x64xbf16>
    %75 = vector.shape_cast %74 : vector<1x384x64xbf16> to vector<384x64xbf16>
    %cst_66 = arith.constant dense<0.000000e+00> : vector<128x64xf32>
    %76 = tpu.matmul %73, %75, %cst_66 {dimension_numbers = #tpu.dot_dimension_numbers<[1], [0], [0], [1], [0, 0, 1, 1], [], []>} : vector<128x384xbf16>, vector<384x64xbf16>, vector<128x64xf32> -> vector<128x64xf32>
    %77 = arith.addf %68, %76 : vector<128x64xf32>
    %c2_67 = arith.constant 2 : index
    %c0_68 = arith.constant 0 : index
    %c0_69 = arith.constant 0 : index
    %78 = vector.load %arg11[%c2_67, %c0_68, %c0_69] : memref<10x18x128xbf16, #tpu.memory_space<vmem>>, vector<8x16x128xbf16>
    %c2_70 = arith.constant 2 : index
    %c1_71 = arith.constant 1 : index
    %c0_72 = arith.constant 0 : index
    %79 = vector.load %arg11[%c2_70, %c1_71, %c0_72] : memref<10x18x128xbf16, #tpu.memory_space<vmem>>, vector<8x16x128xbf16>
    %c2_73 = arith.constant 2 : index
    %c2_74 = arith.constant 2 : index
    %c0_75 = arith.constant 0 : index
    %80 = vector.load %arg11[%c2_73, %c2_74, %c0_75] : memref<10x18x128xbf16, #tpu.memory_space<vmem>>, vector<8x16x128xbf16>
    %81 = tpu.concatenate %78, %79, %80 in 2 : vector<8x16x128xbf16>, vector<8x16x128xbf16>, vector<8x16x128xbf16> -> vector<8x16x384xbf16>
    %82 = vector.shape_cast %81 : vector<8x16x384xbf16> to vector<128x384xbf16>
    %c2_76 = arith.constant 2 : index
    %c0_77 = arith.constant 0 : index
    %c0_78 = arith.constant 0 : index
    %83 = vector.load %arg5[%c2_76, %c0_77, %c0_78] : memref<3x384x64xbf16, #tpu.memory_space<vmem>>, vector<1x384x64xbf16>
    %84 = vector.shape_cast %83 : vector<1x384x64xbf16> to vector<384x64xbf16>
    %cst_79 = arith.constant dense<0.000000e+00> : vector<128x64xf32>
    %85 = tpu.matmul %82, %84, %cst_79 {dimension_numbers = #tpu.dot_dimension_numbers<[1], [0], [0], [1], [0, 0, 1, 1], [], []>} : vector<128x384xbf16>, vector<384x64xbf16>, vector<128x64xf32> -> vector<128x64xf32>
    %86 = arith.addf %77, %85 : vector<128x64xf32>
    %c0_80 = arith.constant 0 : index
    %c0_81 = arith.constant 0 : index
    %87 = vector.load %arg6[%c0_80, %c0_81] : memref<1x64xf32, #tpu.memory_space<vmem>>, vector<1x64xf32>
    %88 = vector.broadcast %87 : vector<1x64xf32> to vector<128x64xf32>
    %89 = arith.addf %86, %88 : vector<128x64xf32>
    %cst_82 = arith.constant 0.000000e+00 : f32
    %90 = vector.broadcast %cst_82 : f32 to vector<128x64xf32>
    %91 = arith.maximumf %89, %90 : vector<128x64xf32>
    %c0_83 = arith.constant 0 : index
    %c0_84 = arith.constant 0 : index
    %92 = vector.load %arg7[%c0_83, %c0_84] : memref<8x64xbf16, #tpu.memory_space<vmem>>, vector<8x64xbf16>
    %93 = arith.truncf %91 : vector<128x64xf32> to vector<128x64xbf16>
    %cst_85 = arith.constant dense<0.000000e+00> : vector<8x128xf32>
    %94 = tpu.matmul %92, %93, %cst_85 {dimension_numbers = #tpu.dot_dimension_numbers<[1], [1], [0], [0], [0, 0, 1, 0], [], []>} : vector<8x64xbf16>, vector<128x64xbf16>, vector<8x128xf32> -> vector<8x128xf32>
    %c0_86 = arith.constant 0 : index
    %c0_87 = arith.constant 0 : index
    %95 = vector.load %arg8[%c0_86, %c0_87] : memref<8x1xf32, #tpu.memory_space<vmem>>, vector<8x1xf32>
    %96 = vector.broadcast %95 : vector<8x1xf32> to vector<8x128xf32>
    %97 = arith.addf %94, %96 : vector<8x128xf32>
    %c0_88 = arith.constant 0 : index
    %c0_89 = arith.constant 0 : index
    %c0_90 = arith.constant 0 : index
    %98 = vector.load %arg9[%c0_88, %c0_89, %c0_90] : memref<1x8x128xf32, #tpu.memory_space<vmem>>, vector<1x8x128xf32>
    %99 = vector.shape_cast %98 : vector<1x8x128xf32> to vector<8x128xf32>
    %100 = vector.shape_cast %97 : vector<8x128xf32> to vector<1x8x128xf32>
    tpu.vector_store %arg9[%c0_88, %c0_89, %c0_90], %100 {strides = array<i32>} : memref<1x8x128xf32, #tpu.memory_space<vmem>>, vector<1x8x128xf32>,
    return
  }
  func.func @transform_0(%arg0: i32, %arg1: i32) -> (i32, i32, i32, i32) {
    %c0_i32 = arith.constant 0 : i32
    %c0_i32_0 = arith.constant 0 : i32
    %c0_i32_1 = arith.constant 0 : i32
    %c0_i32_2 = arith.constant 0 : i32
    return %arg0, %c0_i32, %c0_i32_0, %c0_i32_1 : i32, i32, i32, i32
  }
  func.func @transform_1(%arg0: i32, %arg1: i32) -> (i32, i32) {
    %c0_i32 = arith.constant 0 : i32
    %c0_i32_0 = arith.constant 0 : i32
    %c0_i32_1 = arith.constant 0 : i32
    return %c0_i32, %c0_i32_0 : i32, i32
  }
  func.func @transform_2(%arg0: i32, %arg1: i32) -> (i32, i32) {
    %c0_i32 = arith.constant 0 : i32
    %c0_i32_0 = arith.constant 0 : i32
    %c0_i32_1 = arith.constant 0 : i32
    return %c0_i32, %c0_i32_0 : i32, i32
  }
  func.func @transform_3(%arg0: i32, %arg1: i32) -> (i32, i32, i32) {
    %c0_i32 = arith.constant 0 : i32
    %c0_i32_0 = arith.constant 0 : i32
    %c0_i32_1 = arith.constant 0 : i32
    %c0_i32_2 = arith.constant 0 : i32
    return %c0_i32, %c0_i32_0, %c0_i32_1 : i32, i32, i32
  }
  func.func @transform_4(%arg0: i32, %arg1: i32) -> (i32, i32) {
    %c0_i32 = arith.constant 0 : i32
    %c0_i32_0 = arith.constant 0 : i32
    %c0_i32_1 = arith.constant 0 : i32
    return %c0_i32, %c0_i32_0 : i32, i32
  }
  func.func @transform_5(%arg0: i32, %arg1: i32) -> (i32, i32) {
    %c0_i32 = arith.constant 0 : i32
    %c0_i32_0 = arith.constant 0 : i32
    %c0_i32_1 = arith.constant 0 : i32
    return %c0_i32, %c0_i32_0 : i32, i32
  }
  func.func @transform_6(%arg0: i32, %arg1: i32) -> (i32, i32) {
    %c0_i32 = arith.constant 0 : i32
    %c0_i32_0 = arith.constant 0 : i32
    %c0_i32_1 = arith.constant 0 : i32
    return %c0_i32, %c0_i32_0 : i32, i32
  }
  func.func @transform_7(%arg0: i32, %arg1: i32) -> (i32, i32, i32) {
    %c0_i32 = arith.constant 0 : i32
    %c0_i32_0 = arith.constant 0 : i32
    return %arg0, %c0_i32, %arg1 : i32, i32, i32
  }
}

</mosaic_0001>

<bundles_post_ra>
// kernel: tpu_custom_call.1
= control target key start
LH: loop header
LB: loop body
LE: loop exit
PB: predicated region body
PF: predicated region fallthrough
CT: control target
= control target key end

     0   :  { %s8576_s0 = inlined_call_operand.vmem [shape: bf16[2,16,16,8], index: 0, kind: input, shape index: {}]   ;;  %s8577_s1 = inlined_call_operand.vmem [shape: bf16[72,128], index: 1, kind: input, shape index: {}]   ;;  %s8578_s2 = inlined_call_operand.vmem [shape: f32[1,128], index: 2, kind: input, shape index: {}]   ;;  %s8579_s3 = inlined_call_operand.vmem [shape: bf16[3,384,64], index: 3, kind: input, shape index: {}]   ;;  %s8580_s4 = inlined_call_operand.vmem [shape: f32[1,64], index: 4, kind: input, shape index: {}]   ;;  %s8581_s5 = inlined_call_operand.vmem [shape: bf16[8,64], index: 5, kind: input, shape index: {}]   ;;  %s8582_s6 = inlined_call_operand.vmem [shape: f32[8,1], index: 6, kind: input, shape index: {}]   ;;  %s8583_s7 = inlined_call_operand.hbm [shape: f32[2,8,256], index: 7, kind: output, shape index: {}]  }
   0x1   :  { %8596 = sst [smem:[#allocation14_spill]] %s8576_s0 }
   0x2   :  { %12 = vsyncpa [#allocation5], 0 }
   0x3   :  { %14 = vsyncpa [#allocation5 + $0x1], 0  ;;  %s6400_s24 = smov 0   ;;  %s6402_s25 = smov 0  }
   0x4   :  { %s6404_s26 = smov 0   ;;  %s6406_s27 = smov 0  }
   0x5   :  { %s6408_s28 = smov 0   ;;  %s6410_s29 = smov 0  }
   0x6   :  { %s6412_s30 = smov 0   ;;  %s6414_s8 = smov 0  }
   0x7 LB: > { %s4944_s9 = sadd.s32 4294967295, %s6345_s8   ;;  %s4945_s10 = sadd.s32 4294967294, %s6345_s8   ;;  %s6345_s8 = sphi %s6414_s8, %s20_s8   ;;  %s6341_s30 = sphi %s6412_s30, %s8678_s30   ;;  %s6337_s29 = sphi %s6410_s29, %s8677_s29   ;;  %s6333_s28 = sphi %s6408_s28, %s8676_s28   ;;  %s6329_s27 = sphi %s6406_s27, %s8675_s27   ;;  %s6325_s26 = sphi %s6404_s26, %s8674_s26   ;;  %s6321_s25 = sphi %s6402_s25, %s8673_s25   ;;  %s6317_s24 = sphi %s6400_s24, %s8672_s24  }
   0x8   : > { %s29_s11 = sadd.s32 1, %s6337_s29  ;;  %s32_s12 = sadd.s32 1, %s6341_s30 }
   0x9   : > { %p30_p0 = scmp.ge.s32.totalorder %s29_s11, 2  ;;  %p203_p1 = scmp.ne.s32.totalorder %s6325_s26, %s6321_s25 }
   0xa   : > { %p204_p2 = scmp.eq.s32.totalorder %s4944_s9, 3  ;;  %p209_p5 = scmp.ne.s32.totalorder %s6321_s25, %s6317_s24 }
   0xb   : > { %s8680_s11 = smov (%p30_p0, %s29_s11), 0  ;;  %s8682_s12 = smov (!%p30_p0, %s32_s12), %s6341_s30 }
   0xc   : > { %s189_s13 = ssub.s32 %s6337_s29, %s8680_s11  ;;  %p6451_p3 = por %p204_p2, %p203_p1 }
   0xd   : > { %p34_p4 = scmp.ge.s32.totalorder %s8682_s12, 2  ;;  %p210_p6 = scmp.eq.s32.totalorder %s4945_s10, 3 }
   0xe   : > { %p4948_p7 = scmp.ge.s32.totalorder %s6345_s8, 1  ;;  %p254_p9 = scmp.lt.s32.totalorder %s6345_s8, 5 }
   0xf   : > { %s8684_s12 = smov (%p34_p4, %s8682_s12), 0  ;;  %p6460_p8 = por %p210_p6, %p209_p5 }
  0x10   : > { %s188_s16 = ssub.s32 %s6341_s30, %s8684_s12  ;;  %s193_s17 = sadd.s32 1, %s6325_s26 }
  0x11   : > { %s190_s18 = sor.u32 %s189_s13, %s188_s16  ;;  %p255_p10 = pnand %p4948_p7, %p254_p9 }
  0x12   : > { %p191_p11 = scmp.eq.s32.totalorder %s190_s18, 0 }
  0x13   : > { %258 = sbr.rel (%p255_p10) target bundleno = 1273 (0x4f9), region = 48 }
  0x14   : > { %s6469_s19 = scalar_select %p191_p11, %s6325_s26, %s193_s17  }
  0x1a   : > { %s8584_s20 = sand.u32 1, %s6321_s25   ;;  %p286_p12 = scmp.lt.s32.totalorder %s6333_s28, 1 }
  0x1b   : > { %s6475_s21 = sshll.u32 %s8584_s20, 3  ;;  %s8599_s0 = sld [smem:[#allocation14_spill]] }
  0x1c   : > { %s287_s23 = scalar_select %p286_p12, %s6333_s28, 1 }
  0x1d   : > { %p4953_p13 = scmp.ne.s32.totalorder %s6329_s27, 0 }
  0x1e   : > { %s5414_s9 = sshll.u32 %s287_s23, 7  ;;  %vm297_vm0 = vcmask (!%p4953_p13), 60416   ;;  %vm300_vm1 = vcmask (!%p4953_p13), 57344   ;;  %v6347_v1 = vmov (!%p4953_p13), 0   ;;  %vm716_vm2 = vsmask.f32 (!%p4953_p13), 7938 }
  0x1f   : > { %296 = sbr.rel (%p4953_p13) target bundleno = 117 (0x75), region = 52  ;;  %305 = vst.msk [vmem:[#allocation2 + $0x18] sm:$0xf] (!%p4953_p13), %vm297_vm0, %v6347_v1  ;;  %298 = vst.msk [vmem:[#allocation2] sm:$0xf] (!%p4953_p13), %vm297_vm0, %v6347_v1 }
  0x20   : > { %299 = vst.msk [vmem:[#allocation2 + $0x4] sm:$0xf] (!%p4953_p13), %vm297_vm0, %v6347_v1  ;;  %302 = vst.msk [vmem:[#allocation2 + $0xc] sm:$0xf] (!%p4953_p13), %vm297_vm0, %v6347_v1  ;;  %vm391_vm3 = vsmask.f32 (!%p4953_p13), 256 }
  0x21   : > { %s6482_s16 = scalar_lea.vmem %s8599_s0, %s5414_s9  ;;  %303 = vst.msk [vmem:[#allocation2 + $0x10] sm:$0xf] (!%p4953_p13), %vm297_vm0, %v6347_v1  ;;  %306 = vst.msk [vmem:[#allocation2 + $0x1c] sm:$0xf] (!%p4953_p13), %vm297_vm0, %v6347_v1  ;;  %vm392_vm4 = vsmask.f32 (!%p4953_p13), 4368 }
  0x22   : > { %v6487_v0 = vld [vmem:[%s6482_s16] sm:$0xf] (!%p4953_p13)  ;;  %308 = vst.msk [vmem:[#allocation2 + $0x24] sm:$0xf] (!%p4953_p13), %vm297_vm0, %v6347_v1  ;;  %309 = vst.msk [vmem:[#allocation2 + $0x28] sm:$0xf] (!%p4953_p13), %vm297_vm0, %v6347_v1 }
  0x23   : > { %311 = vst.msk [vmem:[#allocation2 + $0x30] sm:$0xf] (!%p4953_p13), %vm297_vm0, %v6347_v1  ;;  %312 = vst.msk [vmem:[#allocation2 + $0x34] sm:$0xf] (!%p4953_p13), %vm297_vm0, %v6347_v1  ;;  %v395_v2 = vshrl.u32 (!%p4953_p13), %v6487_v0, 16  ;;  %v398_v3 = vshll.u32 (!%p4953_p13), %v6487_v0, 16 }
  0x24   : > { %314 = vst.msk [vmem:[#allocation2 + $0x3c] sm:$0xf] (!%p4953_p13), %vm297_vm0, %v6347_v1  ;;  %315 = vst.msk [vmem:[#allocation2 + $0x40] sm:$0xf] (!%p4953_p13), %vm297_vm0, %v6347_v1  ;;  %v360_v4 = vld [vmem:[%s6482_s16 + $0x4] sm:$0xf] (!%p4953_p13) }
  0x25   : > { %317 = vst.msk [vmem:[#allocation2 + $0x48] sm:$0xf] (!%p4953_p13), %vm297_vm0, %v6347_v1  ;;  %318 = vst.msk [vmem:[#allocation2 + $0x4c] sm:$0xf] (!%p4953_p13), %vm297_vm0, %v6347_v1  ;;  %v403_v5 = vshrl.u32 (!%p4953_p13), %v360_v4, 16  ;;  %v406_v6 = vshll.u32 (!%p4953_p13), %v360_v4, 16 }
  0x26   : > { %320 = vst.msk [vmem:[#allocation2 + $0x54] sm:$0xf] %vm297_vm0, %v6347_v1  ;;  %321 = vst.msk [vmem:[#allocation2 + $0x58] sm:$0xf] %vm297_vm0, %v6347_v1  ;;  %v397_v7 = vrot.slane %v395_v2, 7 }
  0x27   : > { %323 = vst.msk [vmem:[#allocation2 + $0x60] sm:$0xf] %vm297_vm0, %v6347_v1  ;;  %324 = vst.msk [vmem:[#allocation2 + $0x64] sm:$0xf] %vm297_vm0, %v6347_v1  ;;  %v361_v8 = vld [vmem:[%s6482_s16 + $0x8] sm:$0xf] }
  0x28   : > { %326 = vst.msk [vmem:[#allocation2 + $0x6c] sm:$0xf] %vm297_vm0, %v6347_v1  ;;  %327 = vst.msk [vmem:[#allocation2 + $0x70] sm:$0xf] %vm297_vm0, %v6347_v1  ;;  %v362_v9 = vld [vmem:[%s6482_s16 + $0xc] sm:$0xf]  ;;  %v400_v16 = vor.u32 %v398_v3, %v397_v7 }
  0x29   : > { %329 = vst.msk [vmem:[#allocation2 + $0x78] sm:$0xf] %vm297_vm0, %v6347_v1  ;;  %330 = vst.msk [vmem:[#allocation2 + $0x7c] sm:$0xf] %vm297_vm0, %v6347_v1  ;;  %v405_v11 = vrot.slane %v403_v5, 7  ;;  %v412_v12 = vshrl.u32 %v361_v8, 16 }
  0x2a   : > { %332 = vst.msk [vmem:[#allocation2 + $0x84] sm:$0xf] %vm297_vm0, %v6347_v1  ;;  %333 = vst.msk [vmem:[#allocation2 + $0x88] sm:$0xf] %vm297_vm0, %v6347_v1  ;;  %v415_v13 = vshll.u32 %v361_v8, 16  ;;  %v420_v14 = vshrl.u32 %v362_v9, 16 }
  0x2b   : > { %335 = vst.msk [vmem:[#allocation2 + $0x90] sm:$0xf] %vm297_vm0, %v6347_v1  ;;  %336 = vst.msk [vmem:[#allocation2 + $0x94] sm:$0xf] %vm297_vm0, %v6347_v1  ;;  %v363_v15 = vld [vmem:[%s6482_s16 + $0x10] sm:$0xf]  ;;  %v408_v22 = vor.u32 %v406_v6, %v405_v11 }
  0x2c   : > { %338 = vst.msk [vmem:[#allocation2 + $0x9c] sm:$0xf] %vm297_vm0, %v6347_v1  ;;  %339 = vst.msk [vmem:[#allocation2 + $0xa0] sm:$0xf] %vm297_vm0, %v6347_v1  ;;  %v401_v18 = vrot.slane %v397_v7, 4  ;;  %v423_v19 = vshll.u32 %v362_v9, 16 }
  0x2d   : > { %341 = vst.msk [vmem:[#allocation2 + $0xa8] sm:$0xf] %vm297_vm0, %v6347_v1  ;;  %342 = vst.msk [vmem:[#allocation2 + $0xac] sm:$0xf] %vm297_vm0, %v6347_v1  ;;  %v429_v20 = vshrl.u32 %v363_v15, 16  ;;  %v410_v23 = vrot.slane %v405_v11, 4 }
  0x2e   : > { %344 = vst.msk [vmem:[#allocation2 + $0xb4] sm:$0xf] %vm297_vm0, %v6347_v1  ;;  %345 = vst.msk [vmem:[#allocation2 + $0xb8] sm:$0xf] %vm297_vm0, %v6347_v1  ;;  %v364_v21 = vld [vmem:[%s6482_s16 + $0x14] sm:$0xf] }
  0x2f   : > { %347 = vst.msk [vmem:[#allocation2 + $0xc0] sm:$0xf] %vm297_vm0, %v6347_v1  ;;  %348 = vst.msk [vmem:[#allocation2 + $0xc4] sm:$0xf] %vm297_vm0, %v6347_v1  ;;  %v414_v25 = vrot.slane %v412_v12, 7  ;;  %v422_v26 = vrot.slane %v420_v14, 7 }
  0x30   : > { %350 = vst.msk [vmem:[#allocation2 + $0xcc] sm:$0xf] %vm297_vm0, %v6347_v1  ;;  %351 = vst.msk [vmem:[#allocation2 + $0xd0] sm:$0xf] %vm297_vm0, %v6347_v1  ;;  %v365_v27 = vld [vmem:[%s6482_s16 + $0x18] sm:$0xf] }
  0x31   : > { %353 = vst.msk [vmem:[#allocation2 + $0xd8] sm:$0xf] %vm297_vm0, %v6347_v1  ;;  %354 = vst.msk [vmem:[#allocation2 + $0xdc] sm:$0xf] %vm297_vm0, %v6347_v1  ;;  %v431_v28 = vrot.slane %v429_v20, 7  ;;  %v432_v29 = vshll.u32 %v363_v15, 16  ;;  %v417_v36 = vor.u32 %v415_v13, %v414_v25  ;;  %v425_v38 = vor.u32 %v423_v19, %v422_v26 }
  0x32   : > { %356 = vst.msk [vmem:[#allocation2 + $0xe4] sm:$0xf] %vm297_vm0, %v6347_v1  ;;  %357 = vst.msk [vmem:[#allocation2 + $0xe8] sm:$0xf] %vm297_vm0, %v6347_v1  ;;  %v437_v30 = vshrl.u32 %v364_v21, 16  ;;  %v440_v31 = vshll.u32 %v364_v21, 16 }
  0x33   : > { %307 = vst.msk [vmem:[#allocation2 + $0x20] sm:$0x1] %vm300_vm1, %v6347_v1  ;;  %301 = vst.msk [vmem:[#allocation2 + $0x8] sm:$0x1] %vm300_vm1, %v6347_v1  ;;  %v366_v32 = vld [vmem:[%s6482_s16 + $0x1c] sm:$0xf]  ;;  %v434_v46 = vor.u32 %v432_v29, %v431_v28 }
  0x34   : > { %304 = vst.msk [vmem:[#allocation2 + $0x14] sm:$0x1] %vm300_vm1, %v6347_v1  ;;  %310 = vst.msk [vmem:[#allocation2 + $0x2c] sm:$0x1] %vm300_vm1, %v6347_v1  ;;  %v718_v33 = vld [vmem:[#allocation2 + $0x18] sm:$0xf] }
  0x35   : > { %313 = vst.msk [vmem:[#allocation2 + $0x38] sm:$0x1] %vm300_vm1, %v6347_v1  ;;  %316 = vst.msk [vmem:[#allocation2 + $0x44] sm:$0x1] %vm300_vm1, %v6347_v1  ;;  %v727_v37 = vld [vmem:[#allocation2 + $0x24] sm:$0xf] }
  0x36   : > { %319 = vst.msk [vmem:[#allocation2 + $0x50] sm:$0x1] %vm300_vm1, %v6347_v1  ;;  %322 = vst.msk [vmem:[#allocation2 + $0x5c] sm:$0x1] %vm300_vm1, %v6347_v1  ;;  %v418_v41 = vrot.slane %v414_v25, 4  ;;  %v427_v42 = vrot.slane %v422_v26, 4 }
  0x37   : > { %325 = vst.msk [vmem:[#allocation2 + $0x68] sm:$0x1] %vm300_vm1, %v6347_v1  ;;  %328 = vst.msk [vmem:[#allocation2 + $0x74] sm:$0x1] %vm300_vm1, %v6347_v1  ;;  %v734_v44 = vld [vmem:[#allocation2 + $0x30] sm:$0xf] }
  0x38   : > { %331 = vst.msk [vmem:[#allocation2 + $0x80] sm:$0x1] %vm300_vm1, %v6347_v1  ;;  %334 = vst.msk [vmem:[#allocation2 + $0x8c] sm:$0x1] %vm300_vm1, %v6347_v1  ;;  %v435_v47 = vrot.slane %v431_v28, 4  ;;  %v439_v48 = vrot.slane %v437_v30, 7 }
  0x39   : > { %337 = vst.msk [vmem:[#allocation2 + $0x98] sm:$0x1] %vm300_vm1, %v6347_v1  ;;  %340 = vst.msk [vmem:[#allocation2 + $0xa4] sm:$0x1] %vm300_vm1, %v6347_v1  ;;  %v446_v52 = vshrl.u32 %v365_v27, 16  ;;  %v449_v53 = vshll.u32 %v365_v27, 16 }
  0x3a   : > { %343 = vst.msk [vmem:[#allocation2 + $0xb0] sm:$0x1] %vm300_vm1, %v6347_v1  ;;  %346 = vst.msk [vmem:[#allocation2 + $0xbc] sm:$0x1] %vm300_vm1, %v6347_v1  ;;  %v724_v35 = vld [vmem:[#allocation2 + $0x20] sm:$0x1]  ;;  %v442_v56 = vor.u32 %v440_v31, %v439_v48 }
  0x3b   : > { %349 = vst.msk [vmem:[#allocation2 + $0xc8] sm:$0x1] %vm300_vm1, %v6347_v1  ;;  %352 = vst.msk [vmem:[#allocation2 + $0xd4] sm:$0x1] %vm300_vm1, %v6347_v1  ;;  %v731_v43 = vld [vmem:[#allocation2 + $0x2c] sm:$0x1] }
  0x3c   : > { %355 = vst.msk [vmem:[#allocation2 + $0xe0] sm:$0x1] %vm300_vm1, %v6347_v1  ;;  %358 = vst.msk [vmem:[#allocation2 + $0xec] sm:$0x1] %vm300_vm1, %v6347_v1  ;;  %v738_v51 = vld [vmem:[#allocation2 + $0x38] sm:$0x1] }
  0x3d   : > { %vm6555_vm5 = vmand %vm297_vm0, %vm716_vm2  ;;  %v367_v54 = vld [vmem:[%s6482_s16 + $0x20] sm:$0xf]  ;;  %v444_v57 = vrot.slane %v439_v48, 4  ;;  %v454_v58 = vshrl.u32 %v366_v32, 16  ;;  %v368_v59 = vld [vmem:[%s6482_s16 + $0x24] sm:$0xf] }
  0x3e   : > { %vm6561_vm6 = vmor %vm391_vm3, %vm392_vm4  ;;  %v719_v39 = vsel %vm6555_vm5, %v400_v16, %v718_v33  ;;  %v728_v45 = vsel %vm6555_vm5, %v417_v36, %v727_v37  ;;  %v735_v55 = vsel %vm6555_vm5, %v434_v46, %v734_v44  ;;  %v448_v60 = vrot.slane %v446_v52, 7  ;;  %v741_v61 = vld [vmem:[#allocation2 + $0x3c] sm:$0xf]  ;;  %v745_v4 = vld [vmem:[#allocation2 + $0x44] sm:$0x1] }
  0x3f   : > { %vm6568_vm7 = vmand %vm300_vm1, %vm391_vm3  ;;  %v409_v34 = vsel %vm6561_vm6, %v401_v18, %v408_v22  ;;  %720 = vst [vmem:[#allocation2 + $0x18] sm:$0xf] %v719_v39  ;;  %v426_v49 = vsel %vm6561_vm6, %v418_v41, %v425_v38  ;;  %v457_v62 = vshll.u32 %v366_v32, 16  ;;  %v463_v63 = vshrl.u32 %v367_v54, 16  ;;  %v369_v6 = vld [vmem:[%s6482_s16 + $0x28] sm:$0xf] }
  0x40   : > { %721 = vst.msk [vmem:[#allocation2 + $0x1c] sm:$0xf] %vm297_vm0, %v409_v34  ;;  %v725_v40 = vsel %vm6568_vm7, %v410_v23, %v724_v35  ;;  %729 = vst [vmem:[#allocation2 + $0x24] sm:$0xf] %v728_v45  ;;  %v732_v50 = vsel %vm6568_vm7, %v427_v42, %v731_v43  ;;  %v466_v0 = vshll.u32 %v367_v54, 16  ;;  %v443_v1 = vsel %vm6561_vm6, %v435_v47, %v442_v56 }
  0x41   : > { %726 = vst [vmem:[#allocation2 + $0x20] sm:$0x1] %v725_v40  ;;  %730 = vst.msk [vmem:[#allocation2 + $0x28] sm:$0xf] %vm297_vm0, %v426_v49  ;;  %v739_v2 = vsel %vm6568_vm7, %v444_v57, %v738_v51  ;;  %v456_v3 = vrot.slane %v454_v58, 7  ;;  %v471_v5 = vshrl.u32 %v368_v59, 16  ;;  %v451_v7 = vor.u32 %v449_v53, %v448_v60 }
  0x42   : > { %733 = vst [vmem:[#allocation2 + $0x2c] sm:$0x1] %v732_v50  ;;  %736 = vst [vmem:[#allocation2 + $0x30] sm:$0xf] %v735_v55  ;;  %v452_v8 = vrot.slane %v448_v60, 4  ;;  %v465_v9 = vrot.slane %v463_v63, 7 }
  0x43   : > { %737 = vst.msk [vmem:[#allocation2 + $0x34] sm:$0xf] %vm297_vm0, %v443_v1  ;;  %740 = vst [vmem:[#allocation2 + $0x38] sm:$0x1] %v739_v2  ;;  %v748_v11 = vld [vmem:[#allocation2 + $0x48] sm:$0xf]  ;;  %v459_v13 = vor.u32 %v457_v62, %v456_v3  ;;  %v742_v19 = vsel %vm6555_vm5, %v451_v7, %v741_v61 }
  0x44   : > { %v474_v12 = vshll.u32 %v368_v59, 16  ;;  %v461_v14 = vrot.slane %v456_v3, 4  ;;  %v473_v15 = vrot.slane %v471_v5, 7  ;;  %v480_v16 = vshrl.u32 %v369_v6, 16  ;;  %v370_v18 = vld [vmem:[%s6482_s16 + $0x2c] sm:$0xf] }
  0x45   : > { %v468_v20 = vor.u32 %v466_v0, %v465_v9  ;;  %v469_v21 = vrot.slane %v465_v9, 4  ;;  %v752_v22 = vld [vmem:[#allocation2 + $0x50] sm:$0x1]  ;;  %v483_v23 = vshll.u32 %v369_v6, 16  ;;  %743 = vst [vmem:[#allocation2 + $0x3c] sm:$0xf] %v742_v19  ;;  %v460_v26 = vsel %vm6561_vm6, %v452_v8, %v459_v13 }
  0x46   : > { %v371_v25 = vld [vmem:[%s6482_s16 + $0x30] sm:$0xf]  ;;  %v746_v27 = vsel %vm6568_vm7, %v461_v14, %v745_v4  ;;  %v476_v28 = vor.u32 %v474_v12, %v473_v15  ;;  %v478_v29 = vrot.slane %v473_v15, 4  ;;  %v372_v30 = vld [vmem:[%s6482_s16 + $0x34] sm:$0xf]  ;;  %v482_v32 = vrot.slane %v480_v16, 7 }
  0x47   : > { %744 = vst.msk [vmem:[#allocation2 + $0x40] sm:$0xf] %vm297_vm0, %v460_v26  ;;  %747 = vst [vmem:[#allocation2 + $0x44] sm:$0x1] %v746_v27  ;;  %v749_v31 = vsel %vm6555_vm5, %v468_v20, %v748_v11  ;;  %v488_v33 = vshrl.u32 %v370_v18, 16  ;;  %v491_v34 = vshll.u32 %v370_v18, 16 }
  0x48   : > { %v373_v35 = vld [vmem:[%s6482_s16 + $0x38] sm:$0xf]  ;;  %750 = vst [vmem:[#allocation2 + $0x48] sm:$0xf] %v749_v31  ;;  %v477_v36 = vsel %vm6561_vm6, %v469_v21, %v476_v28  ;;  %v753_v37 = vsel %vm6568_vm7, %v478_v29, %v752_v22  ;;  %v755_v38 = vld [vmem:[#allocation2 + $0x54] sm:$0xf]  ;;  %v485_v41 = vor.u32 %v483_v23, %v482_v32 }
  0x49   : > { %v497_v39 = vshrl.u32 %v371_v25, 16  ;;  %v500_v40 = vshll.u32 %v371_v25, 16  ;;  %751 = vst.msk [vmem:[#allocation2 + $0x4c] sm:$0xf] %vm297_vm0, %v477_v36  ;;  %754 = vst [vmem:[#allocation2 + $0x50] sm:$0x1] %v753_v37 }
  0x4a   : > { %v486_v42 = vrot.slane %v482_v32, 4  ;;  %v490_v43 = vrot.slane %v488_v33, 7  ;;  %v505_v44 = vshrl.u32 %v372_v30, 16  ;;  %v374_v45 = vld [vmem:[%s6482_s16 + $0x3c] sm:$0xf]  ;;  %v508_v48 = vshll.u32 %v372_v30, 16 }
  0x4b   : > { %v759_v46 = vld [vmem:[#allocation2 + $0x5c] sm:$0x1]  ;;  %v499_v47 = vrot.slane %v497_v39, 7  ;;  %v514_v49 = vshrl.u32 %v373_v35, 16  ;;  %v517_v50 = vshll.u32 %v373_v35, 16  ;;  %v756_v51 = vsel %vm6555_vm5, %v485_v41, %v755_v38 }
  0x4c   : > { %v493_v52 = vor.u32 %v491_v34, %v490_v43  ;;  %v495_v53 = vrot.slane %v490_v43, 4  ;;  %v762_v54 = vld [vmem:[#allocation2 + $0x60] sm:$0xf]  ;;  %v507_v55 = vrot.slane %v505_v44, 7  ;;  %v766_v56 = vld [vmem:[#allocation2 + $0x68] sm:$0x1] }
  0x4d   : > { %757 = vst [vmem:[#allocation2 + $0x54] sm:$0xf] %v756_v51  ;;  %v502_v57 = vor.u32 %v500_v40, %v499_v47  ;;  %v503_v58 = vrot.slane %v499_v47, 4  ;;  %v516_v59 = vrot.slane %v514_v49, 7  ;;  %v522_v60 = vshrl.u32 %v374_v45, 16 }
  0x4e   : > { %v375_v61 = vld [vmem:[%s6482_s16 + $0x40] sm:$0xf]  ;;  %v494_v62 = vsel %vm6561_vm6, %v486_v42, %v493_v52  ;;  %v760_v63 = vsel %vm6568_vm7, %v495_v53, %v759_v46  ;;  %v510_v0 = vor.u32 %v508_v48, %v507_v55  ;;  %v512_v1 = vrot.slane %v507_v55, 4  ;;  %v769_v2 = vld [vmem:[#allocation2 + $0x6c] sm:$0xf] }
  0x4f   : > { %v376_v3 = vld [vmem:[%s6482_s16 + $0x44] sm:$0xf]  ;;  %758 = vst.msk [vmem:[#allocation2 + $0x58] sm:$0xf] %vm297_vm0, %v494_v62  ;;  %761 = vst [vmem:[#allocation2 + $0x5c] sm:$0x1] %v760_v63  ;;  %v763_v4 = vsel %vm6555_vm5, %v502_v57, %v762_v54  ;;  %v519_v5 = vor.u32 %v517_v50, %v516_v59 }
  0x50   : > { %v520_v6 = vrot.slane %v516_v59, 4  ;;  %v524_v7 = vrot.slane %v522_v60, 7  ;;  %v377_v8 = vld [vmem:[%s6482_s16 + $0x48] sm:$0xf]  ;;  %764 = vst [vmem:[#allocation2 + $0x60] sm:$0xf] %v763_v4  ;;  %v511_v9 = vsel %vm6561_vm6, %v503_v58, %v510_v0  ;;  %v767_v11 = vsel %vm6568_vm7, %v512_v1, %v766_v56 }
  0x51   : > { %v525_v12 = vshll.u32 %v374_v45, 16  ;;  %v773_v13 = vld [vmem:[#allocation2 + $0x74] sm:$0x1]  ;;  %v531_v14 = vshrl.u32 %v375_v61, 16  ;;  %v378_v15 = vld [vmem:[%s6482_s16 + $0x4c] sm:$0xf]  ;;  %v770_v16 = vsel %vm6555_vm5, %v519_v5, %v769_v2 }
  0x52   : > { %765 = vst.msk [vmem:[#allocation2 + $0x64] sm:$0xf] %vm297_vm0, %v511_v9  ;;  %768 = vst [vmem:[#allocation2 + $0x68] sm:$0x1] %v767_v11  ;;  %v529_v18 = vrot.slane %v524_v7, 4  ;;  %v534_v19 = vshll.u32 %v375_v61, 16 }
  0x53   : > { %v539_v20 = vshrl.u32 %v376_v3, 16  ;;  %771 = vst [vmem:[#allocation2 + $0x6c] sm:$0xf] %v770_v16  ;;  %v527_v21 = vor.u32 %v525_v12, %v524_v7  ;;  %v533_v22 = vrot.slane %v531_v14, 7  ;;  %v776_v23 = vld [vmem:[#allocation2 + $0x78] sm:$0xf] }
  0x54   : > { %v542_v25 = vshll.u32 %v376_v3, 16  ;;  %v548_v26 = vshrl.u32 %v377_v8, 16  ;;  %v774_v27 = vsel %vm6568_vm7, %v529_v18, %v773_v13  ;;  %v551_v29 = vshll.u32 %v377_v8, 16  ;;  %v379_v31 = vld [vmem:[%s6482_s16 + $0x50] sm:$0xf] }
  0x55   : > { %v541_v28 = vrot.slane %v539_v20, 7  ;;  %v556_v30 = vshrl.u32 %v378_v15, 16  ;;  %v528_v32 = vsel %vm6561_vm6, %v520_v6, %v527_v21  ;;  %775 = vst [vmem:[#allocation2 + $0x74] sm:$0x1] %v774_v27  ;;  %v536_v33 = vor.u32 %v534_v19, %v533_v22  ;;  %v780_v35 = vld [vmem:[#allocation2 + $0x80] sm:$0x1] }
  0x56   : > { %v537_v34 = vrot.slane %v533_v22, 4  ;;  %v550_v36 = vrot.slane %v548_v26, 7  ;;  %v783_v37 = vld [vmem:[#allocation2 + $0x84] sm:$0xf]  ;;  %772 = vst.msk [vmem:[#allocation2 + $0x70] sm:$0xf] %vm297_vm0, %v528_v32 }
  0x57   : > { %v544_v38 = vor.u32 %v542_v25, %v541_v28  ;;  %v546_v39 = vrot.slane %v541_v28, 4  ;;  %v558_v40 = vrot.slane %v556_v30, 7  ;;  %v559_v41 = vshll.u32 %v378_v15, 16  ;;  %v380_v42 = vld [vmem:[%s6482_s16 + $0x54] sm:$0xf] }
  0x58   : > { %v777_v43 = vsel %vm6555_vm5, %v536_v33, %v776_v23  ;;  %v553_v44 = vor.u32 %v551_v29, %v550_v36  ;;  %v554_v45 = vrot.slane %v550_v36, 4  ;;  %v787_v46 = vld [vmem:[#allocation2 + $0x8c] sm:$0x1]  ;;  %v565_v47 = vshrl.u32 %v379_v31, 16  ;;  %v381_v48 = vld [vmem:[%s6482_s16 + $0x58] sm:$0xf] }
  0x59   : > { %778 = vst [vmem:[#allocation2 + $0x78] sm:$0xf] %v777_v43  ;;  %v545_v49 = vsel %vm6561_vm6, %v537_v34, %v544_v38  ;;  %v781_v50 = vsel %vm6568_vm7, %v546_v39, %v780_v35  ;;  %v561_v51 = vor.u32 %v559_v41, %v558_v40  ;;  %v563_v52 = vrot.slane %v558_v40, 4  ;;  %v382_v53 = vld [vmem:[%s6482_s16 + $0x5c] sm:$0xf] }
  0x5a   : > { %779 = vst.msk [vmem:[#allocation2 + $0x7c] sm:$0xf] %vm297_vm0, %v545_v49  ;;  %782 = vst [vmem:[#allocation2 + $0x80] sm:$0x1] %v781_v50  ;;  %v784_v54 = vsel %vm6555_vm5, %v553_v44, %v783_v37  ;;  %v567_v55 = vrot.slane %v565_v47, 7  ;;  %v568_v56 = vshll.u32 %v379_v31, 16 }
  0x5b   : > { %v573_v57 = vshrl.u32 %v380_v42, 16  ;;  %v383_v58 = vld [vmem:[%s6482_s16 + $0x60] sm:$0xf]  ;;  %785 = vst [vmem:[#allocation2 + $0x84] sm:$0xf] %v784_v54  ;;  %v562_v59 = vsel %vm6561_vm6, %v554_v45, %v561_v51  ;;  %v788_v60 = vsel %vm6568_vm7, %v563_v52, %v787_v46  ;;  %v576_v62 = vshll.u32 %v380_v42, 16 }
  0x5c   : > { %v790_v61 = vld [vmem:[#allocation2 + $0x90] sm:$0xf]  ;;  %v582_v63 = vshrl.u32 %v381_v48, 16  ;;  %786 = vst.msk [vmem:[#allocation2 + $0x88] sm:$0xf] %vm297_vm0, %v562_v59  ;;  %v570_v0 = vor.u32 %v568_v56, %v567_v55  ;;  %v571_v1 = vrot.slane %v567_v55, 4 }
  0x5d   : > { %789 = vst [vmem:[#allocation2 + $0x8c] sm:$0x1] %v788_v60  ;;  %v575_v2 = vrot.slane %v573_v57, 7  ;;  %v794_v3 = vld [vmem:[#allocation2 + $0x98] sm:$0x1]  ;;  %v585_v4 = vshll.u32 %v381_v48, 16 }
  0x5e   : > { %v584_v5 = vrot.slane %v582_v63, 7  ;;  %v590_v6 = vshrl.u32 %v382_v53, 16  ;;  %v593_v7 = vshll.u32 %v382_v53, 16  ;;  %v599_v8 = vshrl.u32 %v383_v58, 16  ;;  %v384_v9 = vld [vmem:[%s6482_s16 + $0x64] sm:$0xf] }
  0x5f   : > { %v791_v11 = vsel %vm6555_vm5, %v570_v0, %v790_v61  ;;  %v578_v12 = vor.u32 %v576_v62, %v575_v2  ;;  %v580_v13 = vrot.slane %v575_v2, 4  ;;  %v797_v14 = vld [vmem:[#allocation2 + $0x9c] sm:$0xf]  ;;  %v801_v15 = vld [vmem:[#allocation2 + $0xa4] sm:$0x1]  ;;  %v602_v16 = vshll.u32 %v383_v58, 16 }
  0x60   : > { %792 = vst [vmem:[#allocation2 + $0x90] sm:$0xf] %v791_v11  ;;  %v587_v18 = vor.u32 %v585_v4, %v584_v5  ;;  %v588_v19 = vrot.slane %v584_v5, 4  ;;  %v592_v20 = vrot.slane %v590_v6, 7  ;;  %v601_v21 = vrot.slane %v599_v8, 7 }
  0x61   : > { %v385_v22 = vld [vmem:[%s6482_s16 + $0x68] sm:$0xf]  ;;  %v579_v23 = vsel %vm6561_vm6, %v571_v1, %v578_v12  ;;  %v795_v25 = vsel %vm6568_vm7, %v580_v13, %v794_v3  ;;  %v607_v27 = vshrl.u32 %v384_v9, 16  ;;  %v610_v28 = vshll.u32 %v384_v9, 16  ;;  %v386_v29 = vld [vmem:[%s6482_s16 + $0x6c] sm:$0xf] }
  0x62   : > { %v804_v26 = vld [vmem:[#allocation2 + $0xa8] sm:$0xf]  ;;  %793 = vst.msk [vmem:[#allocation2 + $0x94] sm:$0xf] %vm297_vm0, %v579_v23  ;;  %796 = vst [vmem:[#allocation2 + $0x98] sm:$0x1] %v795_v25  ;;  %v798_v30 = vsel %vm6555_vm5, %v587_v18, %v797_v14  ;;  %v595_v31 = vor.u32 %v593_v7, %v592_v20  ;;  %v604_v33 = vor.u32 %v602_v16, %v601_v21 }
  0x63   : > { %v597_v32 = vrot.slane %v592_v20, 4  ;;  %v387_v34 = vld [vmem:[%s6482_s16 + $0x70] sm:$0xf]  ;;  %799 = vst [vmem:[#allocation2 + $0x9c] sm:$0xf] %v798_v30  ;;  %v605_v35 = vrot.slane %v601_v21, 4 }
  0x64   : > { %v609_v36 = vrot.slane %v607_v27, 7  ;;  %v616_v37 = vshrl.u32 %v385_v22, 16  ;;  %v619_v38 = vshll.u32 %v385_v22, 16  ;;  %v388_v39 = vld [vmem:[%s6482_s16 + $0x74] sm:$0xf]  ;;  %v596_v40 = vsel %vm6561_vm6, %v588_v19, %v595_v31 }
  0x65   : > { %v802_v41 = vsel %vm6568_vm7, %v597_v32, %v801_v15  ;;  %v805_v42 = vsel %vm6555_vm5, %v604_v33, %v804_v26  ;;  %v808_v43 = vld [vmem:[#allocation2 + $0xb0] sm:$0x1]  ;;  %v624_v44 = vshrl.u32 %v386_v29, 16  ;;  %800 = vst.msk [vmem:[#allocation2 + $0xa0] sm:$0xf] %vm297_vm0, %v596_v40  ;;  %v627_v49 = vshll.u32 %v386_v29, 16 }
  0x66   : > { %803 = vst [vmem:[#allocation2 + $0xa4] sm:$0x1] %v802_v41  ;;  %806 = vst [vmem:[#allocation2 + $0xa8] sm:$0xf] %v805_v42  ;;  %v612_v45 = vor.u32 %v610_v28, %v609_v36  ;;  %v614_v46 = vrot.slane %v609_v36, 4  ;;  %v618_v47 = vrot.slane %v616_v37, 7 }
  0x67   : > { %v811_v48 = vld [vmem:[#allocation2 + $0xb4] sm:$0xf]  ;;  %v626_v50 = vrot.slane %v624_v44, 7  ;;  %v633_v51 = vshrl.u32 %v387_v34, 16  ;;  %v636_v52 = vshll.u32 %v387_v34, 16  ;;  %v641_v53 = vshrl.u32 %v388_v39, 16 }
  0x68   : > { %v389_v54 = vld [vmem:[%s6482_s16 + $0x78] sm:$0xf]  ;;  %v613_v55 = vsel %vm6561_vm6, %v605_v35, %v612_v45  ;;  %v809_v56 = vsel %vm6568_vm7, %v614_v46, %v808_v43  ;;  %v621_v57 = vor.u32 %v619_v38, %v618_v47  ;;  %v622_v58 = vrot.slane %v618_v47, 4  ;;  %v815_v59 = vld [vmem:[#allocation2 + $0xbc] sm:$0x1] }
  0x69   : > { %807 = vst.msk [vmem:[#allocation2 + $0xac] sm:$0xf] %vm297_vm0, %v613_v55  ;;  %810 = vst [vmem:[#allocation2 + $0xb0] sm:$0x1] %v809_v56  ;;  %v629_v60 = vor.u32 %v627_v49, %v626_v50  ;;  %v631_v61 = vrot.slane %v626_v50, 4  ;;  %v635_v62 = vrot.slane %v633_v51, 7 }
  0x6a   : > { %v643_v63 = vrot.slane %v641_v53, 7  ;;  %v390_v0 = vld [vmem:[%s6482_s16 + $0x7c] sm:$0xf]  ;;  %v812_v1 = vsel %vm6555_vm5, %v621_v57, %v811_v48  ;;  %v818_v2 = vld [vmem:[#allocation2 + $0xc0] sm:$0xf]  ;;  %v644_v3 = vshll.u32 %v388_v39, 16 }
  0x6b   : > { %v650_v4 = vshrl.u32 %v389_v54, 16  ;;  %v653_v5 = vshll.u32 %v389_v54, 16  ;;  %813 = vst [vmem:[#allocation2 + $0xb4] sm:$0xf] %v812_v1  ;;  %v630_v6 = vsel %vm6561_vm6, %v622_v58, %v629_v60  ;;  %v816_v7 = vsel %vm6568_vm7, %v631_v61, %v815_v59  ;;  %v822_v11 = vld [vmem:[#allocation2 + $0xc8] sm:$0x1] }
  0x6c   : > { %v638_v8 = vor.u32 %v636_v52, %v635_v62  ;;  %v639_v9 = vrot.slane %v635_v62, 4  ;;  %814 = vst.msk [vmem:[#allocation2 + $0xb8] sm:$0xf] %vm297_vm0, %v630_v6  ;;  %817 = vst [vmem:[#allocation2 + $0xbc] sm:$0x1] %v816_v7  ;;  %v646_v12 = vor.u32 %v644_v3, %v643_v63  ;;  %v648_v13 = vrot.slane %v643_v63, 4 }
  0x6d   : > { %v652_v14 = vrot.slane %v650_v4, 7  ;;  %v658_v15 = vshrl.u32 %v390_v0, 16  ;;  %v825_v18 = vld [vmem:[#allocation2 + $0xcc] sm:$0xf]  ;;  %v661_v19 = vshll.u32 %v390_v0, 16 }
  0x6e   : > { %v819_v16 = vsel %vm6555_vm5, %v638_v8, %v818_v2  ;;  %v647_v20 = vsel %vm6561_vm6, %v639_v9, %v646_v12  ;;  %v823_v21 = vsel %vm6568_vm7, %v648_v13, %v822_v11  ;;  %v829_v27 = vld [vmem:[#allocation2 + $0xd4] sm:$0x1] }
  0x6f   : > { %820 = vst [vmem:[#allocation2 + $0xc0] sm:$0xf] %v819_v16  ;;  %v655_v22 = vor.u32 %v653_v5, %v652_v14  ;;  %821 = vst.msk [vmem:[#allocation2 + $0xc4] sm:$0xf] %vm297_vm0, %v647_v20  ;;  %v656_v23 = vrot.slane %v652_v14, 4  ;;  %v660_v25 = vrot.slane %v658_v15, 7 }
  0x70   : > { %824 = vst [vmem:[#allocation2 + $0xc8] sm:$0x1] %v823_v21 }
  0x71   : > { %v826_v26 = vsel %vm6555_vm5, %v655_v22, %v825_v18  ;;  %v663_v28 = vor.u32 %v661_v19, %v660_v25  ;;  %v665_v29 = vrot.slane %v660_v25, 4 }
  0x72   : > { %827 = vst [vmem:[#allocation2 + $0xcc] sm:$0xf] %v826_v26 }
  0x73   : > { %v664_v30 = vsel %vm6561_vm6, %v656_v23, %v663_v28  ;;  %v830_v31 = vsel %vm6568_vm7, %v665_v29, %v829_v27 }
  0x74   : > { %828 = vst.msk [vmem:[#allocation2 + $0xd0] sm:$0xf] %vm297_vm0, %v664_v30  ;;  %831 = vst [vmem:[#allocation2 + $0xd4] sm:$0x1] %v830_v31 }
  0x75 PF: > { %s5415_s18 = smul.u32 96, %s6329_s27  ;;  %vm1214_vm8 = vcmask 1046528   ;;  %vm1043_vm9 = vsmask.f32 7424  ;;  %s6348_s9 = smov 24   ;;  %v6087_v27 = vld [vmem:[%s8577_s1] sm:$0xff]  }
  0x76   : > { %s6349_s10 = smov 16   ;;  %s6350_s13 = smov 8   ;;  %5700 = vmatprep.subr.bf16.mxu1 %v6087_v27  ;;  %vm2137_vm10 = vcmask 1043456   ;;  %vm1905_vm11 = vcmask 64512   ;;  %vm1926_vm12 = vcmask 130048   ;;  %vm1947_vm13 = vcmask 195584  }
  0x77   : > { %s6711_s23 = scalar_lea.vmem [#allocation2], %s5415_s18  ;;  %s8589_s16 = smov 32   ;;  %5701 = vmatpush3.bf16.msra.mxu1 %v6087_v27  ;;  %vm1968_vm14 = vcmask 261120   ;;  %vm1989_vm15 = vcmask 326656   ;;  %vm2010_vm0 = vcmask 392192   ;;  %vm2052_vm1 = vcmask 523264  }
  0x78   : > { %s8587_s18 = smov 40   ;;  %s6353_s22 = smov 48   ;;  %vm2031_vm2 = vcmask 457728   ;;  %vm2116_vm3 = vcmask 588800  }
  0x79   : > { %s6354_s20 = smov 56   ;;  %s6355_s17 = smov 64  }
  0x7b   : > { %v4960_v10 = vld [vmem:[%s6711_s23 + $0x18] sm:$0xf]  ;;  %v6715_v17 = vld [vmem:[%s6711_s23 + $0x1c] sm:$0xf]  ;;  %v4958_v32 = vld [vmem:[%s6711_s23 + $0xc] sm:$0xf] }
  0x7c   : > { %v5071_v24 = vcombine.low %v4960_v10, %v6715_v17  ;;  %v6720_v33 = vld [vmem:[%s6711_s23 + $0x10] sm:$0xf]  ;;  %v836_v35 = vld [vmem:[%s6711_s23 + $0x4] sm:$0xf]  ;;  %v865_v36 = vld [vmem:[%s6711_s23] sm:$0xe] }
  0x7d   : > { %v5070_v34 = vcombine.low %v4958_v32, %v6720_v33  ;;  %v4989_v37 = vld [vmem:[%s6711_s23 + $0x18] sm:$0xe]  ;;  %v6015_v39 = vld [vmem:[%s6711_s23 + $0x8] ss:$0 sps:$4 sm:$0x11]   ;;  %v5060_v40 = vcombine.low %v865_v36, %v836_v35 }
  0x7e   : > { %1317 = vrot.lane.b32.xlu1 %v5071_v24, %s6348_s9  ;;  %v1380_v38 = vshll.u32 %v5071_v24, 16  ;;  %v835_v41 = vld [vmem:[%s6711_s23] sm:$0xf]  ;;  %v837_v44 = vld [vmem:[%s6711_s23 + $0xc] sm:$0xf]  ;;  %v1378_v46 = vshrl.u32 %v5071_v24, 16  ;;  %v5091_v60 = vcombine.low %v4989_v37, %v6715_v17 }
  0x7f   : > { %1315 = vrot.lane.b32.xlu0 %v5070_v34, %s6348_s9  ;;  %v1368_v42 = vshll.u32 %v5070_v34, 16  ;;  %v6730_v43 = vcombine.low %v835_v41, %v836_v35  ;;  %v838_v45 = vld [vmem:[%s6711_s23 + $0x10] sm:$0xf]  ;;  %v1215_v47 = vrot.slane %v5060_v40, 1  ;;  %v1216_v48 = vrot.slane %v6015_v39, 1  ;;  %v6089_v17 = vld [vmem:[%s8577_s1 + $0x8] sm:$0xff]  }
  0x80   : > { %v1052_v49 = vshll.u32 %v6015_v39, 16  ;;  %v6734_v50 = vcombine.low %v837_v44, %v838_v45  ;;  %v4988_v51 = vld [vmem:[%s6711_s23 + $0xc] sm:$0xe]  ;;  %v6019_v57 = vld [vmem:[%s6711_s23 + $0x14] ss:$0 sps:$4 sm:$0x11]   ;;  %5702 = vmatprep.subr.bf16.mxu1 %v6089_v17 }
  0x81   : > { %v1045_v52 = vshrl.u32 %v6730_v43, 16  ;;  %v1047_v53 = vshll.u32 %v6730_v43, 16  ;;  %v866_v54 = vld [vmem:[%s6711_s23 + $0xc] sm:$0xe]  ;;  %v1217_v55 = vsel %vm1214_vm8, %v1215_v47, %v1216_v48  ;;  %v1382_v0 = vrot.slane %v1380_v38, 1  ;;  %v6093_v41 = vld [vmem:[%s8577_s1 + $0x10] sm:$0xff]   ;;  %5703 = vmatpush3.bf16.msra.mxu1 %v6089_v17 }
  0x82   : > { %v1054_v56 = vrot.slane %v1052_v49, 1  ;;  %v5061_v58 = vcombine.low %v866_v54, %v838_v45  ;;  %v1057_v59 = vshrl.u32 %v6734_v50, 16  ;;  %1245 = vrot.lane.b32.xlu1 %v1217_v55, %s6349_s10  ;;  %v1059_v62 = vshll.u32 %v6734_v50, 16  ;;  %v6021_v63 = vld [vmem:[%s6711_s23 + $0x20] ss:$0 sps:$4 sm:$0x11]   ;;  %5704 = vmatprep.subr.bf16.mxu1 %v6093_v41 }
  0x83   : > { %v1049_v61 = vrot.slane %v1047_v53, 1  ;;  %v1219_v2 = vrot.slane %v6019_v57, 1  ;;  %v1064_v3 = vshll.u32 %v6019_v57, 16  ;;  %v1366_v4 = vshrl.u32 %v5070_v34, 16  ;;  %v5002_v15 = vld [vmem:[%s6711_s23 + $0x24] sm:$0xf] }
  0x84   : > { %v1218_v1 = vrot.slane %v5061_v58, 1  ;;  %v1061_v6 = vrot.slane %v1059_v62, 1  ;;  %v1383_v7 = vor.u32 %v1382_v0, %v1378_v46  ;;  %v1385_v8 = vshll.u32 %v6021_v63, 16  ;;  %v6022_v9 = vld [vmem:[%s6711_s23 + $0x14] ss:$0 sps:$4 sm:$0x11]  }
  0x85   : > { %v1050_v5 = vor.u32 %v1049_v61, %v1045_v52  ;;  %v5090_v11 = vcombine.low %v4988_v51, %v6720_v33  ;;  %v1066_v13 = vrot.slane %v1064_v3, 1  ;;  %v1370_v14 = vrot.slane %v1368_v42, 1  ;;  %v6754_v21 = vld [vmem:[%s6711_s23 + $0x28] sm:$0xf]  ;;  %v5000_v26 = vld [vmem:[%s6711_s23 + $0x18] sm:$0xf]  ;;  %5705 = vmatpush3.bf16.msra.mxu1 %v6093_v41 }
  0x86   : > { %v1220_v12 = vsel %vm1214_vm8, %v1218_v1, %v1219_v2  ;;  %v1062_v18 = vor.u32 %v1061_v6, %v1057_v59  ;;  %v1387_v19 = vrot.slane %v1385_v8, 1  ;;  %v1373_v20 = vshll.u32 %v6022_v9, 16  ;;  %v6765_v10 = vld [vmem:[%s6711_s23 + $0x1c] sm:$0xf]  ;;  %v839_v36 = vld [vmem:[%s6711_s23 + $0x18] sm:$0xf] }
  0x87   : > { %v1055_v16 = vsel %vm1043_vm9, %v1050_v5, %v1054_v56  ;;  %1247 = vrot.lane.b32.xlu1 %v1220_v12, %s6349_s10  ;;  %v1371_v22 = vor.u32 %v1370_v14, %v1366_v4  ;;  %v1538_v23 = vrot.slane %v5091_v60, 1  ;;  %v1539_v25 = vrot.slane %v6021_v63, 1  ;;  %v6774_v33 = vld [vmem:[%s6711_s23 + $0x2c] ss:$0 sps:$4 sm:$0x11]   ;;  %v6097_v58 = vld [vmem:[%s8577_s1 + $0x18] sm:$0xff]  }
  0x88   : > { %1164 = vrot.lane.b32.xlu0 %v1055_v16, %s6350_s13  ;;  %v1067_v28 = vsel %vm1043_vm9, %v1062_v18, %v1066_v13  ;;  %v1388_v29 = vsel %vm1043_vm9, %v1383_v7, %v1387_v19  ;;  %v1375_v30 = vrot.slane %v1373_v20, 1  ;;  %v5101_v31 = vcombine.low %v5002_v15, %v6754_v21  ;;  %v6782_v40 = vld [vmem:[%s6711_s23 + $0x20] ss:$0 sps:$4 sm:$0x11]   ;;  %v6790_v46 = vld [vmem:[%s6711_s23 + $0x1c] sm:$0xf]  ;;  %5706 = vmatprep.subr.bf16.mxu1 %v6097_v58 }
  0x89   : > { %v1535_v24 = vrot.slane %v5090_v11, 1  ;;  %v6771_v32 = vcombine.low %v5000_v26, %v6765_v10  ;;  %v1540_v37 = vsel %vm1214_vm8, %v1538_v23, %v1539_v25  ;;  %v1536_v38 = vrot.slane %v6022_v9, 1  ;;  %v6796_v48 = vld [vmem:[%s6711_s23 + $0x20] ss:$0 sps:$4 sm:$0x11]   ;;  %5707 = vmatpush3.bf16.msra.mxu1 %v6097_v58 }
  0x8a   : > { %v1700_v34 = vshll.u32 %v5101_v31, 16  ;;  %v1698_v35 = vshrl.u32 %v5101_v31, 16  ;;  %v1705_v39 = vshll.u32 %v6774_v33, 16  ;;  %v1376_v42 = vsel %vm1043_vm9, %v1371_v22, %v1375_v30  ;;  %v841_v52 = vld [vmem:[%s6711_s23 + $0x24] sm:$0xf] }
  0x8b   : > { %1487 = vrot.lane.b32.xlu1 %v1388_v29, %s8589_s16  ;;  %v1688_v44 = vshll.u32 %v6771_v32, 16  ;;  %v6793_v47 = vcombine.low %v839_v36, %v6790_v46  ;;  %v842_v53 = vld [vmem:[%s6711_s23 + $0x28] sm:$0xf]  ;;  %v1537_v54 = vsel %vm1214_vm8, %v1535_v24, %v1536_v38  ;;  %v1686_v55 = vshrl.u32 %v6771_v32, 16  ;;  %v5031_v0 = vld [vmem:[%s6711_s23 + $0x24] sm:$0xe] }
  0x8c   : > { %1166 = vrot.lane.b32.xlu0 %v1067_v28, %s6350_s13  ;;  %v1702_v45 = vrot.slane %v1700_v34, 1  ;;  %v1707_v51 = vrot.slane %v1705_v39, 1  ;;  %v1693_v60 = vshll.u32 %v6782_v40, 16  ;;  %v1076_v61 = vshll.u32 %v6796_v48, 16  ;;  %v5030_v1 = vld [vmem:[%s6711_s23 + $0x18] sm:$0xe] }
  0x8d   : > { %8606 = vst [vmem:[#allocation7_spill] sm:$0xff] %v6793_v47  ;;  %v1069_v56 = vshrl.u32 %v6793_v47, 16  ;;  %v1071_v57 = vshll.u32 %v6793_v47, 16  ;;  %v1690_v59 = vrot.slane %v1688_v44, 1  ;;  %v6811_v62 = vcombine.low %v841_v52, %v842_v53  ;;  %v868_v5 = vld [vmem:[%s6711_s23 + $0x24] sm:$0xe] }
  0x8e   : > { %v1703_v49 = vor.u32 %v1702_v45, %v1698_v35  ;;  %v6814_v63 = vld [vmem:[%s6711_s23 + $0x2c] ss:$0 sps:$4 sm:$0x11]   ;;  %v4964_v6 = vld [vmem:[%s6711_s23 + $0x30] sm:$0xf]  ;;  %v1078_v8 = vrot.slane %v1076_v61, 1  ;;  %v5120_v13 = vcombine.low %v5030_v1, %v6765_v10  ;;  %v5121_v18 = vcombine.low %v5031_v0, %v6754_v21 }
  0x8f   : > { %1567 = vrot.lane.b32.xlu1 %v1540_v37, %s8587_s18  ;;  %8607 = vst [vmem:[#allocation8_spill] sm:$0xff] %v6811_v62  ;;  %v1073_v2 = vrot.slane %v1071_v57, 1  ;;  %v1083_v4 = vshll.u32 %v6811_v62, 16  ;;  %v1081_v9 = vshrl.u32 %v6811_v62, 16  ;;  %v1088_v11 = vshll.u32 %v6814_v63, 16 }
  0x90   : > { %1485 = vrot.lane.b32.xlu0 %v1376_v42, %s8589_s16  ;;  %v1708_v3 = vsel %vm1043_vm9, %v1703_v49, %v1707_v51  ;;  %v4965_v12 = vld [vmem:[%s6711_s23 + $0x34] sm:$0xf]  ;;  %v1691_v14 = vor.u32 %v1690_v59, %v1686_v55  ;;  %v1695_v15 = vrot.slane %v1693_v60, 1  ;;  %v5063_v19 = vcombine.low %v868_v5, %v842_v53  ;;  %v867_v20 = vld [vmem:[%s6711_s23 + $0x18] sm:$0xe] }
  0x91   : > { %v1074_v7 = vor.u32 %v1073_v2, %v1069_v56  ;;  %v1085_v16 = vrot.slane %v1083_v4, 1  ;;  %v4991_v22 = vld [vmem:[%s6711_s23 + $0x30] sm:$0xe]  ;;  %v6832_v23 = vcombine.low %v4964_v6, %v4965_v12  ;;  %v1090_v27 = vrot.slane %v1088_v11, 1  ;;  %v4962_v28 = vld [vmem:[%s6711_s23 + $0x24] sm:$0xf] }
  0x92   : > { %v4963_v21 = vld [vmem:[%s6711_s23 + $0x28] sm:$0xf]  ;;  %v1696_v29 = vsel %vm1043_vm9, %v1691_v14, %v1695_v15  ;;  %v1855_v30 = vrot.slane %v5120_v13, 1  ;;  %v1858_v10 = vrot.slane %v5121_v18, 1  ;;  %v1859_v17 = vrot.slane %v6774_v33, 1 }
  0x93   : > { %1637 = vrot.lane.b32.xlu1 %v5101_v31, %s6353_s22  ;;  %v1079_v25 = vsel %vm1043_vm9, %v1074_v7, %v1078_v8  ;;  %v1086_v26 = vor.u32 %v1085_v16, %v1081_v9  ;;  %v1856_v31 = vrot.slane %v6782_v40, 1  ;;  %v1224_v24 = vrot.slane %v5063_v19, 1  ;;  %v6844_v34 = vld [vmem:[%s6711_s23 + $0x38] ss:$0 sps:$4 sm:$0x11]  }
  0x94   : > { %1565 = vrot.lane.b32.xlu0 %v1537_v54, %s8587_s18  ;;  %v1225_v35 = vrot.slane %v6814_v63, 1  ;;  %v1404_v36 = vshll.u32 %v6832_v23, 16  ;;  %v5093_v37 = vcombine.low %v4991_v22, %v4965_v12  ;;  %v6849_v38 = vcombine.low %v4962_v28, %v4963_v21  ;;  %v5006_v39 = vld [vmem:[%s6711_s23 + $0x3c] sm:$0xf]  ;;  %v6853_v40 = vld [vmem:[%s6711_s23 + $0x40] sm:$0xf] }
  0x95   : > { %v1091_v33 = vsel %vm1043_vm9, %v1086_v26, %v1090_v27  ;;  %v1222_v41 = vrot.slane %v6796_v48, 1  ;;  %v4990_v42 = vld [vmem:[%s6711_s23 + $0x24] sm:$0xe]  ;;  %v6860_v44 = vld [vmem:[%s6711_s23 + $0x2c] ss:$0 sps:$4 sm:$0x11]   ;;  %v1857_v45 = vsel %vm1214_vm8, %v1855_v30, %v1856_v31  ;;  %v6868_v54 = vcombine.low %v5006_v39, %v6853_v40 }
  0x96   : > { %v5005_v49 = vld [vmem:[%s6711_s23 + $0x34] sm:$0xf]  ;;  %v1402_v52 = vshrl.u32 %v6832_v23, 16  ;;  %v1409_v53 = vshll.u32 %v6844_v34, 16  ;;  %v1392_v48 = vshll.u32 %v6849_v38, 16  ;;  %v1406_v56 = vrot.slane %v1404_v36, 1 }
  0x97   : > { %1807 = vrot.lane.b32.xlu1 %v1708_v3, %s6354_s20  ;;  %v6871_v55 = vld [vmem:[%s6711_s23 + $0x44] ss:$0 sps:$4 sm:$0x11]   ;;  %v1390_v57 = vshrl.u32 %v6849_v38, 16  ;;  %v6876_v58 = vrot.slane %v5093_v37, 1  ;;  %v1226_v59 = vsel %vm1214_vm8, %v1224_v24, %v1225_v35  ;;  %v1860_v0 = vsel %vm1214_vm8, %v1858_v10, %v1859_v17 }
  0x98   : > { %1635 = vrot.lane.b32.xlu0 %v6771_v32, %s6353_s22  ;;  %v5062_v32 = vcombine.low %v867_v20, %v6790_v46  ;;  %v5004_v46 = vld [vmem:[%s6711_s23 + $0x30] sm:$0xf]  ;;  %v6884_v63 = vld [vmem:[%s6711_s23 + $0x34] sm:$0xf]  ;;  %v5092_v1 = vcombine.low %v4990_v42, %v4963_v21  ;;  %v1397_v2 = vshll.u32 %v6860_v44, 16  ;;  %v1411_v5 = vrot.slane %v1409_v53, 1 }
  0x99   : > { %v6880_v60 = vcombine.low %v5004_v46, %v5005_v49  ;;  %v843_v61 = vld [vmem:[%s6711_s23 + $0x30] sm:$0xf]  ;;  %v6890_v4 = vld [vmem:[%s6711_s23 + $0x38] ss:$0 sps:$4 sm:$0x11]   ;;  %v1545_v6 = vrot.slane %v6844_v34, 1  ;;  %v1407_v14 = vor.u32 %v1406_v56, %v1402_v52 }
  0x9a   : > { %v1221_v51 = vrot.slane %v5062_v32, 1  ;;  %v5032_v3 = vld [vmem:[%s6711_s23 + $0x30] sm:$0xe]  ;;  %v5033_v7 = vld [vmem:[%s6711_s23 + $0x3c] sm:$0xe]  ;;  %v1724_v8 = vshll.u32 %v6868_v54, 16  ;;  %v6898_v11 = vcombine.low %v843_v61, %v6884_v63 }
  0x9b   : > { %1168 = vrot.lane.b32.xlu1 %v1079_v25, %s6350_s13  ;;  %v1729_v9 = vshll.u32 %v6871_v55, 16  ;;  %v845_v12 = vld [vmem:[%s6711_s23 + $0x3c] sm:$0xf]  ;;  %v6902_v13 = vld [vmem:[%s6711_s23 + $0x40] sm:$0xf]  ;;  %v1394_v15 = vrot.slane %v1392_v48, 1  ;;  %v5122_v18 = vcombine.low %v5032_v3, %v5005_v49  ;;  %v5123_v28 = vcombine.low %v5033_v7, %v6853_v40 }
  0x9c   : > { %1805 = vrot.lane.b32.xlu0 %v1696_v29, %s6354_s20  ;;  %8608 = vst [vmem:[#allocation9_spill] sm:$0xff] %v6898_v11  ;;  %v1712_v16 = vshll.u32 %v6880_v60, 16  ;;  %v1223_v19 = vsel %vm1214_vm8, %v1221_v51, %v1222_v41  ;;  %v1541_v20 = vrot.slane %v5092_v1, 1  ;;  %v1542_v22 = vrot.slane %v6860_v44, 1  ;;  %v4968_v37 = vld [vmem:[%s6711_s23 + $0x48] sm:$0xf] }
  0x9d   : > { %v1717_v25 = vshll.u32 %v6890_v4, 16  ;;  %v6910_v26 = vld [vmem:[%s6711_s23 + $0x38] ss:$0 sps:$4 sm:$0x11]   ;;  %v1399_v27 = vrot.slane %v1397_v2, 1  ;;  %v1722_v21 = vshrl.u32 %v6868_v54, 16  ;;  %v6915_v29 = vcombine.low %v845_v12, %v6902_v13 }
  0x9e   : > { %v6918_v30 = vld [vmem:[%s6711_s23 + $0x44] ss:$0 sps:$4 sm:$0x11]   ;;  %v1726_v31 = vrot.slane %v1724_v8, 1  ;;  %v6922_v10 = vrot.slane %v1729_v9, 1  ;;  %v1710_v17 = vshrl.u32 %v6880_v60, 16  ;;  %v1412_v32 = vsel %vm1043_vm9, %v1407_v14, %v1411_v5 }
  0x9f   : > { %1170 = vrot.lane.b32.xlu1 %v1091_v33, %s6350_s13  ;;  %8609 = vst [vmem:[#allocation10_spill] sm:$0xff] %v6915_v29  ;;  %v1095_v24 = vshll.u32 %v6898_v11, 16  ;;  %v1395_v34 = vor.u32 %v1394_v15, %v1390_v57  ;;  %v1714_v35 = vrot.slane %v1712_v16, 1  ;;  %v6928_v36 = vrot.slane %v5122_v18, 1  ;;  %v4969_v39 = vld [vmem:[%s6711_s23 + $0x4c] sm:$0xf] }
  0xa0   : > { %1885 = vrot.lane.b32.xlu0 %v1857_v45, %s6355_s17  ;;  %v1093_v40 = vshrl.u32 %v6898_v11, 16  ;;  %v1100_v33 = vshll.u32 %v6910_v26, 16  ;;  %v1862_v41 = vrot.slane %v6890_v4, 1  ;;  %v1107_v42 = vshll.u32 %v6915_v29, 16  ;;  %v870_v45 = vld [vmem:[%s6711_s23 + $0x3c] sm:$0xe] }
  0xa1   : > { %v1112_v44 = vshll.u32 %v6918_v30, 16  ;;  %v1097_v46 = vrot.slane %v1095_v24, 1  ;;  %v6941_v49 = vrot.slane %v5123_v28, 1  ;;  %v869_v51 = vld [vmem:[%s6711_s23 + $0x30] sm:$0xe]  ;;  %v6944_v52 = vcombine.low %v4968_v37, %v4969_v39 }
  0xa2   : > { %v1400_v53 = vsel %vm1043_vm9, %v1395_v34, %v1399_v27  ;;  %v1546_v48 = vsel %vm1214_vm8, %v6876_v58, %v1545_v6  ;;  %v4993_v56 = vld [vmem:[%s6711_s23 + $0x48] sm:$0xe]  ;;  %v4966_v57 = vld [vmem:[%s6711_s23 + $0x3c] sm:$0xf]  ;;  %v1102_v61 = vrot.slane %v1100_v33, 1  ;;  %v1865_v1 = vrot.slane %v6871_v55, 1 }
  0xa3   : > { %1251 = vrot.lane.b32.xlu1 %v1226_v59, %s6349_s10  ;;  %v4967_v59 = vld [vmem:[%s6711_s23 + $0x40] sm:$0xf]  ;;  %v5065_v2 = vcombine.low %v870_v45, %v6902_v13  ;;  %v6957_v3 = vrot.slane %v1112_v44, 1  ;;  %v1231_v58 = vrot.slane %v6918_v30, 1  ;;  %v5064_v5 = vcombine.low %v869_v51, %v6884_v63  ;;  %v4992_v9 = vld [vmem:[%s6711_s23 + $0x3c] sm:$0xe] }
  0xa4   : > { %1887 = vrot.lane.b32.xlu0 %v1860_v0, %s6355_s17  ;;  %v1105_v0 = vshrl.u32 %v6915_v29, 16  ;;  %v6962_v6 = vld [vmem:[%s6711_s23 + $0x50] ss:$0 sps:$4 sm:$0x11]   ;;  %v1428_v7 = vshll.u32 %v6944_v52, 16  ;;  %v5095_v8 = vcombine.low %v4993_v56, %v4969_v39  ;;  %v6967_v12 = vcombine.low %v4966_v57, %v4967_v59 }
  0xa5   : > { %v6970_v13 = vld [vmem:[%s6711_s23 + $0x44] ss:$0 sps:$4 sm:$0x11]   ;;  %v1727_v14 = vor.u32 %v1726_v31, %v1722_v21  ;;  %v5010_v15 = vld [vmem:[%s6711_s23 + $0x54] sm:$0xf]  ;;  %v1543_v63 = vsel %vm1214_vm8, %v1541_v20, %v1542_v22  ;;  %v1715_v18 = vor.u32 %v1714_v35, %v1710_v17  ;;  %v6982_v27 = vrot.slane %v5065_v2, 1 }
  0xa6   : > { %v6975_v16 = vld [vmem:[%s6711_s23 + $0x58] sm:$0xf]  ;;  %v6984_v28 = vrot.slane %v5064_v5, 1  ;;  %v1228_v24 = vrot.slane %v6910_v26, 1  ;;  %v1426_v21 = vshrl.u32 %v6944_v52, 16  ;;  %v1416_v20 = vshll.u32 %v6967_v12, 16 }
  0xa7   : > { %1321 = vrot.lane.b32.xlu1 %v6832_v23, %s6348_s9  ;;  %v6932_v23 = vrot.slane %v1717_v25, 1  ;;  %v6980_v25 = vld [vmem:[%s6711_s23 + $0x4c] sm:$0xf]  ;;  %v1433_v22 = vshll.u32 %v6962_v6, 16  ;;  %v6992_v31 = vrot.slane %v5095_v8, 1  ;;  %v6995_v17 = vcombine.low %v5010_v15, %v6975_v16 }
  0xa8   : > { %1249 = vrot.lane.b32.xlu0 %v1223_v19, %s6349_s10  ;;  %v5008_v19 = vld [vmem:[%s6711_s23 + $0x48] sm:$0xf]  ;;  %v1098_v34 = vor.u32 %v1097_v46, %v1093_v40  ;;  %v5094_v35 = vcombine.low %v4992_v9, %v4967_v59  ;;  %v7008_v33 = vld [vmem:[%s6711_s23 + $0x4c] sm:$0xf]  ;;  %v1414_v44 = vshrl.u32 %v6967_v12, 16  ;;  %v1421_v45 = vshll.u32 %v6970_v13, 16 }
  0xa9   : > { %v7004_v37 = vcombine.low %v5008_v19, %v6980_v25  ;;  %v847_v39 = vld [vmem:[%s6711_s23 + $0x48] sm:$0xf]  ;;  %v7015_v51 = vld [vmem:[%s6711_s23 + $0x50] ss:$0 sps:$4 sm:$0x11]   ;;  %v1551_v56 = vrot.slane %v6962_v6, 1  ;;  %v1232_v4 = vsel %vm1214_vm8, %v6982_v27, %v1231_v58  ;;  %v1866_v27 = vsel %vm1214_vm8, %v6941_v49, %v1865_v1 }
  0xaa   : > { %v5035_v40 = vld [vmem:[%s6711_s23 + $0x54] sm:$0xe]  ;;  %v1748_v57 = vshll.u32 %v6995_v17, 16  ;;  %v5034_v59 = vld [vmem:[%s6711_s23 + $0x48] sm:$0xe]  ;;  %v7029_v2 = vcombine.low %v847_v39, %v7008_v33  ;;  %v7034_v5 = vrot.slane %v5094_v35, 1 }
  0xab   : > { %1491 = vrot.lane.b32.xlu1 %v1412_v32, %s8589_s16  ;;  %v6998_v32 = vld [vmem:[%s6711_s23 + $0x5c] ss:$0 sps:$4 sm:$0x11]   ;;  %v849_v46 = vld [vmem:[%s6711_s23 + $0x54] sm:$0xf]  ;;  %v7041_v8 = vrot.slane %v1433_v22, 1 }
  0xac   : > { %1319 = vrot.lane.b32.xlu0 %v6849_v38, %s6348_s9  ;;  %v1109_v38 = vrot.slane %v1107_v42, 1  ;;  %v7010_v42 = vrot.slane %v1428_v7, 1  ;;  %8610 = vst [vmem:[#allocation11_spill] sm:$0xff] %v7029_v2  ;;  %v1736_v7 = vshll.u32 %v7004_v37, 16  ;;  %v1418_v9 = vrot.slane %v1416_v20, 1 }
  0xad   : > { %v5125_v20 = vcombine.low %v5035_v40, %v6975_v16  ;;  %v7056_v22 = vrot.slane %v1748_v57, 1  ;;  %v7061_v35 = vld [vmem:[%s6711_s23 + $0x64] sm:$0xf]  ;;  %v1863_v16 = vsel %vm1214_vm8, %v6928_v36, %v1862_v41  ;;  %v7075_v40 = vld [vmem:[%s6711_s23 + $0x5c] ss:$0 sps:$4 sm:$0x11]  }
  0xae   : > { %v4994_v1 = vld [vmem:[%s6711_s23 + $0x54] sm:$0xe]  ;;  %v5014_v58 = vld [vmem:[%s6711_s23 + $0x6c] sm:$0xf]  ;;  %v7126_v41 = vld [vmem:[%s6711_s23 + $0x70] sm:$0xf] }
  0xaf   : > { %1571 = vrot.lane.b32.xlu1 %v1546_v48, %s8587_s18  ;;  %v1110_v48 = vor.u32 %v1109_v38, %v1105_v0  ;;  %v1753_v0 = vshll.u32 %v6998_v32, 16  ;;  %v7039_v38 = vld [vmem:[%s6711_s23 + $0x50] ss:$0 sps:$4 sm:$0x11]   ;;  %v7100_v30 = vrot.slane %v5125_v20, 1  ;;  %v1431_v20 = vor.u32 %v7010_v42, %v1426_v21 }
  0xb0   : > { %1489 = vrot.lane.b32.xlu0 %v1400_v53, %s8589_s16  ;;  %v7022_v53 = vld [vmem:[%s6711_s23 + $0x58] sm:$0xf]  ;;  %v1229_v21 = vsel %vm1214_vm8, %v6984_v28, %v1228_v24  ;;  %v5012_v42 = vld [vmem:[%s6711_s23 + $0x60] sm:$0xf]  ;;  %v4975_v29 = vld [vmem:[%s6711_s23 + $0x70] sm:$0xf] }
  0xb1   : > { %v7045_v15 = vcombine.low %v849_v46, %v7022_v53  ;;  %v1115_v19 = vsel %vm1043_vm9, %v1110_v48, %v6957_v3  ;;  %v1124_v3 = vshll.u32 %v7039_v38, 16  ;;  %v1436_v26 = vsel %vm1043_vm9, %v1431_v20, %v7041_v8  ;;  %v5037_v48 = vld [vmem:[%s6711_s23 + $0x6c] sm:$0xe]  ;;  %v7301_v11 = vld [vmem:[%s6711_s23 + $0x74] ss:$0 sps:$4 sm:$0x11]  }
  0xb2   : > { %v7161_v8 = vcombine.low %v5014_v58, %v7126_v41  ;;  %v7177_v58 = vld [vmem:[%s6711_s23 + $0x68] ss:$0 sps:$4 sm:$0x11]   ;;  %v7324_v47 = vld [vmem:[%s6711_s23 + $0x7c] sm:$0xf] }
  0xb3   : > { %1641 = vrot.lane.b32.xlu1 %v6868_v54, %s6353_s22  ;;  %v1732_v54 = vsel %vm1043_vm9, %v1727_v14, %v6922_v10  ;;  %v1720_v10 = vsel %vm1043_vm9, %v1715_v18, %v6932_v23  ;;  %v1103_v23 = vsel %vm1043_vm9, %v1098_v34, %v1102_v61  ;;  %8611 = vst [vmem:[#allocation12_spill] sm:$0xff] %v7045_v15  ;;  %v1741_v18 = vshll.u32 %v7015_v51, 16  ;;  %v4972_v34 = vld [vmem:[%s6711_s23 + $0x60] sm:$0xf] }
  0xb4   : > { %1569 = vrot.lane.b32.xlu0 %v1543_v63, %s8587_s18  ;;  %v5124_v61 = vcombine.low %v5034_v59, %v6980_v25  ;;  %v7064_v25 = vrot.slane %v1753_v0, 1  ;;  %v1131_v46 = vshll.u32 %v7045_v15, 16  ;;  %v7084_v59 = vcombine.low %v4972_v34, %v7061_v35  ;;  %v4970_v34 = vld [vmem:[%s6711_s23 + $0x54] sm:$0xf]  ;;  %8617 = vst [vmem:[#allocation13_spill] sm:$0xff] %v7324_v47 }
  0xb5   : > { %v7097_v0 = vrot.slane %v1124_v3, 1  ;;  %v4971_v3 = vld [vmem:[%s6711_s23 + $0x58] sm:$0xf]  ;;  %v1765_v39 = vshll.u32 %v7177_v58, 16  ;;  %v5127_v14 = vcombine.low %v5037_v48, %v7126_v41  ;;  %v8612_v48 = vrot.slane %v6970_v13, 1 }
  0xb6   : > { %v7081_v57 = vrot.slane %v5124_v61, 1  ;;  %v1452_v49 = vshll.u32 %v7084_v59, 16 }
  0xb7   : > { %1811 = vrot.lane.b32.xlu1 %v1732_v54, %s6354_s20  ;;  %v1119_v54 = vshll.u32 %v7029_v2, 16  ;;  %v1549_v41 = vsel %vm1214_vm8, %v7034_v5, %v8612_v48  ;;  %v7247_v5 = vld [vmem:[%s6711_s23 + $0x74] ss:$0 sps:$4 sm:$0x11]  }
  0xb8   : > { %1639 = vrot.lane.b32.xlu0 %v6880_v60, %s6353_s22  ;;  %v7047_v60 = vrot.slane %v1421_v45, 1  ;;  %v7067_v45 = vrot.slane %v1736_v7, 1  ;;  %v871_v7 = vld [vmem:[%s6711_s23 + $0x48] sm:$0xe] }
  0xb9   : > { %v7091_v36 = vrot.slane %v1119_v54, 1  ;;  %v4995_v54 = vld [vmem:[%s6711_s23 + $0x60] sm:$0xe]  ;;  %v5066_v55 = vcombine.low %v871_v7, %v7008_v33  ;;  %v7133_v33 = vcombine.low %v4970_v34, %v4971_v3  ;;  %v7191_v7 = vld [vmem:[%s6711_s23 + $0x68] ss:$0 sps:$4 sm:$0x11]  }
  0xba   : > { %v5097_v34 = vcombine.low %v4995_v54, %v7061_v35  ;;  %v7170_v54 = vrot.slane %v1452_v49, 1  ;;  %v1552_v49 = vsel %vm1214_vm8, %v6992_v31, %v1551_v56 }
  0xbb   : > { %1172 = vrot.lane.b32.xlu1 %v1103_v23, %s6350_s13  ;;  %v872_v23 = vld [vmem:[%s6711_s23 + $0x54] sm:$0xe]  ;;  %v7150_v24 = vrot.slane %v5066_v55, 1  ;;  %v1440_v35 = vshll.u32 %v7133_v33, 16 }
  0xbc   : > { %1809 = vrot.lane.b32.xlu0 %v1720_v10, %s6354_s20  ;;  %v7078_v10 = vrot.slane %v1741_v18, 1  ;;  %v7107_v18 = vrot.slane %v1131_v46, 1  ;;  %v7121_v46 = vld [vmem:[%s6711_s23 + $0x68] ss:$0 sps:$4 sm:$0x11]  }
  0xbd   : > { %v7203_v56 = vrot.slane %v1440_v35, 1  ;;  %v7217_v35 = vld [vmem:[%s6711_s23 + $0x70] sm:$0xf] }
  0xbf   : > { %1174 = vrot.lane.b32.xlu1 %v1115_v19, %s6350_s13  ;;  %v1136_v19 = vshll.u32 %v7075_v40, 16 }
  0xc0   : > { %1889 = vrot.lane.b32.xlu0 %v1863_v16, %s6355_s17  ;;  %v5067_v16 = vcombine.low %v872_v23, %v7022_v53  ;;  %v5013_v53 = vld [vmem:[%s6711_s23 + $0x64] sm:$0xf]  ;;  %v1419_v23 = vor.u32 %v1418_v9, %v1414_v44  ;;  %v851_v44 = vld [vmem:[%s6711_s23 + $0x60] sm:$0xf] }
  0xc1   : > { %v7155_v9 = vld [vmem:[%s6711_s23 + $0x64] sm:$0xf]  ;;  %v7163_v20 = vcombine.low %v5012_v42, %v5013_v53 }
  0xc2   : > { %v7148_v28 = vrot.slane %v5067_v16, 1  ;;  %v7166_v16 = vld [vmem:[%s6711_s23 + $0x74] ss:$0 sps:$4 sm:$0x11]   ;;  %v7180_v42 = vcombine.low %v851_v44, %v7155_v9  ;;  %v1424_v61 = vsel %vm1043_vm9, %v1419_v23, %v7047_v60  ;;  %v1772_v44 = vshll.u32 %v7161_v8, 16 }
  0xc3   : > { %1255 = vrot.lane.b32.xlu1 %v1232_v4, %s6349_s10  ;;  %v7139_v4 = vrot.slane %v1136_v19, 1  ;;  %v5096_v19 = vcombine.low %v4994_v1, %v4971_v3  ;;  %v5036_v1 = vld [vmem:[%s6711_s23 + $0x60] sm:$0xe]  ;;  %v1760_v60 = vshll.u32 %v7163_v20, 16  ;;  %v1777_v6 = vshll.u32 %v7166_v16, 16 }
  0xc4   : > { %1891 = vrot.lane.b32.xlu0 %v1866_v27, %s6355_s17  ;;  %v7144_v27 = vld [vmem:[%s6711_s23 + $0x5c] ss:$0 sps:$4 sm:$0x11]   ;;  %v1143_v63 = vshll.u32 %v7180_v42, 16  ;;  %v8613_v3 = vshrl.u32 %v6995_v17, 16 }
  0xc5   : > { %v1445_v55 = vshll.u32 %v7144_v27, 16  ;;  %v7205_v23 = vrot.slane %v5096_v19, 1  ;;  %v7222_v19 = vrot.slane %v1777_v6, 1  ;;  %v4977_v6 = vld [vmem:[%s6711_s23 + $0x7c] sm:$0xf] }
  0xc7   : > { %1325 = vrot.lane.b32.xlu1 %v6944_v52, %s6348_s9  ;;  %v1457_v52 = vshll.u32 %v7121_v46, 16 }
  0xc8   : > { %1253 = vrot.lane.b32.xlu0 %v1229_v21, %s6349_s10  ;;  %v7188_v21 = vrot.slane %v5097_v34, 1  ;;  %v7207_v34 = vrot.slane %v1445_v55, 1  ;;  %v7238_v55 = vrot.slane %v1765_v39, 1  ;;  %v8614_v39 = vshrl.u32 %v7004_v37, 16 }
  0xc9   : > { %v7201_v31 = vrot.slane %v1457_v52, 1  ;;  %v853_v52 = vld [vmem:[%s6711_s23 + $0x6c] sm:$0xf] }
  0xca   : > { %v7244_v13 = vcombine.low %v853_v52, %v7217_v35 }
  0xcb   : > { %1495 = vrot.lane.b32.xlu1 %v1436_v26, %s8589_s16  ;;  %v5126_v26 = vcombine.low %v5036_v1, %v5013_v53  ;;  %v7220_v53 = vrot.slane %v1772_v44, 1  ;;  %v7225_v1 = vrot.slane %v1760_v60, 1  ;;  %v7241_v60 = vrot.slane %v1143_v63, 1 }
  0xcc   : > { %1323 = vrot.lane.b32.xlu0 %v6967_v12, %s6348_s9  ;;  %v1148_v12 = vshll.u32 %v7191_v7, 16  ;;  %v1739_v63 = vor.u32 %v7067_v45, %v8614_v39  ;;  %v1155_v45 = vshll.u32 %v7244_v13, 16  ;;  %v874_v39 = vld [vmem:[%s6711_s23 + $0x6c] sm:$0xe] }
  0xcd   : > { %v7235_v44 = vrot.slane %v5126_v26, 1  ;;  %v8615_v26 = vshrl.u32 %v7029_v2, 16  ;;  %v873_v2 = vld [vmem:[%s6711_s23 + $0x60] sm:$0xe] }
  0xce   : > { %v7249_v48 = vrot.slane %v1148_v12, 1  ;;  %v8616_v12 = vshrl.u32 %v7045_v15, 16  ;;  %v7289_v15 = vld [vmem:[%s6711_s23 + $0x80] ss:$0 sps:$4 sm:$0x11]   ;;  %v7305_v62 = vrot.slane %v1155_v45, 1 }
  0xcf   : > { %1575 = vrot.lane.b32.xlu1 %v1552_v49, %s8587_s18  ;;  %v1751_v49 = vor.u32 %v7056_v22, %v8613_v3  ;;  %v7251_v22 = vrot.slane %v5127_v14, 1  ;;  %v4976_v3 = vld [vmem:[%s6711_s23 + $0x78] sm:$0xf]  ;;  %v1122_v52 = vor.u32 %v7091_v36, %v8615_v26 }
  0xd0   : > { %1493 = vrot.lane.b32.xlu0 %v1424_v61, %s8589_s16  ;;  %v4974_v61 = vld [vmem:[%s6711_s23 + $0x6c] sm:$0xf]  ;;  %v4997_v36 = vld [vmem:[%s6711_s23 + $0x78] sm:$0xe]  ;;  %v7275_v26 = vcombine.low %v4976_v3, %v4977_v6  ;;  %v5018_v3 = vld [vmem:[%s6711_s23 + $0x84] sm:$0xf] }
  0xd1   : > { %v1756_v14 = vsel %vm1043_vm9, %v1751_v49, %v7064_v25  ;;  %v6099_v25 = vld [vmem:[%s8577_s1 + $0x20] ss:$0 sps:$4 sm:$0xff]   ;;  %v1160_v49 = vshll.u32 %v7247_v5, 16  ;;  %s8624_s16 = smov 32  }
  0xd2   : > { %5926 = vmatprep.subr.msk.bf16.mxu1 %vm2137_vm10, %v6099_v25 }
  0xd3   : > { %1645 = vrot.lane.b32.xlu1 %v6995_v17, %s6353_s22  ;;  %v1134_v17 = vor.u32 %v7107_v18, %v8616_v12  ;;  %v1744_v18 = vsel %vm1043_vm9, %v1739_v63, %v7078_v10  ;;  %v7286_v12 = vcombine.low %v4974_v61, %v4975_v29  ;;  %v5069_v63 = vcombine.low %v874_v39, %v7217_v35  ;;  %v5016_v10 = vld [vmem:[%s6711_s23 + $0x78] sm:$0xf] }
  0xd4   : > { %1573 = vrot.lane.b32.xlu0 %v1549_v41, %s8587_s18  ;;  %v1127_v41 = vsel %vm1043_vm9, %v1122_v52, %v7097_v0  ;;  %v5068_v0 = vcombine.low %v873_v2, %v7155_v9  ;;  %v4996_v52 = vld [vmem:[%s6711_s23 + $0x6c] sm:$0xe]  ;;  %v1476_v35 = vshll.u32 %v7275_v26, 16  ;;  %v5099_v39 = vcombine.low %v4997_v36, %v4977_v6  ;;  %s8626_s18 = smov 40  }
  0xd5   : > { %v2139_v2 = vsel %vm2137_vm10, %v6099_v25, 0  ;;  %v7319_v45 = vrot.slane %v1160_v49, 1  ;;  %v5098_v61 = vcombine.low %v4996_v52, %v4975_v29  ;;  %v7327_v6 = vrot.slane %v5069_v63, 1  ;;  %v7345_v63 = vld [vmem:[%s6711_s23 + $0x8c] ss:$0 sps:$4 sm:$0x11]  }
  0xd6   : > { %5709 = vmatpush3.bf16.msra.mxu1 %v2139_v2  ;;  %v7329_v36 = vrot.slane %v5068_v0, 1  ;;  %v1469_v25 = vshll.u32 %v7301_v11, 16  ;;  %v8618_v49 = vrot.slane %v7015_v51, 1  ;;  %v1474_v0 = vshrl.u32 %v7275_v26, 16 }
  0xd7   : > { %1815 = vrot.lane.b32.xlu1 %v1756_v14, %s6354_s20  ;;  %v1139_v14 = vsel %vm1043_vm9, %v1134_v17, %v7139_v4  ;;  %v7310_v17 = vld [vmem:[%s6711_s23 + $0x88] sm:$0xf]  ;;  %v1481_v4 = vshll.u32 %v7289_v15, 16  ;;  %v7348_v2 = vrot.slane %v1476_v35, 1  ;;  %v1560_v35 = vrot.slane %v7301_v11, 1 }
  0xd8   : > { %1643 = vrot.lane.b32.xlu0 %v7004_v37, %s6353_s22  ;;  %v7315_v9 = vcombine.low %v5018_v3, %v7310_v17  ;;  %v1464_v37 = vshll.u32 %v7286_v12, 16  ;;  %v1869_v29 = vsel %vm1214_vm8, %v7081_v57, %v8618_v49  ;;  %v8619_v3 = vrot.slane %v7075_v40, 1 }
  0xd9   : > { %v7354_v51 = vrot.slane %v1481_v4, 1  ;;  %v1563_v57 = vrot.slane %v7289_v15, 1  ;;  %v7362_v49 = vrot.slane %v1469_v25, 1  ;;  %v8621_v25 = vshrl.u32 %v7084_v59, 16 }
  0xda   : > { %v1238_v52 = vsel %vm1214_vm8, %v7148_v28, %v8619_v3  ;;  %v7356_v40 = vrot.slane %v1464_v37, 1  ;;  %v7359_v28 = vrot.slane %v5098_v61, 1  ;;  %v1801_v61 = vshll.u32 %v7345_v63, 16 }
  0xdb   : > { %1176 = vrot.lane.b32.xlu1 %v1127_v41, %s6350_s13  ;;  %v7333_v41 = vcombine.low %v5016_v10, %v7324_v47  ;;  %v1462_v10 = vshrl.u32 %v7286_v12, 16  ;;  %v7351_v47 = vrot.slane %v5099_v39, 1  ;;  %v1794_v39 = vshrl.u32 %v7315_v9, 16 }
  0xdc   : > { %1813 = vrot.lane.b32.xlu0 %v1744_v18, %s6354_s20  ;;  %v1796_v18 = vshll.u32 %v7315_v9, 16  ;;  %v8622_v3 = vrot.slane %v7039_v38, 1  ;;  %v8625_v38 = vrot.slane %v7121_v46, 1  ;;  %v1561_v15 = vsel %vm1214_vm8, %v7359_v28, %v1560_v35 }
  0xde   : > { %v7371_v4 = vrot.slane %v1796_v18, 1 }
  0xdf   : > { %1178 = vrot.lane.b32.xlu1 %v1139_v14, %s6350_s13  ;;  %v8620_v14 = vrot.slane %v6998_v32, 1  ;;  %v1235_v32 = vsel %vm1214_vm8, %v7150_v24, %v8622_v3  ;;  %v1558_v24 = vsel %vm1214_vm8, %v7188_v21, %v8625_v38  ;;  %v8628_v3 = vrot.slane %v7144_v27, 1 }
  0xe0   : > { %1893 = vrot.lane.b32.xlu0 %v1869_v29, %s6355_s17  ;;  %v1455_v29 = vor.u32 %v7170_v54, %v8621_v25 }
  0xe1   : > { %v1872_v37 = vsel %vm1214_vm8, %v7100_v30, %v8620_v14  ;;  %v1555_v46 = vsel %vm1214_vm8, %v7205_v23, %v8628_v3  ;;  %v8631_v23 = vshrl.u32 %v7244_v13, 16 }
  0xe2   : > { %v1460_v30 = vsel %vm1043_vm9, %v1455_v29, %v7201_v31  ;;  %v8627_v31 = vshrl.u32 %v7161_v8, 16 }
  0xe3   : > { %1259 = vrot.lane.b32.xlu1 %v1238_v52, %s6349_s10  ;;  %v8623_v52 = vshrl.u32 %v7133_v33, 16 }
  0xe4   : > { %1895 = vrot.lane.b32.xlu0 %v1872_v37, %s6355_s17 }
  0xe5   : > { %v1443_v18 = vor.u32 %v7203_v56, %v8623_v52  ;;  %v1775_v56 = vor.u32 %v7220_v53, %v8627_v31  ;;  %v8630_v53 = vshrl.u32 %v7163_v20, 16 }
  0xe7   : > { %1329 = vrot.lane.b32.xlu1 %v7084_v59, %s6348_s9  ;;  %v1448_v59 = vsel %vm1043_vm9, %v1443_v18, %v7207_v34  ;;  %v1780_v21 = vsel %vm1043_vm9, %v1775_v56, %v7222_v19  ;;  %v8629_v34 = vshrl.u32 %v7180_v42, 16  ;;  %v1763_v27 = vor.u32 %v7225_v1, %v8630_v53 }
  0xe8   : > { %1257 = vrot.lane.b32.xlu0 %v1235_v32, %s6349_s10  ;;  %v1158_v19 = vor.u32 %v7305_v62, %v8631_v23 }
  0xe9   : > { %v1146_v14 = vor.u32 %v7241_v60, %v8629_v34  ;;  %v1768_v60 = vsel %vm1043_vm9, %v1763_v27, %v7238_v55  ;;  %v8633_v55 = vrot.slane %v7247_v5, 1  ;;  %v1883_v27 = vrot.slane %v7345_v63, 1 }
  0xea   : > { %v1163_v1 = vsel %vm1043_vm9, %v1158_v19, %v7319_v45  ;;  %v8634_v45 = vrot.slane %v7166_v16, 1  ;;  %v8637_v19 = vld [vmem:[#allocation13_spill] sm:$0xff] }
  0xeb   : > { %1499 = vrot.lane.b32.xlu1 %v1460_v30, %s8624_s16  ;;  %v1244_v30 = vsel %vm1214_vm8, %v7327_v6, %v8633_v55  ;;  %v8635_v6 = vrot.slane %v7191_v7, 1 }
  0xec   : > { %1327 = vrot.lane.b32.xlu0 %v7133_v33, %s6348_s9 }
  0xed   : > { %v1241_v16 = vsel %vm1214_vm8, %v7329_v36, %v8635_v6 }
  0xef   : > { %1579 = vrot.lane.b32.xlu1 %v1558_v24, %s8626_s18 }
  0xf0   : > { %1497 = vrot.lane.b32.xlu0 %v1448_v59, %s8624_s16  ;;  %v1318_v54 = vpop.permute.xlu1 %1317  ;;  %v6105_v59 = vld [vmem:[%s6711_s23 + $0x80] ss:$0 sps:$4 sm:$0x11]  }
  0xf1   : > { %v1316_v33 = vpop.permute.xlu0 %1315  ;;  %v1880_v55 = vrot.slane %v6105_v59, 1 }
  0xf3   : > { %1649 = vrot.lane.b32.xlu1 %v7161_v8, %s6353_s22  ;;  %v1151_v8 = vsel %vm1043_vm9, %v1146_v14, %v7249_v48  ;;  %v8632_v48 = vrot.slane %v7177_v58, 1  ;;  %v1878_v58 = vsel %vm1214_vm8, %v7251_v22, %v8634_v45 }
  0xf4   : > { %1577 = vrot.lane.b32.xlu0 %v1555_v46, %s8626_s18  ;;  %v1246_v37 = vpop.permute.xlu1 %1245 }
  0xf5   : > { %v1875_v32 = vsel %vm1214_vm8, %v7235_v44, %v8632_v48  ;;  %v1479_v44 = vor.u32 %v7348_v2, %v1474_v0  ;;  %v5039_v2 = vld [vmem:[%s6711_s23 + $0x84] sm:$0xe] }
  0xf7   : > { %1819 = vrot.lane.b32.xlu1 %v1780_v21, %s6354_s20  ;;  %v1484_v7 = vsel %vm1043_vm9, %v1479_v44, %v7354_v51  ;;  %v1564_v51 = vsel %vm1214_vm8, %v7351_v47, %v1563_v57  ;;  %v5129_v47 = vcombine.low %v5039_v2, %v7310_v17  ;;  %v1799_v57 = vor.u32 %v7371_v4, %v1794_v39 }
  0xf8   : > { %1647 = vrot.lane.b32.xlu0 %v7163_v20, %s6353_s22  ;;  %v8636_v17 = vshll.u32 %v7333_v41, 16  ;;  %v1789_v21 = vshll.u32 %v6105_v59, 16 }
  0xf9   : > { %v1248_v25 = vpop.permute.xlu1 %1247  ;;  %v1882_v53 = vrot.slane %v5129_v47, 1 }
  0xfa   : > { %v1165_v29 = vpop.permute.xlu0 %1164  ;;  %v1786_v35 = vrot.slane %v8636_v17, 1 }
  0xfb   : > { %1180 = vrot.lane.b32.xlu1 %v1151_v8, %s6350_s13  ;;  %v1907_v22 = vsel %vm1905_vm11, %v6730_v43, %v1165_v29  ;;  %v1791_v29 = vrot.slane %v1789_v21, 1  ;;  %v1884_v63 = vsel %vm1214_vm8, %v1882_v53, %v1883_v27 }
  0xfc   : > { %1817 = vrot.lane.b32.xlu0 %v1768_v60, %s6354_s20  ;;  %v1928_v43 = vsel %vm1926_vm12, %v1907_v22, %v1246_v37  ;;  %v5038_v37 = vld [vmem:[%s6711_s23 + $0x78] sm:$0xe] }
  0xfd   : > { %v1488_v20 = vpop.permute.xlu1 %1487  ;;  %v1949_v56 = vsel %vm1947_vm13, %v1928_v43, %v1316_v33 }
  0xfe   : > { %v1167_v62 = vpop.permute.xlu0 %1166 }
  0xff   : > { %1182 = vrot.lane.b32.xlu1 %v1163_v1, %s6350_s13  ;;  %v1909_v24 = vsel %vm1905_vm11, %v6734_v50, %v1167_v62 }
 0x100   : > { %1897 = vrot.lane.b32.xlu0 %v1875_v32, %s6355_s17  ;;  %v1930_v50 = vsel %vm1926_vm12, %v1909_v24, %v1248_v25  ;;  %v5128_v25 = vcombine.low %v5038_v37, %v8637_v19 }
 0x101   : > { %v1568_v52 = vpop.permute.xlu1 %1567 }
 0x102   : > { %v1486_v18 = vpop.permute.xlu0 %1485  ;;  %v1879_v62 = vrot.slane %v5128_v25, 1 }
 0x103   : > { %1263 = vrot.lane.b32.xlu1 %v1244_v30, %s6349_s10  ;;  %v1970_v46 = vsel %vm1968_vm14, %v1949_v56, %v1486_v18 }
 0x104   : > { %1899 = vrot.lane.b32.xlu0 %v1878_v58, %s6355_s17  ;;  %v1881_v45 = vsel %vm1214_vm8, %v1879_v62, %v1880_v55 }
 0x105   : > { %v1638_v5 = vpop.permute.xlu1 %1637 }
 0x106   : > { %v1566_v38 = vpop.permute.xlu0 %1565 }
 0x107   : > { %1333 = vrot.lane.b32.xlu1 %v7275_v26, %s6348_s9  ;;  %v1467_v26 = vor.u32 %v7356_v40, %v1462_v10  ;;  %v1951_v40 = vsel %vm1947_vm13, %v1930_v50, %v1318_v54  ;;  %v1782_v54 = vshrl.u32 %v7333_v41, 16 }
 0x108   : > { %1261 = vrot.lane.b32.xlu0 %v1241_v16, %s6349_s10  ;;  %v1972_v11 = vsel %vm1968_vm14, %v1951_v40, %v1488_v20  ;;  %s8644_s10 = sshll.u32 %s6329_s27, 3 }
 0x109   : > { %v1808_v36 = vpop.permute.xlu1 %1807  ;;  %v1472_v10 = vsel %vm1043_vm9, %v1467_v26, %v7362_v49  ;;  %v1803_v49 = vrot.slane %v1801_v61, 1  ;;  %v1993_v4 = vsel %vm1989_vm15, %v1972_v11, %v1568_v52  ;;  %v1787_v60 = vor.u32 %v1786_v35, %v1782_v54  ;;  %s5146_s13 = sadd.s32 4294967295, %s8644_s10  ;;  %s5410_s10 = sshll.u32 %s6333_s28, 1 }
 0x10a   : > { %v1636_v0 = vpop.permute.xlu0 %1635  ;;  %v2014_v8 = vsel %vm2010_vm0, %v1993_v4, %v1638_v5  ;;  %v8640_v4 = vld [vmem:[#allocation9_spill] sm:$0xff] }
 0x10b   : > { %1503 = vrot.lane.b32.xlu1 %v1484_v7, %s8624_s16  ;;  %v1804_v61 = vsel %vm1043_vm9, %v1799_v57, %v1803_v49  ;;  %v1792_v32 = vsel %vm1043_vm9, %v1787_v60, %v1791_v29 }
 0x10c   : > { %1331 = vrot.lane.b32.xlu0 %v7286_v12, %s6348_s9  ;;  %v1991_v12 = vsel %vm1989_vm15, %v1970_v46, %v1566_v38  ;;  %v8638_v38 = vld [vmem:[#allocation7_spill] sm:$0xff] }
 0x10d   : > { %v1169_v31 = vpop.permute.xlu1 %1168  ;;  %v2012_v33 = vsel %vm2010_vm0, %v1991_v12, %v1636_v0 }
 0x10e   : > { %v1806_v3 = vpop.permute.xlu0 %1805  ;;  %v1911_v22 = vsel %vm1905_vm11, %v8638_v38, %v1169_v31 }
 0x10f   : > { %1583 = vrot.lane.b32.xlu1 %v1564_v51, %s8626_s18  ;;  %v2033_v34 = vsel %vm2031_vm2, %v2012_v33, %v1806_v3 }
 0x110   : > { %1501 = vrot.lane.b32.xlu0 %v1472_v10, %s8624_s16 }
 0x111   : > { %v1171_v28 = vpop.permute.xlu1 %1170 }
 0x112   : > { %v1886_v14 = vpop.permute.xlu0 %1885 }
 0x113   : > { %v2054_v39 = vsel %vm2052_vm1, %v2033_v34, %v1886_v14  ;;  %1653 = vrot.lane.b32.xlu1 %v7315_v9, %s6353_s22  ;;  %v2035_v9 = vsel %vm2031_vm2, %v2014_v8, %v1808_v36  ;;  %v8639_v36 = vld [vmem:[#allocation8_spill] sm:$0xff]  ;;  %v8641_v8 = vld [vmem:[#allocation10_spill] sm:$0xff] }
 0x114   : > { %1581 = vrot.lane.b32.xlu0 %v1561_v15, %s8626_s18  ;;  %5710 = vmatprep.mubr.msk.bf16.mxu1 %vm2116_vm3, %v2054_v39  ;;  %v1913_v26 = vsel %vm1905_vm11, %v8639_v36, %v1171_v28 }
 0x115   : > { %v1252_v23 = vpop.permute.xlu1 %1251 }
 0x116   : > { %v1888_v1 = vpop.permute.xlu0 %1887  ;;  %v1934_v59 = vsel %vm1926_vm12, %v1913_v26, %v1252_v23 }
 0x117   : > { %v2056_v20 = vsel %vm2052_vm1, %v2035_v9, %v1888_v1  ;;  %1823 = vrot.lane.b32.xlu1 %v1804_v61, %s6354_s20 }
 0x118   : > { %1651 = vrot.lane.b32.xlu0 %v7333_v41, %s6353_s22  ;;  %5711 = vmatmul.mubr.msk.bf16.vlgmr.msra.gmra.mrb[0].mxu1 %vm2116_vm3, %v2056_v20 }
 0x119   : > { %v1322_v48 = vpop.permute.xlu1 %1321 }
 0x11a   : > { %v1250_v30 = vpop.permute.xlu0 %1249  ;;  %v1955_v31 = vsel %vm1947_vm13, %v1934_v59, %v1322_v48  ;;  %v8643_v59 = vld [vmem:[#allocation12_spill] sm:$0xff] }
 0x11b   : > { %1903 = vrot.lane.b32.xlu1 %v1884_v63, %s6355_s17  ;;  %v1932_v24 = vsel %vm1926_vm12, %v1911_v22, %v1250_v30 }
 0x11c   : > { %1821 = vrot.lane.b32.xlu0 %v1792_v32, %s6354_s20 }
 0x11d   : > { %v1492_v52 = vpop.permute.xlu1 %1491 }
 0x11e   : > { %v1320_v58 = vpop.permute.xlu0 %1319  ;;  %v1976_v3 = vsel %vm1968_vm14, %v1955_v31, %v1492_v52 }
 0x11f   : > { %v1953_v0 = vsel %vm1947_vm13, %v1932_v24, %v1320_v58 }
 0x120   : > { %1901 = vrot.lane.b32.xlu0 %v1881_v45, %s6355_s17  ;;  %s8669_s17 = scalar_lea.vmem [#allocation4], %s6475_s21 }
 0x121   : > { %v1572_v41 = vpop.permute.xlu1 %1571  ;;  %s4862_s16 = sshll.u32 %s8669_s17, 4  ;;  %s8670_s28 = smov %s8669_s17  ;;  %s8521_s16 = int_to_ptr.vmem [resolvable:$true] %s4862_s16 }
 0x122   : > { %v1490_v18 = vpop.permute.xlu0 %1489  ;;  %v1997_v15 = vsel %vm1989_vm15, %v1976_v3, %v1572_v41  ;;  %s6251_s9 = scalar_lea.vmem %s8521_s16, 128 }
 0x123   : > { %v1974_v43 = vsel %vm1968_vm14, %v1953_v0, %v1490_v18  ;;  %v8642_v0 = vld [vmem:[#allocation11_spill] sm:$0xff]  ;;  %p6252_p0 = scmp.ne.s32.totalorder %s8521_s16, %s6251_s9 }
 0x125   : > { %v1642_v44 = vpop.permute.xlu1 %1641  ;;  %p6253_p1 = pnand %p6252_p0, %p6451_p3 }
 0x126   : > { %v1570_v5 = vpop.permute.xlu0 %1569  ;;  %v2018_v47 = vsel %vm2010_vm0, %v1997_v15, %v1642_v44 }
 0x127   : > { %v1995_v50 = vsel %vm1989_vm15, %v1974_v43, %v1570_v5  ;;  %p6254_p2 = pneg %p6253_p1 }
 0x129   : > { %v1812_v6 = vpop.permute.xlu1 %1811 }
 0x12a   : > { %v1640_v16 = vpop.permute.xlu0 %1639  ;;  %v2039_v57 = vsel %vm2031_vm2, %v2018_v47, %v1812_v6 }
 0x12b   : > { %v2016_v51 = vsel %vm2010_vm0, %v1995_v50, %v1640_v16 }
 0x12d   : > { %v1173_v7 = vpop.permute.xlu1 %1172 }
 0x12e   : > { %v1810_v2 = vpop.permute.xlu0 %1809  ;;  %v1915_v61 = vsel %vm1905_vm11, %v8640_v4, %v1173_v7 }
 0x12f   : > { %v2037_v40 = vsel %vm2031_vm2, %v2016_v51, %v1810_v2 }
 0x131   : > { %v1175_v10 = vpop.permute.xlu1 %1174 }
 0x132   : > { %v1890_v56 = vpop.permute.xlu0 %1889  ;;  %v1917_v23 = vsel %vm1905_vm11, %v8641_v8, %v1175_v10 }
 0x133   : > { %v2058_v46 = vsel %vm2052_vm1, %v2037_v40, %v1890_v56 }
 0x134   : > { %5714 = vmatprep.mubr.msk.bf16.mxu1 %vm2116_vm3, %v2058_v46 }
 0x135   : > { %v1256_v12 = vpop.permute.xlu1 %1255 }
 0x136   : > { %v1892_v49 = vpop.permute.xlu0 %1891  ;;  %v1938_v9 = vsel %vm1926_vm12, %v1917_v23, %v1256_v12 }
 0x137   : > { %v2060_v54 = vsel %vm2052_vm1, %v2039_v57, %v1892_v49 }
 0x138   : > { %5715 = vmatmul.mubr.msk.bf16.gmra.mrb[4].mxu1 %vm2116_vm3, %v2060_v54 }
 0x139   : > { %v1326_v11 = vpop.permute.xlu1 %1325 }
 0x13a   : > { %v1254_v33 = vpop.permute.xlu0 %1253  ;;  %v1959_v63 = vsel %vm1947_vm13, %v1938_v9, %v1326_v11  ;;  %v6106_v11 = vld [vmem:[%s8579_s3 + $0x100] sm:$0xff]  }
 0x13b   : > { %v1936_v53 = vsel %vm1926_vm12, %v1915_v61, %v1254_v33  ;;  %5451 = vmatprep.subr.bf16.mxu1 %v6106_v11  ;;  %v6114_v9 = vld [vmem:[%s8579_s3 + $0x120] sm:$0xff]  }
 0x13d   : > { %v1496_v28 = vpop.permute.xlu1 %1495 }
 0x13e   : > { %v1324_v17 = vpop.permute.xlu0 %1323  ;;  %v1980_v62 = vsel %vm1968_vm14, %v1959_v63, %v1496_v28  ;;  %v6107_v28 = vld [vmem:[%s8579_s3 + $0xc0] sm:$0xff]  }
 0x13f   : > { %v1957_v19 = vsel %vm1947_vm13, %v1936_v53, %v1324_v17  ;;  %5452 = vmatpush3.bf16.msra.mxu1 %v6107_v28  ;;  %v6110_v53 = vld [vmem:[%s8579_s3 + $0x110] sm:$0xff]  }
 0x141   : > { %v1576_v35 = vpop.permute.xlu1 %1575 }
 0x142   : > { %v1494_v21 = vpop.permute.xlu0 %1493  ;;  %v2001_v30 = vsel %vm1989_vm15, %v1980_v62, %v1576_v35 }
 0x143   : > { %v1978_v60 = vsel %vm1968_vm14, %v1957_v19, %v1494_v21  ;;  %v6112_v19 = vld [vmem:[%s8579_s3 + $0x118] sm:$0xff]  }
 0x145   : > { %v1646_v34 = vpop.permute.xlu1 %1645 }
 0x146   : > { %v1574_v14 = vpop.permute.xlu0 %1573  ;;  %v2022_v52 = vsel %vm2010_vm0, %v2001_v30, %v1646_v34 }
 0x147   : > { %v1999_v29 = vsel %vm1989_vm15, %v1978_v60, %v1574_v14 }
 0x149   : > { %v1816_v37 = vpop.permute.xlu1 %1815 }
 0x14a   : > { %v1644_v39 = vpop.permute.xlu0 %1643  ;;  %v2043_v58 = vsel %vm2031_vm2, %v2022_v52, %v1816_v37  ;;  %v6108_v37 = vld [vmem:[%s8579_s3 + $0x108] sm:$0xff]   ;;  %v6118_v52 = vld [vmem:[%s8579_s3 + $0x130] sm:$0xff]  }
 0x14b   : > { %v2020_v1 = vsel %vm2010_vm0, %v1999_v29, %v1644_v39  ;;  %v6109_v39 = vld [vmem:[%s8579_s3 + $0xc8] sm:$0xff]   ;;  %5453 = vmatprep.subr.bf16.mxu1 %v6108_v37 }
 0x14c   : > { %5454 = vmatpush3.bf16.msra.mxu1 %v6109_v39 }
 0x14d   : > { %v1177_v27 = vpop.permute.xlu1 %1176  ;;  %5455 = vmatprep.subr.bf16.mxu1 %v6110_v53 }
 0x14e   : > { %v1814_v25 = vpop.permute.xlu0 %1813  ;;  %v1919_v2 = vsel %vm1905_vm11, %v8642_v0, %v1177_v27  ;;  %v6111_v27 = vld [vmem:[%s8579_s3 + $0xd0] sm:$0xff]  }
 0x14f   : > { %v2041_v48 = vsel %vm2031_vm2, %v2020_v1, %v1814_v25  ;;  %v6113_v25 = vld [vmem:[%s8579_s3 + $0xd8] sm:$0xff]   ;;  %v6115_v1 = vld [vmem:[%s8579_s3 + $0xe0] sm:$0xff]  }
 0x150   : > { %5456 = vmatpush3.bf16.msra.mxu1 %v6111_v27 }
 0x151   : > { %v1179_v20 = vpop.permute.xlu1 %1178  ;;  %5457 = vmatprep.subr.bf16.mxu1 %v6112_v19 }
 0x152   : > { %v1894_v32 = vpop.permute.xlu0 %1893  ;;  %v1921_v51 = vsel %vm1905_vm11, %v8643_v59, %v1179_v20 }
 0x153   : > { %v2062_v55 = vsel %vm2052_vm1, %v2041_v48, %v1894_v32  ;;  %v6116_v48 = vld [vmem:[%s8579_s3 + $0x128] sm:$0xff]  }
 0x154   : > { %5718 = vmatprep.mubr.msk.bf16.mxu1 %vm2116_vm3, %v2062_v55  ;;  %5458 = vmatpush3.bf16.msra.mxu1 %v6113_v25  ;;  %v6117_v32 = vld [vmem:[%s8579_s3 + $0xe8] sm:$0xff]  }
 0x155   : > { %v1260_v45 = vpop.permute.xlu1 %1259  ;;  %5459 = vmatprep.subr.bf16.mxu1 %v6114_v9 }
 0x156   : > { %v1896_v41 = vpop.permute.xlu0 %1895  ;;  %v1942_v3 = vsel %vm1926_vm12, %v1921_v51, %v1260_v45 }
 0x157   : > { %v2064_v18 = vsel %vm2052_vm1, %v2043_v58, %v1896_v41  ;;  %v6119_v58 = vld [vmem:[%s8579_s3 + $0xf0] sm:$0xff]  }
 0x158   : > { %5719 = vmatmul.mubr.msk.bf16.gmra.mrb[8].mxu1 %vm2116_vm3, %v2064_v18 }
 0x159   : > { %v1330_v44 = vpop.permute.xlu1 %1329  ;;  %5460 = vmatpush3.bf16.msra.mxu1 %v6115_v1 }
 0x15a   : > { %v1258_v5 = vpop.permute.xlu0 %1257  ;;  %v1963_v47 = vsel %vm1947_vm13, %v1942_v3, %v1330_v44  ;;  %5461 = vmatprep.subr.bf16.mxu1 %v6116_v48  ;;  %v6130_v3 = vld [vmem:[%s8579_s3 + $0x168] sm:$0xff]   ;;  %v2630_v48 = vld [vmem:[#allocation3 + $0xc] sm:$0xf] }
 0x15b   : > { %v1940_v43 = vsel %vm1926_vm12, %v1919_v2, %v1258_v5 }
 0x15d   : > { %v1500_v6 = vpop.permute.xlu1 %1499  ;;  %5462 = vmatpush3.bf16.msra.mxu1 %v6117_v32 }
 0x15e   : > { %v1328_v16 = vpop.permute.xlu0 %1327  ;;  %v1984_v49 = vsel %vm1968_vm14, %v1963_v47, %v1500_v6  ;;  %5463 = vmatprep.subr.bf16.mxu1 %v6118_v52  ;;  %v7681_v47 = vstv %s5146_s13  ;;  %s4858_s13 = sadd.s32 %s6329_s27, %s5410_s10  ;;  %s8671_s27 = sand.u32 1, %s6321_s25  }
 0x15f   : > { %v1961_v10 = vsel %vm1947_vm13, %v1940_v43, %v1328_v16  ;;  %vm2285_vm6 = vcmp.ge.s32.totalorder %v7681_v47, 0  ;;  %vm2295_vm7 = vcmp.lt.s32.totalorder %v7681_v47, 16  ;;  %s5411_s20 = sshll.u32 %s4858_s13, 7  ;;  %s4847_s23 = scalar_lea.sflag [#allocation5], %s8671_s27 }
 0x160   : > { %s8519_s0 = scalar_lea.hbm %s8583_s7, %s5411_s20  ;;  %s6359_s10 = smov [#allocation4]  }
 0x161   : > { %v1580_v38 = vpop.permute.xlu1 %1579  ;;  %5464 = vmatpush3.bf16.msra.mxu1 %v6119_v58  ;;  %s6255_s13 = sshll.u32 %s6359_s10, 4  ;;  %s6256_s13 = int_to_ptr.vmem [resolvable:$false] %s6255_s13 }
 0x162   : > { %v1498_v22 = vpop.permute.xlu0 %1497  ;;  %v2005_v33 = vsel %vm1989_vm15, %v1984_v49, %v1580_v38  ;;  %s6257_s20 = scalar_lea.vmem %s6256_s13, 256  ;;  %p6258_p4 = scmp.lt.s32.totalorder %s8521_s16, %s6256_s13 }
 0x163   : > { %v1982_v40 = vsel %vm1968_vm14, %v1961_v10, %v1498_v22  ;;  %v6121_v22 = vld [vmem:[%s8579_s3 + $0xf8] sm:$0xff]   ;;  %v6126_v10 = vld [vmem:[%s8579_s3 + $0x148] sm:$0xff]   ;;  %p6259_p5 = scmp.lt.s32.totalorder %s6257_s20, %s6251_s9 }
 0x165   : > { %v1650_v24 = vpop.permute.xlu1 %1649  ;;  %p6260_p6 = por %p6259_p5, %p6258_p4 }
 0x166   : > { %v1578_v7 = vpop.permute.xlu0 %1577  ;;  %v2026_v17 = vsel %vm2010_vm0, %v2005_v33, %v1650_v24  ;;  %v6125_v24 = vld [vmem:[%s8579_s3 + $0x140] sm:$0xff]  }
 0x167   : > { %v2003_v56 = vsel %vm1989_vm15, %v1982_v40, %v1578_v7  ;;  %5730 = vmatprep.subr.bf16.mxu0 %v6125_v24  ;;  %v6128_v40 = vld [vmem:[%s8579_s3 + $0x158] sm:$0xff]   ;;  %p6261_p7 = pnand %p6260_p6, %p6254_p2 }
 0x168   : > { %5731 = vmatpush3.bf16.msra.mxu0 %v6125_v24  ;;  %v2627_v24 = vld [vmem:[#allocation3 + $0x8] sm:$0x1] }
 0x169   : > { %v1820_v36 = vpop.permute.xlu1 %1819  ;;  %5732 = vmatprep.subr.bf16.mxu0 %v6126_v10 }
 0x16a   : > { %v1648_v26 = vpop.permute.xlu0 %1647  ;;  %v2047_v21 = vsel %vm2031_vm2, %v2026_v17, %v1820_v36 }
 0x16b   : > { %v2024_v46 = vsel %vm2010_vm0, %v2003_v56, %v1648_v26  ;;  %v6129_v56 = vld [vmem:[%s8579_s3 + $0x160] sm:$0xff]  }
 0x16c   : > { %5733 = vmatpush3.bf16.msra.mxu0 %v6126_v10 }
 0x16d   : > { %v1181_v50 = vpop.permute.xlu1 %1180 }
 0x16e   : > { %v1818_v31 = vpop.permute.xlu0 %1817  ;;  %v1923_v45 = vsel %vm1905_vm11, %v7180_v42, %v1181_v50  ;;  %v6120_v42 = vld [vmem:[%s8579_s3 + $0x138] sm:$0xff]  }
 0x16f   : > { %v2045_v12 = vsel %vm2031_vm2, %v2024_v46, %v1818_v31  ;;  %5465 = vmatprep.subr.bf16.mxu1 %v6120_v42  ;;  %v6127_v31 = vld [vmem:[%s8579_s3 + $0x150] sm:$0xff]  }
 0x170   : > { %5466 = vmatpush3.bf16.msra.mxu1 %v6121_v22  ;;  %5734 = vmatprep.subr.bf16.mxu0 %v6127_v31  ;;  %v6131_v46 = vld [vmem:[%s8579_s3 + $0x170] sm:$0xff]  }
 0x171   : > { %v1183_v15 = vpop.permute.xlu1 %1182  ;;  %5735 = vmatpush3.bf16.msra.mxu0 %v6127_v31 }
 0x172   : > { %v1898_v57 = vpop.permute.xlu0 %1897  ;;  %v1925_v55 = vsel %vm1905_vm11, %v7244_v13, %v1183_v15  ;;  %5736 = vmatprep.subr.bf16.mxu0 %v6128_v40  ;;  %v6132_v15 = vld [vmem:[%s8579_s3 + $0x178] sm:$0xff]  }
 0x173   : > { %v2066_v54 = vsel %vm2052_vm1, %v2045_v12, %v1898_v57  ;;  %v2276_v12 = vadd.s32 1, %v7681_v47  ;;  %v7687_v57 = vld [vmem:[%s8578_s2] ss:$0 sm:$0xff] }
 0x174   : > { %5722 = vmatprep.mubr.msk.bf16.mxu1 %vm2116_vm3, %v2066_v54 }
 0x175   : > { %v1264_v35 = vpop.permute.xlu1 %1263  ;;  %5737 = vmatpush3.bf16.msra.mxu0 %v6128_v40  ;;  %vm2286_vm4 = vcmp.ge.s32.totalorder %v2276_v12, 0  ;;  %vm2296_vm5 = vcmp.lt.s32.totalorder %v2276_v12, 16 }
 0x176   : > { %v1900_v34 = vpop.permute.xlu0 %1899  ;;  %v1946_v18 = vsel %vm1926_vm12, %v1925_v55, %v1264_v35  ;;  %5738 = vmatprep.subr.bf16.mxu0 %v6129_v56  ;;  %vm2306_vm11 = vmand %vm2286_vm4, %vm2296_vm5 }
 0x177   : > { %v2068_v14 = vsel %vm2052_vm1, %v2047_v21, %v1900_v34 }
 0x178   : > { %5723 = vmatmul.mubr.msk.bf16.gmra.mrb[12].mxu1 %vm2116_vm3, %v2068_v14 }
 0x179   : > { %v1334_v4 = vpop.permute.xlu1 %1333  ;;  %5739 = vmatpush3.bf16.msra.mxu0 %v6129_v56 }
 0x17a   : > { %v1262_v61 = vpop.permute.xlu0 %1261  ;;  %v1967_v5 = vsel %vm1947_vm13, %v1946_v18, %v1334_v4  ;;  %5740 = vmatprep.subr.bf16.mxu0 %v6130_v3 }
 0x17b   : > { %v1944_v41 = vsel %vm1926_vm12, %v1923_v45, %v1262_v61  ;;  %vm2305_vm12 = vmand %vm2285_vm6, %vm2295_vm7  ;;  %v2621_v45 = vld [vmem:[#allocation3] sm:$0xf] }
 0x17d   : > { %v1504_v8 = vpop.permute.xlu1 %1503  ;;  %5741 = vmatpush3.bf16.msra.mxu0 %v6130_v3 }
 0x17e   : > { %v1332_v23 = vpop.permute.xlu0 %1331  ;;  %v1988_v16 = vsel %vm1968_vm14, %v1967_v5, %v1504_v8  ;;  %5742 = vmatprep.subr.bf16.mxu0 %v6131_v46 }
 0x17f   : > { %v1965_v44 = vsel %vm1947_vm13, %v1944_v41, %v1332_v23  ;;  %vm2619_vm13 = vsmask.f32 7938 }
 0x181   : > { %v1584_v60 = vpop.permute.xlu1 %1583  ;;  %5743 = vmatpush3.bf16.msra.mxu0 %v6131_v46 }
 0x182   : > { %v1502_v29 = vpop.permute.xlu0 %1501  ;;  %v2009_v7 = vsel %vm1989_vm15, %v1988_v16, %v1584_v60  ;;  %5744 = vmatprep.subr.bf16.mxu0 %v6132_v15 }
 0x183   : > { %v1986_v6 = vsel %vm1968_vm14, %v1965_v44, %v1502_v29  ;;  %vm2415_vm14 = vsmask.f32 256 }
 0x185   : > { %v1654_v20 = vpop.permute.xlu1 %1653  ;;  %5745 = vmatpush3.bf16.msra.mxu0 %v6132_v15  ;;  %v6153_v15 = vld [vmem:[%s8579_s3 + $0x1c0] sm:$0xff]  }
 0x186   : > { %v1582_v63 = vpop.permute.xlu0 %1581  ;;  %v2030_v0 = vsel %vm2010_vm0, %v2009_v7, %v1654_v20  ;;  %5611 = vmatprep.subr.bf16.mxu1 %v6153_v15 }
 0x187   : > { %v2007_v38 = vsel %vm1989_vm15, %v1986_v6, %v1582_v63  ;;  %vm2625_vm15 = vcmask 1040384  }
 0x189   : > { %v1824_v30 = vpop.permute.xlu1 %1823 }
 0x18a   : > { %v1652_v62 = vpop.permute.xlu0 %1651  ;;  %v2051_v50 = vsel %vm2031_vm2, %v2030_v0, %v1824_v30 }
 0x18b   : > { %v2028_v36 = vsel %vm2010_vm0, %v2007_v38, %v1652_v62  ;;  %vm2416_vm0 = vsmask.f32 4368 }
 0x18c   : > { %vm7708_vm4 = vmor %vm2415_vm14, %vm2416_vm0 }
 0x18d   : > { %v1904_v26 = vpop.permute.xlu1 %1903 }
 0x18e   : > { %v1822_v13 = vpop.permute.xlu0 %1821  ;;  %v2072_v51 = vsel %vm2052_vm1, %v2051_v50, %v1904_v26 }
 0x18f   : > { %v2049_v2 = vsel %vm2031_vm2, %v2028_v36, %v1822_v13  ;;  %vm7697_vm2 = vmand %vm2137_vm10, %vm2619_vm13  ;;  %v2634_v13 = vld [vmem:[#allocation3 + $0x14] sm:$0x1] }
 0x190   : > { %vm7729_vm10 = vmand %vm2625_vm15, %vm2619_vm13 }
 0x192   : > { %v1902_v43 = vpop.permute.xlu0 %1901 }
 0x193   : > { %v2070_v59 = vsel %vm2052_vm1, %v2049_v2, %v1902_v43 }
 0x194   : > { %5726 = vmatprep.mubr.msk.bf16.mxu1 %vm2116_vm3, %v2070_v59 }
 0x195   : > { %5727 = vmatmul.mubr.msk.bf16.gmra.mrb[16].mxu1 %vm2116_vm3, %v2072_v51  ;;  %vm7703_vm3 = vmand %vm2625_vm15, %vm2415_vm14  ;;  %v6151_v51 = vld [vmem:[%s8579_s3 + $0x40] sm:$0xff]  }
 0x196   : > { %5531 = vmatprep.subr.bf16.mxu0 %v6151_v51 }
 0x1eb   : > { %v5712_v49 = vpop.f32.mrb[0].mxu1 }
 0x1ec   : > { %v2184_v54 = vadd.f32 %v5712_v49, %v7687_v57  ;;  %v2175_v11 = vpop.f32.mrb[1].mxu1 }
 0x1ed   : > { %v2176_v33 = vadd.f32 %v7687_v57, %v2175_v11  ;;  %v5713_v28 = vpop.f32.mrb[2].mxu1  ;;  %v2278_v11 = vadd.s32 3, %v7681_v47 }
 0x1ee   : > { %v2256_v17 = vmax.f32 %v2184_v54, 0.0  ;;  %v2187_v35 = vadd.f32 %v5713_v28, %v7687_v57  ;;  %v2178_v21 = vpop.f32.mrb[3].mxu1  ;;  %v2277_v28 = vadd.s32 2, %v7681_v47 }
 0x1ef   : > { %v2254_v34 = vmax.f32 %v2176_v33, 0.0  ;;  %v2179_v14 = vadd.f32 %v7687_v57, %v2178_v21  ;;  %vm2288_vm5 = vcmp.ge.s32.totalorder %v2278_v11, 0  ;;  %vm2298_vm6 = vcmp.lt.s32.totalorder %v2278_v11, 16 }
 0x1f0   : > { %v2337_v37 = vsel %vm2306_vm11, %v2256_v17, 0.0  ;;  %v2257_v39 = vmax.f32 %v2187_v35, 0.0  ;;  %vm2287_vm7 = vcmp.ge.s32.totalorder %v2277_v28, 0 }
 0x1f1   : > { %v5418_v4 = vpack.c.bf16 %v2337_v37, %v2337_v37  ;;  %v2335_v61 = vsel %vm2305_vm12, %v2254_v34, 0.0  ;;  %v2255_v53 = vmax.f32 %v2179_v14, 0.0 }
 0x1f2   : > { %v5416_v27 = vpack.c.bf16 %v2335_v61, %v2335_v61  ;;  %v2338_v8 = vsel %vm2306_vm11, %v2257_v39, 0.0  ;;  %vm2297_vm11 = vcmp.lt.s32.totalorder %v2277_v28, 16 }
 0x1f3   : > { %v2436_v23 = vshrl.u32 %v5418_v4, 16  ;;  %v5419_v19 = vpack.c.bf16 %v2338_v8, %v2338_v8  ;;  %v2336_v25 = vsel %vm2305_vm12, %v2255_v53, 0.0  ;;  %v2439_v1 = vshll.u32 %v5418_v4, 16  ;;  %vm7747_vm12 = vmand %vm2288_vm5, %vm2298_vm6 }
 0x1f4   : > { %v2419_v60 = vshrl.u32 %v5416_v27, 16  ;;  %v5417_v29 = vpack.c.bf16 %v2336_v25, %v2336_v25  ;;  %v2422_v62 = vshll.u32 %v5416_v27, 16  ;;  %vm7752_vm13 = vmand %vm2287_vm7, %vm2297_vm11 }
 0x1f5   : > { %v2438_v9 = vrot.slane %v2436_v23, 7  ;;  %v2444_v20 = vshrl.u32 %v5419_v19, 16  ;;  %v2447_v41 = vshll.u32 %v5419_v19, 16 }
 0x1f6   : > { %v2421_v32 = vrot.slane %v2419_v60, 7  ;;  %v2427_v55 = vshrl.u32 %v5417_v29, 16  ;;  %v2430_v6 = vshll.u32 %v5417_v29, 16 }
 0x1f7   : > { %v2441_v52 = vor.u32 %v2439_v1, %v2438_v9  ;;  %v2446_v58 = vrot.slane %v2444_v20, 7  ;;  %v2442_v42 = vrot.slane %v2438_v9, 4 }
 0x1f8   : > { %v2424_v44 = vor.u32 %v2422_v62, %v2421_v32  ;;  %v2429_v5 = vrot.slane %v2427_v55, 7  ;;  %v2425_v7 = vrot.slane %v2421_v32, 4 }
 0x1f9   : > { %v2631_v16 = vsel %vm7697_vm2, %v2441_v52, %v2630_v48  ;;  %v2449_v38 = vor.u32 %v2447_v41, %v2446_v58  ;;  %v2451_v22 = vrot.slane %v2446_v58, 4 }
 0x1fa   : > { %2632 = vst [vmem:[#allocation3 + $0xc] sm:$0xf] %v2631_v16  ;;  %v2622_v36 = vsel %vm7697_vm2, %v2424_v44, %v2621_v45  ;;  %v2432_v26 = vor.u32 %v2430_v6, %v2429_v5  ;;  %v2434_v0 = vrot.slane %v2429_v5, 4 }
 0x1fb   : > { %2623 = vst [vmem:[#allocation3] sm:$0xf] %v2622_v36  ;;  %v2450_v2 = vsel %vm7708_vm4, %v2442_v42, %v2449_v38  ;;  %v2635_v43 = vsel %vm7703_vm3, %v2451_v22, %v2634_v13 }
 0x1fc   : > { %2633 = vst [vmem:[#allocation3 + $0x10] sm:$0xf] %v2450_v2  ;;  %2636 = vst [vmem:[#allocation3 + $0x14] sm:$0x1] %v2635_v43  ;;  %v2433_v50 = vsel %vm7708_vm4, %v2425_v7, %v2432_v26  ;;  %v2628_v59 = vsel %vm7703_vm3, %v2434_v0, %v2627_v24  ;;  %v6155_v24 = vld [vmem:[%s8579_s3 + $0x180] sm:$0xff]   ;;  %v6157_v2 = vld [vmem:[%s8579_s3 + $0x1c8] sm:$0xff]  }
 0x1fd   : > { %2624 = vst [vmem:[#allocation3 + $0x4] sm:$0xf] %v2433_v50  ;;  %2629 = vst [vmem:[#allocation3 + $0x8] sm:$0x1] %v2628_v59  ;;  %v2644_v7 = vld [vmem:[#allocation3 + $0x24] sm:$0xf] }
 0x1fe   : > { %v2637_v59 = vld [vmem:[#allocation3 + $0x18] sm:$0xf] }
 0x201   : > { %v2696_v31 = vld [vmem:[#allocation3 + $0xc] sm:$0x1]  ;;  %v3091_v17 = vld [vmem:[#allocation3 + $0xc] sm:$0xe] }
 0x202   : > { %v2697_v40 = vsel %vm7703_vm3, 0, %v2696_v31  ;;  %v2693_v56 = vld [vmem:[#allocation3] sm:$0x1] }
 0x203   : > { %2698 = vst [vmem:[#allocation3 + $0xc] sm:$0x1] %v2697_v40  ;;  %v2694_v3 = vsel %vm7703_vm3, 0, %v2693_v56  ;;  %v2727_v46 = vld [vmem:[#allocation3 + $0x14] sm:$0x1] }
 0x204   : > { %2695 = vst [vmem:[#allocation3] sm:$0x1] %v2694_v3  ;;  %v2728_v12 = vsel %vm7729_vm10, 0, %v2727_v46  ;;  %v2724_v49 = vld [vmem:[#allocation3 + $0x8] sm:$0x1] }
 0x205   : > { %2729 = vst [vmem:[#allocation3 + $0x14] sm:$0x1] %v2728_v12  ;;  %v2725_v54 = vsel %vm7729_vm10, 0, %v2724_v49  ;;  %v3068_v33 = vld [vmem:[#allocation3 + $0x10] sm:$0xf] }
 0x206   : > { %2726 = vst [vmem:[#allocation3 + $0x8] sm:$0x1] %v2725_v54  ;;  %v5207_v35 = vcombine.low %v3091_v17, %v3068_v33  ;;  %v2648_v56 = vld [vmem:[#allocation3 + $0x2c] sm:$0x1]  ;;  %v2641_v49 = vld [vmem:[#allocation3 + $0x20] sm:$0x1] }
 0x207   : > { %v6159_v54 = vld [vmem:[%s8579_s3 + $0x188] sm:$0xff]   ;;  %v7777_v11 = vld [vmem:[#allocation3 + $0x4] sm:$0xf] }
 0x208   : > { %v3299_v8 = vrot.slane %v5207_v35, 1  ;;  %v6161_v35 = vld [vmem:[%s8579_s3 + $0x1d0] sm:$0xff]  }
 0x20a   : > { %v3067_v21 = vld [vmem:[#allocation3 + $0xc] sm:$0xf] }
 0x20b   : > { %v5716_v34 = vpop.f32.mrb[4].mxu1  ;;  %v5191_v14 = vcombine.low %v3067_v21, %v3068_v33 }
 0x20c   : > { %v2200_v37 = vadd.f32 %v5716_v34, %v7687_v57  ;;  %v2191_v39 = vpop.f32.mrb[5].mxu1  ;;  %v6123_v4 = vld [vmem:[#allocation3 + $0x14] ss:$0 sps:$4 sm:$0x11]  }
 0x20d   : > { %v2192_v53 = vadd.f32 %v7687_v57, %v2191_v39  ;;  %v5717_v27 = vpop.f32.mrb[6].mxu1  ;;  %v3174_v23 = vshll.u32 %v5191_v14, 16  ;;  %v3300_v9 = vrot.slane %v6123_v4, 1  ;;  %v3179_v1 = vshll.u32 %v6123_v4, 16 }
 0x20e   : > { %v2260_v19 = vmax.f32 %v2200_v37, 0.0  ;;  %v2203_v60 = vadd.f32 %v5717_v27, %v7687_v57  ;;  %v2194_v29 = vpop.f32.mrb[7].mxu1  ;;  %v3172_v32 = vshrl.u32 %v5191_v14, 16  ;;  %v7782_v21 = vld [vmem:[#allocation3 + $0x8] ss:$0 sps:$4 sm:$0x11]  }
 0x20f   : > { %v2258_v20 = vmax.f32 %v2192_v53, 0.0  ;;  %v2195_v48 = vadd.f32 %v7687_v57, %v2194_v29  ;;  %v3176_v62 = vrot.slane %v3174_v23, 1  ;;  %v3301_v45 = vsel %vm1214_vm8, %v3299_v8, %v3300_v9  ;;  %v7786_v4 = vld [vmem:[#allocation3 + $0x14] ss:$0 sps:$4 sm:$0x11]  }
 0x210   : > { %v2341_v55 = vsel %vm7747_vm12, %v2260_v19, 0.0  ;;  %v2261_v52 = vmax.f32 %v2203_v60, 0.0  ;;  %v3181_v58 = vrot.slane %v3179_v1, 1  ;;  %5746 = vmatprep.mubr.bf16.mxu0 %v3301_v45  ;;  %v7790_v23 = vld [vmem:[#allocation3 + $0x10] sm:$0xf]  ;;  %v6163_v60 = vld [vmem:[%s8579_s3 + $0x190] sm:$0xff]  }
 0x211   : > { %v5422_v41 = vpack.c.bf16 %v2341_v55, %v2341_v55  ;;  %v2339_v44 = vsel %vm7752_vm13, %v2258_v20, 0.0  ;;  %v2259_v13 = vmax.f32 %v2195_v48, 0.0  ;;  %v3177_v5 = vor.u32 %v3176_v62, %v3172_v32  ;;  %v2778_v29 = vld [vmem:[#allocation3] sm:$0xe]  ;;  %v6165_v20 = vld [vmem:[%s8579_s3 + $0x1d8] sm:$0xff]  }
 0x212   : > { %v5420_v6 = vpack.c.bf16 %v2339_v44, %v2339_v44  ;;  %v2342_v42 = vsel %vm7747_vm12, %v2261_v52, 0.0  ;;  %v5183_v48 = vcombine.low %v2778_v29, %v7777_v11  ;;  %v2987_v32 = vrot.slane %v7782_v21, 1  ;;  %v2779_v62 = vld [vmem:[#allocation3 + $0xc] sm:$0xe]  ;;  %v6169_v44 = vld [vmem:[%s8579_s3 + $0x1e0] sm:$0xff]  }
 0x213   : > { %v2470_v16 = vshrl.u32 %v5422_v41, 16  ;;  %v5423_v38 = vpack.c.bf16 %v2342_v42, %v2342_v42  ;;  %v2340_v22 = vsel %vm7752_vm13, %v2259_v13, 0.0  ;;  %v3182_v0 = vsel %vm1043_vm9, %v3177_v5, %v3181_v58  ;;  %v6167_v58 = vld [vmem:[%s8579_s3 + $0x198] sm:$0xff]  }
 0x214   : > { %v2453_v36 = vshrl.u32 %v5420_v6, 16  ;;  %v5421_v26 = vpack.c.bf16 %v2340_v22, %v2340_v22  ;;  %v2473_v50 = vshll.u32 %v5422_v41, 16  ;;  %3556 = vmatprep.mubr.bf16.mxu1 %v3182_v0  ;;  %v2456_v40 = vshll.u32 %v5420_v6, 16 }
 0x215   : > { %v2472_v43 = vrot.slane %v2470_v16, 7  ;;  %v2478_v51 = vshrl.u32 %v5423_v38, 16  ;;  %3557 = vmatmul.mubr.bf16.vlgmr.msra.gmra.mrb[20].mxu1 %v5191_v14  ;;  %v2481_v12 = vshll.u32 %v5423_v38, 16  ;;  %v5184_v55 = vcombine.low %v2779_v62, %v7790_v23 }
 0x216   : > { %v2455_v31 = vrot.slane %v2453_v36, 7  ;;  %v2461_v3 = vshrl.u32 %v5421_v26, 16  ;;  %5612 = vmatpush3.bf16.msra.mxu1 %v6155_v24  ;;  %v2464_v17 = vshll.u32 %v5421_v26, 16  ;;  %v2990_v52 = vrot.slane %v7786_v4, 1 }
 0x217   : > { %v2475_v46 = vor.u32 %v2473_v50, %v2472_v43  ;;  %v2480_v15 = vrot.slane %v2478_v51, 7  ;;  %5613 = vmatprep.subr.bf16.mxu1 %v6157_v2  ;;  %v2476_v34 = vrot.slane %v2472_v43, 4  ;;  %v2986_v45 = vrot.slane %v5183_v48, 1  ;;  %v6173_v2 = vld [vmem:[%s8579_s3 + $0x1e8] sm:$0xff]  }
 0x218   : > { %v2458_v33 = vor.u32 %v2456_v40, %v2455_v31  ;;  %v2463_v28 = vrot.slane %v2461_v3, 7  ;;  %v2459_v61 = vrot.slane %v2455_v31, 4  ;;  %v2989_v41 = vrot.slane %v5184_v55, 1  ;;  %v6178_v3 = vld [vmem:[%s8579_s3 + $0x1a8] sm:$0xff]   ;;  %v6152_v55 = vld [vmem:[%s8579_s3] sm:$0xff]  }
 0x219   : > { %v2645_v14 = vsel %vm7697_vm2, %v2475_v46, %v2644_v7  ;;  %v2483_v37 = vor.u32 %v2481_v12, %v2480_v15  ;;  %v2485_v39 = vrot.slane %v2480_v15, 4  ;;  %v7817_v13 = vsel %vm1214_vm8, %v2986_v45, %v2987_v32  ;;  %v6171_v7 = vld [vmem:[%s8579_s3 + $0x1a0] sm:$0xff]   ;;  %v6182_v46 = vld [vmem:[%s8579_s3 + $0x1f0] sm:$0xff]  }
 0x21a   : > { %2646 = vst [vmem:[#allocation3 + $0x24] sm:$0xf] %v2645_v14  ;;  %v2638_v53 = vsel %vm7697_vm2, %v2458_v33, %v2637_v59  ;;  %v2466_v27 = vor.u32 %v2464_v17, %v2463_v28  ;;  %v2468_v8 = vrot.slane %v2463_v28, 4  ;;  %5614 = vmatpush3.bf16.msra.mxu1 %v6159_v54  ;;  %v7820_v6 = vsel %vm1214_vm8, %v2989_v41, %v2990_v52  ;;  %v6184_v12 = vld [vmem:[%s8579_s3 + $0x1b0] sm:$0xff]   ;;  %v6188_v17 = vld [vmem:[%s8579_s3 + $0x1f8] sm:$0xff]   ;;  %v6154_v52 = vld [vmem:[%s8579_s3 + $0x48] sm:$0xff]  }
 0x21b   : > { %2639 = vst [vmem:[#allocation3 + $0x18] sm:$0xf] %v2638_v53  ;;  %v2484_v19 = vsel %vm7708_vm4, %v2476_v34, %v2483_v37  ;;  %v2649_v25 = vsel %vm7703_vm3, %v2485_v39, %v2648_v56  ;;  %5615 = vmatprep.subr.bf16.mxu1 %v6161_v35  ;;  %v2280_v50 = vadd.s32 5, %v7681_v47  ;;  %v2279_v59 = vadd.s32 4, %v7681_v47 }
 0x21c   : > { %2647 = vst [vmem:[#allocation3 + $0x28] sm:$0xf] %v2484_v19  ;;  %2650 = vst [vmem:[#allocation3 + $0x2c] sm:$0x1] %v2649_v25  ;;  %v2467_v9 = vsel %vm7708_vm4, %v2459_v61, %v2466_v27  ;;  %v2642_v1 = vsel %vm7703_vm3, %v2468_v8, %v2641_v49 }
 0x21d   : > { %2640 = vst [vmem:[#allocation3 + $0x1c] sm:$0xf] %v2467_v9  ;;  %2643 = vst [vmem:[#allocation3 + $0x20] sm:$0x1] %v2642_v1  ;;  %vm2290_vm14 = vcmp.ge.s32.totalorder %v2280_v50, 0  ;;  %vm2300_vm15 = vcmp.lt.s32.totalorder %v2280_v50, 16 }
 0x21e   : > { %5616 = vmatpush3.bf16.msra.mxu1 %v6163_v60  ;;  %vm2289_vm0 = vcmp.ge.s32.totalorder %v2279_v59, 0  ;;  %vm2299_vm5 = vcmp.lt.s32.totalorder %v2279_v59, 16  ;;  %vm7857_vm6 = vmand %vm2290_vm14, %vm2300_vm15  ;;  %v6156_v59 = vld [vmem:[%s8579_s3 + $0x8] sm:$0xff]  }
 0x21f   : > { %5617 = vmatprep.subr.bf16.mxu1 %v6165_v20  ;;  %vm7866_vm7 = vmand %vm2289_vm0, %vm2299_vm5 }
 0x221   : > { %v2702_v5 = vld [vmem:[#allocation3 + $0x24] sm:$0x1]  ;;  %v3093_v31 = vld [vmem:[#allocation3 + $0x24] sm:$0xe] }
 0x222   : > { %v2703_v42 = vsel %vm7703_vm3, 0, %v2702_v5  ;;  %v2699_v16 = vld [vmem:[#allocation3 + $0x18] sm:$0x1]  ;;  %5618 = vmatpush3.bf16.msra.mxu1 %v6167_v58  ;;  %v3092_v51 = vld [vmem:[#allocation3 + $0x18] sm:$0xe]  ;;  %v6190_v5 = vld [vmem:[%s8579_s3 + $0x1b8] sm:$0xff]  }
 0x223   : > { %2704 = vst [vmem:[#allocation3 + $0x24] sm:$0x1] %v2703_v42  ;;  %v2700_v38 = vsel %vm7703_vm3, 0, %v2699_v16  ;;  %v2733_v22 = vld [vmem:[#allocation3 + $0x2c] sm:$0x1]  ;;  %5619 = vmatprep.subr.bf16.mxu1 %v6169_v44 }
 0x224   : > { %v3072_v24 = vld [vmem:[#allocation3 + $0x28] sm:$0xf]  ;;  %2701 = vst [vmem:[#allocation3 + $0x18] sm:$0x1] %v2700_v38  ;;  %v2734_v36 = vsel %vm7729_vm10, 0, %v2733_v22 }
 0x225   : > { %v2730_v26 = vld [vmem:[#allocation3 + $0x20] sm:$0x1]  ;;  %v3070_v0 = vld [vmem:[#allocation3 + $0x1c] sm:$0xf]  ;;  %2735 = vst [vmem:[#allocation3 + $0x2c] sm:$0x1] %v2734_v36  ;;  %v5209_v56 = vcombine.low %v3093_v31, %v3072_v24 }
 0x226   : > { %v2731_v43 = vsel %vm7729_vm10, 0, %v2730_v26  ;;  %v5208_v40 = vcombine.low %v3092_v51, %v3070_v0  ;;  %5620 = vmatpush3.bf16.msra.mxu1 %v6171_v7 }
 0x227   : > { %2732 = vst [vmem:[#allocation3 + $0x20] sm:$0x1] %v2731_v43  ;;  %5621 = vmatprep.subr.bf16.mxu1 %v6173_v2  ;;  %v3305_v28 = vrot.slane %v5209_v56, 1 }
 0x228   : > { %v3302_v33 = vrot.slane %v5208_v40, 1 }
 0x22a   : > { %v3071_v15 = vld [vmem:[#allocation3 + $0x24] sm:$0xf]  ;;  %5622 = vmatpush3.bf16.msra.mxu1 %v6178_v3 }
 0x22b   : > { %v5720_v49 = vpop.f32.mrb[8].mxu1  ;;  %v3069_v54 = vld [vmem:[#allocation3 + $0x18] sm:$0xf]  ;;  %5623 = vmatprep.subr.bf16.mxu1 %v6182_v46  ;;  %v7862_v8 = vcombine.low %v3071_v15, %v3072_v24  ;;  %v6158_v3 = vld [vmem:[%s8579_s3 + $0x50] sm:$0xff]  }
 0x22c   : > { %v2216_v35 = vadd.f32 %v5720_v49, %v7687_v57  ;;  %v2207_v34 = vpop.f32.mrb[9].mxu1  ;;  %v7851_v14 = vcombine.low %v3069_v54, %v3070_v0  ;;  %v7853_v37 = vld [vmem:[#allocation3 + $0x2c] ss:$0 sps:$4 sm:$0x11]   ;;  %v2658_v54 = vld [vmem:[#allocation3 + $0x3c] sm:$0xf] }
 0x22d   : > { %v2208_v61 = vadd.f32 %v7687_v57, %v2207_v34  ;;  %v5721_v53 = vpop.f32.mrb[10].mxu1  ;;  %v3306_v9 = vrot.slane %v7853_v37, 1  ;;  %v3196_v49 = vshrl.u32 %v7862_v8, 16 }
 0x22e   : > { %v6134_v27 = vld [vmem:[#allocation3 + $0x20] ss:$0 sps:$4 sm:$0x11]   ;;  %v2264_v19 = vmax.f32 %v2216_v35, 0.0  ;;  %v2219_v60 = vadd.f32 %v5721_v53, %v7687_v57  ;;  %v2210_v29 = vpop.f32.mrb[11].mxu1  ;;  %v3184_v1 = vshrl.u32 %v7851_v14, 16  ;;  %5624 = vmatpush3.bf16.msra.mxu1 %v6184_v12 }
 0x22f   : > { %v2262_v20 = vmax.f32 %v2208_v61, 0.0  ;;  %v2211_v48 = vadd.f32 %v7687_v57, %v2210_v29  ;;  %v3303_v32 = vrot.slane %v6134_v27, 1  ;;  %v3186_v62 = vshll.u32 %v7851_v14, 16  ;;  %5625 = vmatprep.subr.bf16.mxu1 %v6188_v17  ;;  %v2651_v61 = vld [vmem:[#allocation3 + $0x30] sm:$0xf] }
 0x230   : > { %v2345_v45 = vsel %vm7857_vm6, %v2264_v19, 0.0  ;;  %v2265_v58 = vmax.f32 %v2219_v60, 0.0  ;;  %v3307_v41 = vsel %vm1214_vm8, %v3305_v28, %v3306_v9  ;;  %v3191_v44 = vshll.u32 %v6134_v27, 16  ;;  %v6160_v19 = vld [vmem:[%s8579_s3 + $0x10] sm:$0xff]  }
 0x231   : > { %v5426_v42 = vpack.c.bf16 %v2345_v45, %v2345_v45  ;;  %v2343_v16 = vsel %vm7866_vm7, %v2262_v20, 0.0  ;;  %v2263_v38 = vmax.f32 %v2211_v48, 0.0  ;;  %v3304_v22 = vsel %vm1214_vm8, %v3302_v33, %v3303_v32  ;;  %v2662_v29 = vld [vmem:[#allocation3 + $0x44] sm:$0x1]  ;;  %v6162_v20 = vld [vmem:[%s8579_s3 + $0x58] sm:$0xff]  }
 0x232   : > { %v5424_v24 = vpack.c.bf16 %v2343_v16, %v2343_v16  ;;  %v2346_v7 = vsel %vm7857_vm6, %v2265_v58, 0.0  ;;  %5747 = vmatmul.mubr.bf16.vlgmr.msra.gmra.mrb[0].mxu0 %v3304_v22  ;;  %v3188_v36 = vrot.slane %v3186_v62, 1  ;;  %v3193_v26 = vrot.slane %v3191_v44, 1  ;;  %5626 = vmatpush3.bf16.msra.mxu1 %v6190_v5  ;;  %v6166_v22 = vld [vmem:[%s8579_s3 + $0x60] sm:$0xff]  }
 0x233   : > { %v2504_v0 = vshrl.u32 %v5426_v42, 16  ;;  %v2507_v2 = vshll.u32 %v5426_v42, 16  ;;  %v5427_v43 = vpack.c.bf16 %v2346_v7, %v2346_v7  ;;  %v2344_v50 = vsel %vm7866_vm7, %v2263_v38, 0.0  ;;  %5750 = vmatprep.mubr.bf16.mxu0 %v3307_v41  ;;  %5532 = vmatpush3.bf16.msra.mxu0 %v6152_v55  ;;  %v2655_v55 = vld [vmem:[#allocation3 + $0x38] sm:$0x1]  ;;  %v6164_v42 = vld [vmem:[%s8579_s3 + $0x18] sm:$0xff]  }
 0x234   : > { %v2487_v51 = vshrl.u32 %v5424_v24, 16  ;;  %v2490_v31 = vshll.u32 %v5424_v24, 16  ;;  %v5425_v40 = vpack.c.bf16 %v2344_v50, %v2344_v50  ;;  %v3189_v56 = vor.u32 %v3188_v36, %v3184_v1  ;;  %5533 = vmatprep.subr.bf16.mxu0 %v6154_v52  ;;  %v6168_v7 = vld [vmem:[%s8579_s3 + $0x20] sm:$0xff]   ;;  %v4081_v50 = vld [vmem:[#allocation3 + $0x18] sm:$0xe] }
 0x235   : > { %v2506_v46 = vrot.slane %v2504_v0, 7  ;;  %v2512_v15 = vshrl.u32 %v5427_v43, 16  ;;  %v2515_v12 = vshll.u32 %v5427_v43, 16  ;;  %v3198_v27 = vshll.u32 %v7862_v8, 16  ;;  %v7938_v0 = vld [vmem:[#allocation3 + $0x1c] sm:$0xf] }
 0x236   : > { %v2489_v33 = vrot.slane %v2487_v51, 7  ;;  %v2495_v28 = vshrl.u32 %v5425_v40, 16  ;;  %v2498_v17 = vshll.u32 %v5425_v40, 16  ;;  %v3194_v35 = vsel %vm1043_vm9, %v3189_v56, %v3193_v26  ;;  %v6170_v26 = vld [vmem:[%s8579_s3 + $0x68] sm:$0xff]   ;;  %v7940_v43 = vld [vmem:[#allocation3 + $0x28] sm:$0xf] }
 0x237   : > { %v2509_v34 = vor.u32 %v2507_v2, %v2506_v46  ;;  %v2510_v39 = vrot.slane %v2506_v46, 4  ;;  %v2514_v53 = vrot.slane %v2512_v15, 7  ;;  %3564 = vmatprep.mubr.bf16.mxu1 %v3194_v35  ;;  %5534 = vmatpush3.bf16.msra.mxu0 %v6156_v59  ;;  %v3203_v1 = vshll.u32 %v7853_v37, 16 }
 0x238   : > { %v2492_v25 = vor.u32 %v2490_v31, %v2489_v33  ;;  %v2493_v60 = vrot.slane %v2489_v33, 4  ;;  %v2497_v9 = vrot.slane %v2495_v28, 7  ;;  %3565 = vmatmul.mubr.bf16.gmra.mrb[24].mxu1 %v7851_v14  ;;  %5535 = vmatprep.subr.bf16.mxu0 %v6158_v3  ;;  %v3200_v52 = vrot.slane %v3198_v27, 1  ;;  %v7944_v31 = vld [vmem:[#allocation3 + $0x20] ss:$0 sps:$4 sm:$0x11]  }
 0x239   : > { %v2659_v48 = vsel %vm7697_vm2, %v2509_v34, %v2658_v54  ;;  %v2517_v32 = vor.u32 %v2515_v12, %v2514_v53  ;;  %v2519_v62 = vrot.slane %v2514_v53, 4  ;;  %v3205_v41 = vrot.slane %v3203_v1, 1  ;;  %v6172_v3 = vld [vmem:[%s8579_s3 + $0x28] sm:$0xff]   ;;  %v7959_v28 = vld [vmem:[#allocation3 + $0x2c] ss:$0 sps:$4 sm:$0x11]  }
 0x23a   : > { %2660 = vst [vmem:[#allocation3 + $0x3c] sm:$0xf] %v2659_v48  ;;  %v2652_v45 = vsel %vm7697_vm2, %v2492_v25, %v2651_v61  ;;  %v2500_v58 = vor.u32 %v2498_v17, %v2497_v9  ;;  %v2502_v14 = vrot.slane %v2497_v9, 4  ;;  %v3201_v5 = vor.u32 %v3200_v52, %v3196_v49  ;;  %v6177_v49 = vld [vmem:[%s8579_s3 + $0x70] sm:$0xff]   ;;  %v6183_v25 = vld [vmem:[%s8579_s3 + $0x78] sm:$0xff]  }
 0x23b   : > { %2653 = vst [vmem:[#allocation3 + $0x30] sm:$0xf] %v2652_v45  ;;  %v2518_v37 = vsel %vm7708_vm4, %v2510_v39, %v2517_v32  ;;  %v2663_v44 = vsel %vm7703_vm3, %v2519_v62, %v2662_v29  ;;  %5536 = vmatpush3.bf16.msra.mxu0 %v6160_v19  ;;  %v2282_v36 = vadd.s32 7, %v7681_v47  ;;  %v5327_v54 = vcombine.low %v4081_v50, %v7938_v0  ;;  %v4082_v17 = vld [vmem:[#allocation3 + $0x24] sm:$0xe] }
 0x23c   : > { %2661 = vst [vmem:[#allocation3 + $0x40] sm:$0xf] %v2518_v37  ;;  %2664 = vst [vmem:[#allocation3 + $0x44] sm:$0x1] %v2663_v44  ;;  %v2501_v16 = vsel %vm7708_vm4, %v2493_v60, %v2500_v58  ;;  %v2656_v38 = vsel %vm7703_vm3, %v2502_v14, %v2655_v55  ;;  %5537 = vmatprep.subr.bf16.mxu0 %v6162_v20  ;;  %v3206_v24 = vsel %vm1043_vm9, %v3201_v5, %v3205_v41  ;;  %v6179_v19 = vld [vmem:[%s8579_s3 + $0x30] sm:$0xff]   ;;  %v6187_v20 = vld [vmem:[%s8579_s3 + $0x38] sm:$0xff]  }
 0x23d   : > { %2654 = vst [vmem:[#allocation3 + $0x34] sm:$0xf] %v2501_v16  ;;  %2657 = vst [vmem:[#allocation3 + $0x38] sm:$0x1] %v2656_v38  ;;  %3572 = vmatprep.mubr.bf16.mxu1 %v3206_v24  ;;  %v2281_v35 = vadd.s32 6, %v7681_v47  ;;  %v5328_v61 = vcombine.low %v4082_v17, %v7940_v43  ;;  %v4289_v60 = vrot.slane %v5327_v54, 1 }
 0x23e   : > { %v4290_v29 = vrot.slane %v7944_v31, 1  ;;  %vm2292_vm11 = vcmp.ge.s32.totalorder %v2282_v36, 0  ;;  %vm2302_vm12 = vcmp.lt.s32.totalorder %v2282_v36, 16  ;;  %v4293_v9 = vrot.slane %v7959_v28, 1  ;;  %v7980_v58 = vld [vmem:[%s8579_s3 + $0x80] sm:$0xff]  }
 0x23f   : > { %5538 = vmatpush3.bf16.msra.mxu0 %v6164_v42  ;;  %vm2291_vm13 = vcmp.ge.s32.totalorder %v2281_v35, 0  ;;  %vm2301_vm14 = vcmp.lt.s32.totalorder %v2281_v35, 16  ;;  %v4292_v32 = vrot.slane %v5328_v61, 1  ;;  %vm7990_vm15 = vmand %vm2292_vm11, %vm2302_vm12 }
 0x240   : > { %3573 = vmatmul.mubr.bf16.gmra.mrb[28].mxu1 %v7862_v8  ;;  %5539 = vmatprep.subr.bf16.mxu0 %v6166_v22  ;;  %v7975_v48 = vsel %vm1214_vm8, %v4289_v60, %v4290_v29  ;;  %vm7999_vm0 = vmand %vm2291_vm13, %vm2301_vm14 }
 0x241   : > { %v2708_v2 = vld [vmem:[#allocation3 + $0x3c] sm:$0x1]  ;;  %v3095_v39 = vld [vmem:[#allocation3 + $0x3c] sm:$0xe]  ;;  %v7986_v5 = vsel %vm1214_vm8, %v4292_v32, %v4293_v9 }
 0x242   : > { %v2709_v59 = vsel %vm7703_vm3, 0, %v2708_v2  ;;  %v2705_v51 = vld [vmem:[#allocation3 + $0x30] sm:$0x1]  ;;  %v3094_v34 = vld [vmem:[#allocation3 + $0x30] sm:$0xe] }
 0x243   : > { %2710 = vst [vmem:[#allocation3 + $0x3c] sm:$0x1] %v2709_v59  ;;  %v2706_v8 = vsel %vm7703_vm3, 0, %v2705_v51  ;;  %v2739_v40 = vld [vmem:[#allocation3 + $0x44] sm:$0x1]  ;;  %5540 = vmatpush3.bf16.msra.mxu0 %v6168_v7 }
 0x244   : > { %v3076_v56 = vld [vmem:[#allocation3 + $0x40] sm:$0xf]  ;;  %2707 = vst [vmem:[#allocation3 + $0x30] sm:$0x1] %v2706_v8  ;;  %v2740_v46 = vsel %vm7729_vm10, 0, %v2739_v40  ;;  %5541 = vmatprep.subr.bf16.mxu0 %v6170_v26 }
 0x245   : > { %v2736_v15 = vld [vmem:[#allocation3 + $0x38] sm:$0x1]  ;;  %v3074_v12 = vld [vmem:[#allocation3 + $0x34] sm:$0xf]  ;;  %2741 = vst [vmem:[#allocation3 + $0x44] sm:$0x1] %v2740_v46  ;;  %v5211_v27 = vcombine.low %v3095_v39, %v3076_v56 }
 0x246   : > { %v2737_v33 = vsel %vm7729_vm10, 0, %v2736_v15  ;;  %v5210_v53 = vcombine.low %v3094_v34, %v3074_v12 }
 0x247   : > { %2738 = vst [vmem:[#allocation3 + $0x38] sm:$0x1] %v2737_v33  ;;  %5542 = vmatpush3.bf16.msra.mxu0 %v6172_v3  ;;  %v3311_v45 = vrot.slane %v5211_v27, 1 }
 0x248   : > { %5543 = vmatprep.subr.bf16.mxu0 %v6177_v49  ;;  %v3308_v52 = vrot.slane %v5210_v53, 1 }
 0x24a   : > { %v3075_v1 = vld [vmem:[#allocation3 + $0x3c] sm:$0xf] }
 0x24b   : > { %v5724_v62 = vpop.f32.mrb[12].mxu1  ;;  %v3073_v55 = vld [vmem:[#allocation3 + $0x30] sm:$0xf]  ;;  %5544 = vmatpush3.bf16.msra.mxu0 %v6179_v19  ;;  %v7995_v24 = vcombine.low %v3075_v1, %v3076_v56 }
 0x24c   : > { %v2232_v14 = vadd.f32 %v5724_v62, %v7687_v57  ;;  %v2223_v41 = vpop.f32.mrb[13].mxu1  ;;  %v5194_v37 = vcombine.low %v3073_v55, %v3074_v12  ;;  %v7983_v44 = vld [vmem:[#allocation3 + $0x44] ss:$0 sps:$4 sm:$0x11]   ;;  %5545 = vmatprep.subr.bf16.mxu0 %v6183_v25  ;;  %v2672_v55 = vld [vmem:[#allocation3 + $0x54] sm:$0xf] }
 0x24d   : > { %v2224_v16 = vadd.f32 %v7687_v57, %v2223_v41  ;;  %v5725_v38 = vpop.f32.mrb[14].mxu1  ;;  %v3312_v50 = vrot.slane %v7983_v44, 1  ;;  %v3220_v62 = vshrl.u32 %v7995_v24, 16 }
 0x24e   : > { %v6140_v22 = vld [vmem:[#allocation3 + $0x38] ss:$0 sps:$4 sm:$0x11]   ;;  %v2268_v7 = vmax.f32 %v2232_v14, 0.0  ;;  %v2235_v2 = vadd.f32 %v5725_v38, %v7687_v57  ;;  %v2226_v36 = vpop.f32.mrb[15].mxu1  ;;  %v3208_v59 = vshrl.u32 %v5194_v37, 16 }
 0x24f   : > { %v2266_v51 = vmax.f32 %v2224_v16, 0.0  ;;  %v2227_v8 = vadd.f32 %v7687_v57, %v2226_v36  ;;  %v3309_v40 = vrot.slane %v6140_v22, 1  ;;  %v3210_v3 = vshll.u32 %v5194_v37, 16  ;;  %5546 = vmatpush3.bf16.msra.mxu0 %v6187_v20  ;;  %v2665_v38 = vld [vmem:[#allocation3 + $0x48] sm:$0xf] }
 0x250   : > { %v2349_v56 = vsel %vm7990_vm15, %v2268_v7, 0.0  ;;  %v2269_v46 = vmax.f32 %v2235_v2, 0.0  ;;  %v3313_v15 = vsel %vm1214_vm8, %v3311_v45, %v3312_v50  ;;  %v3215_v12 = vshll.u32 %v6140_v22, 16  ;;  %5762 = vmatprep.subr.bf16.mxu0 %v7980_v58  ;;  %v2676_v36 = vld [vmem:[#allocation3 + $0x5c] sm:$0x1] }
 0x251   : > { %v5430_v49 = vpack.c.bf16 %v2349_v56, %v2349_v56  ;;  %v2347_v54 = vsel %vm7999_vm0, %v2266_v51, 0.0  ;;  %v2267_v33 = vmax.f32 %v2227_v8, 0.0  ;;  %v3310_v17 = vsel %vm1214_vm8, %v3308_v52, %v3309_v40 }
 0x252   : > { %v5428_v57 = vpack.c.bf16 %v2347_v54, %v2347_v54  ;;  %v2350_v35 = vsel %vm7990_vm15, %v2269_v46, 0.0  ;;  %5751 = vmatmul.mubr.bf16.gmra.mrb[4].mxu0 %v3310_v17  ;;  %v3212_v34 = vrot.slane %v3210_v3, 1  ;;  %v3217_v39 = vrot.slane %v3215_v12, 1  ;;  %v2669_v3 = vld [vmem:[#allocation3 + $0x50] sm:$0x1] }
 0x253   : > { %v2538_v61 = vshrl.u32 %v5430_v49, 16  ;;  %v2541_v53 = vshll.u32 %v5430_v49, 16  ;;  %v5431_v27 = vpack.c.bf16 %v2350_v35, %v2350_v35  ;;  %v2348_v19 = vsel %vm7999_vm0, %v2267_v33, 0.0  ;;  %5754 = vmatprep.mubr.bf16.mxu0 %v3313_v15 }
 0x254   : > { %v2521_v25 = vshrl.u32 %v5428_v57, 16  ;;  %v2524_v60 = vshll.u32 %v5428_v57, 16  ;;  %v5429_v29 = vpack.c.bf16 %v2348_v19, %v2348_v19  ;;  %v3213_v9 = vor.u32 %v3212_v34, %v3208_v59  ;;  %v8035_v34 = vld [vmem:[#allocation3 + $0x34] sm:$0xf] }
 0x255   : > { %v2540_v1 = vrot.slane %v2538_v61, 7  ;;  %v2546_v20 = vshrl.u32 %v5431_v27, 16  ;;  %v2549_v32 = vshll.u32 %v5431_v27, 16  ;;  %v3222_v7 = vshll.u32 %v7995_v24, 16 }
 0x256   : > { %v2523_v52 = vrot.slane %v2521_v25, 7  ;;  %v2529_v45 = vshrl.u32 %v5429_v29, 16  ;;  %v2532_v14 = vshll.u32 %v5429_v29, 16  ;;  %v3218_v41 = vsel %vm1043_vm9, %v3213_v9, %v3217_v39  ;;  %v4083_v39 = vld [vmem:[#allocation3 + $0x30] sm:$0xe] }
 0x257   : > { %v2543_v42 = vor.u32 %v2541_v53, %v2540_v1  ;;  %v2544_v16 = vrot.slane %v2540_v1, 4  ;;  %v2548_v22 = vrot.slane %v2546_v20, 7  ;;  %3580 = vmatprep.mubr.bf16.mxu1 %v3218_v41  ;;  %v3227_v59 = vshll.u32 %v7983_v44, 16  ;;  %v8039_v27 = vld [vmem:[#allocation3 + $0x38] ss:$0 sps:$4 sm:$0x11]  }
 0x258   : > { %v2526_v26 = vor.u32 %v2524_v60, %v2523_v52  ;;  %v2527_v2 = vrot.slane %v2523_v52, 4  ;;  %v2531_v50 = vrot.slane %v2529_v45, 7  ;;  %3581 = vmatmul.mubr.bf16.gmra.mrb[32].mxu1 %v5194_v37  ;;  %v3224_v56 = vrot.slane %v3222_v7, 1  ;;  %v2754_v7 = vld [vmem:[#allocation3] sm:$0xf] }
 0x259   : > { %v2673_v51 = vsel %vm7697_vm2, %v2543_v42, %v2672_v55  ;;  %v2551_v8 = vor.u32 %v2549_v32, %v2548_v22  ;;  %v2553_v40 = vrot.slane %v2548_v22, 4  ;;  %v3229_v49 = vrot.slane %v3227_v59, 1 }
 0x25a   : > { %2674 = vst [vmem:[#allocation3 + $0x54] sm:$0xf] %v2673_v51  ;;  %v2666_v46 = vsel %vm7697_vm2, %v2526_v26, %v2665_v38  ;;  %v2534_v15 = vor.u32 %v2532_v14, %v2531_v50  ;;  %v2536_v12 = vrot.slane %v2531_v50, 4  ;;  %v3225_v54 = vor.u32 %v3224_v56, %v3220_v62  ;;  %v2690_v26 = vld [vmem:[#allocation3 + $0x74] sm:$0x1] }
 0x25b   : > { %2667 = vst [vmem:[#allocation3 + $0x48] sm:$0xf] %v2666_v46  ;;  %v2552_v37 = vsel %vm7708_vm4, %v2544_v16, %v2551_v8  ;;  %v2677_v44 = vsel %vm7703_vm3, %v2553_v40, %v2676_v36  ;;  %v2284_v60 = vadd.s32 9, %v7681_v47  ;;  %v2283_v1 = vadd.s32 8, %v7681_v47  ;;  %v6250_v16 = vld [vmem:[%s8578_s2] ss:$0 sm:$0xff] }
 0x25c   : > { %2675 = vst [vmem:[#allocation3 + $0x58] sm:$0xf] %v2552_v37  ;;  %2678 = vst [vmem:[#allocation3 + $0x5c] sm:$0x1] %v2677_v44  ;;  %v2535_v33 = vsel %vm7708_vm4, %v2527_v2, %v2534_v15  ;;  %v2670_v17 = vsel %vm7703_vm3, %v2536_v12, %v2669_v3  ;;  %v3230_v57 = vsel %vm1043_vm9, %v3225_v54, %v3229_v49  ;;  %v4296_v47 = vrot.slane %v8039_v27, 1 }
 0x25d   : > { %2668 = vst [vmem:[#allocation3 + $0x4c] sm:$0xf] %v2535_v33  ;;  %2671 = vst [vmem:[#allocation3 + $0x50] sm:$0x1] %v2670_v17  ;;  %3588 = vmatprep.mubr.bf16.mxu1 %v3230_v57  ;;  %v5329_v32 = vcombine.low %v4083_v39, %v8035_v34  ;;  %vm2294_vm5 = vcmp.ge.s32.totalorder %v2284_v60, 0  ;;  %vm2304_vm6 = vcmp.lt.s32.totalorder %v2284_v60, 16  ;;  %v8073_v33 = vcombine.low %v2754_v7, %v7777_v11 }
 0x25e   : > { %vm2293_vm7 = vcmp.ge.s32.totalorder %v2283_v1, 0  ;;  %vm2303_vm11 = vcmp.lt.s32.totalorder %v2283_v1, 16  ;;  %vm8054_vm12 = vmand %vm2294_vm5, %vm2304_vm6 }
 0x25f   : > { %v4295_v42 = vrot.slane %v5329_v32, 1  ;;  %vm8062_vm13 = vmand %vm2293_vm7, %vm2303_vm11 }
 0x260   : > { %3589 = vmatmul.mubr.bf16.gmra.mrb[36].mxu1 %v7995_v24 }
 0x261   : > { %v2714_v35 = vld [vmem:[#allocation3 + $0x54] sm:$0x1]  ;;  %v3097_v55 = vld [vmem:[#allocation3 + $0x54] sm:$0xe]  ;;  %v8059_v51 = vsel %vm1214_vm8, %v4295_v42, %v4296_v47  ;;  %v2679_v47 = vld [vmem:[#allocation3 + $0x60] sm:$0xf] }
 0x262   : > { %v2715_v61 = vsel %vm7703_vm3, 0, %v2714_v35  ;;  %v2711_v53 = vld [vmem:[#allocation3 + $0x48] sm:$0x1]  ;;  %v3096_v52 = vld [vmem:[#allocation3 + $0x48] sm:$0xe] }
 0x263   : > { %2716 = vst [vmem:[#allocation3 + $0x54] sm:$0x1] %v2715_v61  ;;  %v2712_v19 = vsel %vm7703_vm3, 0, %v2711_v53  ;;  %v2745_v25 = vld [vmem:[#allocation3 + $0x5c] sm:$0x1] }
 0x264   : > { %v3080_v29 = vld [vmem:[#allocation3 + $0x58] sm:$0xf]  ;;  %2713 = vst [vmem:[#allocation3 + $0x48] sm:$0x1] %v2712_v19  ;;  %v2746_v24 = vsel %vm7729_vm10, 0, %v2745_v25 }
 0x265   : > { %v2742_v9 = vld [vmem:[#allocation3 + $0x50] sm:$0x1]  ;;  %v3078_v20 = vld [vmem:[#allocation3 + $0x4c] sm:$0xf]  ;;  %2747 = vst [vmem:[#allocation3 + $0x5c] sm:$0x1] %v2746_v24  ;;  %v5213_v45 = vcombine.low %v3097_v55, %v3080_v29 }
 0x266   : > { %v2743_v62 = vsel %vm7729_vm10, 0, %v2742_v9  ;;  %v5212_v14 = vcombine.low %v3096_v52, %v3078_v20  ;;  %v2686_v55 = vld [vmem:[#allocation3 + $0x6c] sm:$0xf] }
 0x267   : > { %2744 = vst [vmem:[#allocation3 + $0x50] sm:$0x1] %v2743_v62  ;;  %v3317_v59 = vrot.slane %v5213_v45, 1 }
 0x268   : > { %v5728_v41 = vpop.f32.mrb[16].mxu1  ;;  %v3314_v15 = vrot.slane %v5212_v14, 1 }
 0x269   : > { %v2248_v38 = vadd.f32 %v6250_v16, %v5728_v41  ;;  %v2239_v22 = vpop.f32.mrb[17].mxu1 }
 0x26a   : > { %v2240_v2 = vadd.f32 %v6250_v16, %v2239_v22  ;;  %v5729_v36 = vpop.f32.mrb[18].mxu1  ;;  %v3079_v50 = vld [vmem:[#allocation3 + $0x54] sm:$0xf] }
 0x26b   : > { %v2272_v8 = vmax.f32 %v2248_v38, 0.0  ;;  %v2251_v3 = vadd.f32 %v6250_v16, %v5729_v36  ;;  %v2242_v56 = vpop.f32.mrb[19].mxu1  ;;  %v3077_v46 = vld [vmem:[#allocation3 + $0x48] sm:$0xf]  ;;  %v8066_v12 = vcombine.low %v3079_v50, %v3080_v29 }
 0x26c   : > { %v2270_v49 = vmax.f32 %v2240_v2, 0.0  ;;  %v2243_v37 = vadd.f32 %v6250_v16, %v2242_v56  ;;  %v8068_v44 = vcombine.low %v3077_v46, %v3078_v20  ;;  %v8070_v54 = vld [vmem:[#allocation3 + $0x5c] ss:$0 sps:$4 sm:$0x11]  }
 0x26d   : > { %v2353_v17 = vsel %vm8054_vm12, %v2272_v8, 0.0  ;;  %v2273_v57 = vmax.f32 %v2251_v3, 0.0  ;;  %v3244_v35 = vshrl.u32 %v8066_v12, 16  ;;  %v3246_v39 = vshll.u32 %v8066_v12, 16 }
 0x26e   : > { %v5434_v61 = vpack.c.bf16 %v2353_v17, %v2353_v17  ;;  %v2351_v53 = vsel %vm8062_vm13, %v2270_v49, 0.0  ;;  %v2271_v19 = vmax.f32 %v2243_v37, 0.0  ;;  %v6146_v25 = vld [vmem:[#allocation3 + $0x50] ss:$0 sps:$4 sm:$0x11]   ;;  %v3318_v60 = vrot.slane %v8070_v54, 1 }
 0x26f   : > { %v5432_v29 = vpack.c.bf16 %v2351_v53, %v2351_v53  ;;  %v2354_v11 = vsel %vm8054_vm12, %v2273_v57, 0.0  ;;  %v3232_v24 = vshrl.u32 %v8068_v44, 16  ;;  %v3234_v9 = vshll.u32 %v8068_v44, 16  ;;  %v2683_v17 = vld [vmem:[#allocation3 + $0x68] sm:$0x1] }
 0x270   : > { %v2572_v1 = vshrl.u32 %v5434_v61, 16  ;;  %v2575_v20 = vshll.u32 %v5434_v61, 16  ;;  %v5435_v32 = vpack.c.bf16 %v2354_v11, %v2354_v11  ;;  %v2352_v62 = vsel %vm8062_vm13, %v2271_v19, 0.0 }
 0x271   : > { %v2555_v52 = vshrl.u32 %v5432_v29, 16  ;;  %v2558_v45 = vshll.u32 %v5432_v29, 16  ;;  %v5433_v14 = vpack.c.bf16 %v2352_v62, %v2352_v62  ;;  %v3315_v41 = vrot.slane %v6146_v25, 1  ;;  %v4084_v62 = vld [vmem:[#allocation3 + $0x3c] sm:$0xe] }
 0x272   : > { %v2574_v42 = vrot.slane %v2572_v1, 7  ;;  %v2580_v16 = vshrl.u32 %v5435_v32, 16  ;;  %v2583_v38 = vshll.u32 %v5435_v32, 16  ;;  %v3319_v22 = vsel %vm1214_vm8, %v3317_v59, %v3318_v60  ;;  %v8092_v60 = vld [vmem:[#allocation3 + $0x40] sm:$0xf] }
 0x273   : > { %v2557_v7 = vrot.slane %v2555_v52, 7  ;;  %v2563_v2 = vshrl.u32 %v5433_v14, 16  ;;  %v2566_v36 = vshll.u32 %v5433_v14, 16  ;;  %v3316_v50 = vsel %vm1214_vm8, %v3314_v15, %v3315_v41  ;;  %v8096_v1 = vld [vmem:[#allocation3 + $0x44] ss:$0 sps:$4 sm:$0x11]  }
 0x274   : > { %v2577_v8 = vor.u32 %v2575_v20, %v2574_v42  ;;  %v2578_v40 = vrot.slane %v2574_v42, 4  ;;  %v2582_v3 = vrot.slane %v2580_v16, 7  ;;  %5755 = vmatmul.mubr.bf16.gmra.mrb[8].mxu0 %v3316_v50  ;;  %v3236_v56 = vrot.slane %v3234_v9, 1  ;;  %v2756_v14 = vld [vmem:[#allocation3 + $0xc] sm:$0xf] }
 0x275   : > { %v2560_v46 = vor.u32 %v2558_v45, %v2557_v7  ;;  %v2561_v49 = vrot.slane %v2557_v7, 4  ;;  %v2565_v37 = vrot.slane %v2563_v2, 7  ;;  %5758 = vmatprep.mubr.bf16.mxu0 %v3319_v22  ;;  %v3239_v57 = vshll.u32 %v6146_v25, 16  ;;  %v8115_v16 = vld [vmem:[#allocation3 + $0x4c] sm:$0xf] }
 0x276   : > { %v2687_v59 = vsel %vm7697_vm2, %v2577_v8, %v2686_v55  ;;  %v2585_v61 = vor.u32 %v2583_v38, %v2582_v3  ;;  %v2587_v53 = vrot.slane %v2582_v3, 4  ;;  %v3237_v19 = vor.u32 %v3236_v56, %v3232_v24  ;;  %v4086_v8 = vld [vmem:[#allocation3 + $0x54] sm:$0xe] }
 0x277   : > { %2688 = vst [vmem:[#allocation3 + $0x6c] sm:$0xf] %v2687_v59  ;;  %v2680_v15 = vsel %vm7697_vm2, %v2560_v46, %v2679_v47  ;;  %v2568_v29 = vor.u32 %v2566_v36, %v2565_v37  ;;  %v2570_v11 = vrot.slane %v2565_v37, 4  ;;  %v3241_v9 = vrot.slane %v3239_v57, 1  ;;  %v4057_v47 = vld [vmem:[#allocation3 + $0x18] sm:$0xf] }
 0x278   : > { %2681 = vst [vmem:[#allocation3 + $0x60] sm:$0xf] %v2680_v15  ;;  %v2586_v25 = vsel %vm7708_vm4, %v2578_v40, %v2585_v61  ;;  %v2691_v20 = vsel %vm7703_vm3, %v2587_v53, %v2690_v26  ;;  %v3248_v32 = vrot.slane %v3246_v39, 1  ;;  %v3251_v24 = vshll.u32 %v8070_v54, 16  ;;  %v4085_v26 = vld [vmem:[#allocation3 + $0x48] sm:$0xe] }
 0x279   : > { %2689 = vst [vmem:[#allocation3 + $0x70] sm:$0xf] %v2586_v25  ;;  %2692 = vst [vmem:[#allocation3 + $0x74] sm:$0x1] %v2691_v20  ;;  %v2569_v63 = vsel %vm7708_vm4, %v2561_v49, %v2568_v29  ;;  %v2684_v55 = vsel %vm7703_vm3, %v2570_v11, %v2683_v17  ;;  %v3242_v52 = vsel %vm1043_vm9, %v3237_v19, %v3241_v9  ;;  %v4299_v18 = vrot.slane %v8096_v1, 1 }
 0x27a   : > { %v5330_v45 = vcombine.low %v4084_v62, %v8092_v60  ;;  %2682 = vst [vmem:[#allocation3 + $0x64] sm:$0xf] %v2569_v63  ;;  %2685 = vst [vmem:[#allocation3 + $0x68] sm:$0x1] %v2684_v55  ;;  %3596 = vmatprep.mubr.bf16.mxu1 %v3242_v52  ;;  %v3249_v39 = vor.u32 %v3248_v32, %v3244_v35  ;;  %v3253_v54 = vrot.slane %v3251_v24, 1  ;;  %v2861_v42 = vshll.u32 %v8073_v33, 16 }
 0x27b   : > { %3597 = vmatmul.mubr.bf16.gmra.mrb[40].mxu1 %v8068_v44  ;;  %v8118_v7 = vcombine.low %v2756_v14, %v7790_v23  ;;  %v8120_v35 = vld [vmem:[#allocation3 + $0x58] sm:$0xf]  ;;  %v2866_v36 = vshll.u32 %v7782_v21, 16  ;;  %v8130_v23 = vld [vmem:[#allocation3 + $0x50] ss:$0 sps:$4 sm:$0x11]   ;;  %v5331_v56 = vcombine.low %v4085_v26, %v8115_v16  ;;  %v8141_v30 = vcombine.low %v4057_v47, %v7938_v0 }
 0x27c   : > { %v3254_v41 = vsel %vm1043_vm9, %v3249_v39, %v3253_v54  ;;  %v4298_v38 = vrot.slane %v5330_v45, 1  ;;  %v8135_v37 = vld [vmem:[#allocation3 + $0x5c] ss:$0 sps:$4 sm:$0x11]   ;;  %v5332_v21 = vcombine.low %v4086_v8, %v8120_v35  ;;  %v2863_v59 = vrot.slane %v2861_v42, 1 }
 0x27d   : > { %3604 = vmatprep.mubr.bf16.mxu1 %v3254_v41  ;;  %v2873_v57 = vshll.u32 %v8118_v7, 16  ;;  %v4059_v61 = vld [vmem:[#allocation3 + $0x24] sm:$0xf]  ;;  %v4301_v53 = vrot.slane %v5331_v56, 1  ;;  %v4302_v19 = vrot.slane %v8130_v23, 1  ;;  %v2859_v29 = vshrl.u32 %v8073_v33, 16 }
 0x27e   : > { %v2720_v22 = vld [vmem:[#allocation3 + $0x6c] sm:$0x1]  ;;  %v8126_v50 = vsel %vm1214_vm8, %v4298_v38, %v4299_v18  ;;  %v2868_v11 = vrot.slane %v2866_v36, 1  ;;  %v4304_v9 = vrot.slane %v5332_v21, 1  ;;  %v4305_v10 = vrot.slane %v8135_v37, 1 }
 0x27f   : > { %v2721_v44 = vsel %vm7703_vm3, 0, %v2720_v22  ;;  %v2717_v2 = vld [vmem:[#allocation3 + $0x60] sm:$0x1]  ;;  %v4164_v0 = vshll.u32 %v8141_v30, 16  ;;  %v2875_v25 = vrot.slane %v2873_v57, 1  ;;  %v2878_v20 = vshll.u32 %v7786_v4, 16 }
 0x280   : > { %2722 = vst [vmem:[#allocation3 + $0x6c] sm:$0x1] %v2721_v44  ;;  %v2718_v40 = vsel %vm7703_vm3, 0, %v2717_v2  ;;  %v2751_v3 = vld [vmem:[#allocation3 + $0x74] sm:$0x1]  ;;  %v8151_v32 = vsel %vm1214_vm8, %v4301_v53, %v4302_v19  ;;  %v8154_v24 = vcombine.low %v4059_v61, %v7940_v43  ;;  %v8159_v63 = vsel %vm1214_vm8, %v4304_v9, %v4305_v10 }
 0x281   : > { %2719 = vst [vmem:[#allocation3 + $0x60] sm:$0x1] %v2718_v40  ;;  %v2752_v46 = vsel %vm7729_vm10, 0, %v2751_v3  ;;  %v2748_v49 = vld [vmem:[#allocation3 + $0x68] sm:$0x1]  ;;  %v2864_v39 = vor.u32 %v2863_v59, %v2859_v29  ;;  %v4169_v18 = vshll.u32 %v7944_v31, 16 }
 0x282   : > { %2753 = vst [vmem:[#allocation3 + $0x74] sm:$0x1] %v2752_v46  ;;  %v2749_v17 = vsel %vm7729_vm10, 0, %v2748_v49  ;;  %v3082_v15 = vld [vmem:[#allocation3 + $0x64] sm:$0xf]  ;;  %v4162_v47 = vshrl.u32 %v8141_v30, 16 }
 0x283   : > { %2750 = vst [vmem:[#allocation3 + $0x68] sm:$0x1] %v2749_v17  ;;  %3605 = vmatmul.mubr.bf16.gmra.mrb[44].mxu1 %v8066_v12  ;;  %v3098_v12 = vld [vmem:[#allocation3 + $0x60] sm:$0xe]  ;;  %v8156_v62 = vld [vmem:[#allocation3 + $0x70] sm:$0xf]  ;;  %v2869_v40 = vsel %vm1043_vm9, %v2864_v39, %v2868_v11 }
 0x284   : > { %v4088_v55 = vld [vmem:[#allocation3 + $0x6c] sm:$0xe]  ;;  %v5214_v45 = vcombine.low %v3098_v12, %v3082_v15  ;;  %v8161_v54 = vld [vmem:[#allocation3 + $0x64] sm:$0xf]  ;;  %v4087_v14 = vld [vmem:[#allocation3 + $0x60] sm:$0xe] }
 0x285   : > { %v2758_v41 = vld [vmem:[#allocation3 + $0x18] sm:$0xf]  ;;  %v5334_v38 = vcombine.low %v4088_v55, %v8156_v62  ;;  %v4166_v26 = vrot.slane %v4164_v0, 1  ;;  %v4176_v44 = vshll.u32 %v8154_v24, 16  ;;  %v5333_v2 = vcombine.low %v4087_v14, %v8161_v54  ;;  %v8173_v21 = vld [vmem:[#allocation3 + $0x1c] sm:$0xf] }
 0x286   : > { %v3320_v36 = vrot.slane %v5214_v45, 1  ;;  %v4171_v49 = vrot.slane %v4169_v18, 1  ;;  %v8178_v61 = vcombine.low %v2758_v41, %v8173_v21  ;;  %v2871_v9 = vshrl.u32 %v8118_v7, 16  ;;  %v4061_v10 = vld [vmem:[#allocation3 + $0x30] sm:$0xf] }
 0x287   : > { %v4310_v53 = vrot.slane %v5334_v38, 1  ;;  %v4307_v29 = vrot.slane %v5333_v2, 1  ;;  %v2880_v45 = vrot.slane %v2878_v20, 1  ;;  %v8189_v39 = vld [vmem:[#allocation3 + $0x20] ss:$0 sps:$4 sm:$0x11]  }
 0x288   : > { %v3081_v52 = vld [vmem:[#allocation3 + $0x60] sm:$0xf]  ;;  %v2885_v14 = vshll.u32 %v8178_v61, 16  ;;  %v4178_v41 = vrot.slane %v4176_v44, 1  ;;  %v2760_v38 = vld [vmem:[#allocation3 + $0x24] sm:$0xf] }
 0x289   : > { %v5198_v4 = vcombine.low %v3081_v52, %v3082_v15  ;;  %v8164_v42 = vld [vmem:[#allocation3 + $0x74] ss:$0 sps:$4 sm:$0x11]   ;;  %v4167_v15 = vor.u32 %v4166_v26, %v4162_v47  ;;  %v2876_v52 = vor.u32 %v2875_v25, %v2871_v9  ;;  %v8195_v47 = vcombine.low %v4061_v10, %v8035_v34  ;;  %v6195_v25 = vld [vmem:[%s8579_s3 + $0x88] sm:$0xff]   ;;  %v8201_v20 = vld [vmem:[#allocation3 + $0x28] sm:$0xf] }
 0x28a   : > { %v6175_v43 = vld [vmem:[#allocation3 + $0x68] ss:$0 sps:$4 sm:$0x11]   ;;  %v4311_v17 = vrot.slane %v8164_v42, 1  ;;  %v2887_v26 = vrot.slane %v2885_v14, 1  ;;  %v8205_v44 = vcombine.low %v2760_v38, %v8201_v20  ;;  %v6210_v14 = vld [vmem:[%s8579_s3 + $0xa0] sm:$0xff]  }
 0x28b   : > { %v3258_v22 = vshll.u32 %v5198_v4, 16  ;;  %v3321_v8 = vrot.slane %v6175_v43, 1  ;;  %v3263_v3 = vshll.u32 %v6175_v43, 16  ;;  %v8171_v31 = vld [vmem:[#allocation3 + $0x68] ss:$0 sps:$4 sm:$0x11]   ;;  %v4172_v18 = vsel %vm1043_vm9, %v4167_v15, %v4171_v49 }
 0x28c   : > { %v3256_v56 = vshrl.u32 %v5198_v4, 16  ;;  %v4308_v11 = vrot.slane %v8171_v31, 1  ;;  %v8183_v0 = vsel %vm1214_vm8, %v4310_v53, %v4311_v17  ;;  %v4181_v43 = vshll.u32 %v7959_v28, 16  ;;  %v2762_v53 = vld [vmem:[#allocation3 + $0x30] sm:$0xf]  ;;  %v6205_v15 = vld [vmem:[%s8579_s3 + $0x98] sm:$0xff]  }
 0x28d   : > { %v3260_v46 = vrot.slane %v3258_v22, 1  ;;  %v3322_v57 = vsel %vm1214_vm8, %v3320_v36, %v3321_v8  ;;  %v3265_v59 = vrot.slane %v3263_v3, 1  ;;  %v4174_v22 = vshrl.u32 %v8154_v24, 16  ;;  %v6200_v3 = vld [vmem:[%s8579_s3 + $0x90] sm:$0xff]   ;;  %v8230_v9 = vld [vmem:[#allocation3 + $0x34] sm:$0xf] }
 0x28e   : > { %5759 = vmatmul.mubr.bf16.gmra.mrb[12].mxu0 %v3322_v57  ;;  %v8187_v55 = vsel %vm1214_vm8, %v4307_v29, %v4308_v11  ;;  %v2881_v28 = vsel %vm1043_vm9, %v2876_v52, %v2880_v45  ;;  %v4183_v2 = vrot.slane %v4181_v43, 1  ;;  %v4188_v36 = vshll.u32 %v8195_v47, 16  ;;  %v4065_v45 = vld [vmem:[#allocation3 + $0x48] sm:$0xf] }
 0x28f   : > { %v3261_v19 = vor.u32 %v3260_v46, %v3256_v56  ;;  %3894 = vmatprep.mubr.bf16.mxu0 %v2869_v40  ;;  %v4179_v34 = vor.u32 %v4178_v41, %v4174_v22  ;;  %v2883_v8 = vshrl.u32 %v8178_v61, 16  ;;  %v4063_v40 = vld [vmem:[#allocation3 + $0x3c] sm:$0xf]  ;;  %v2897_v49 = vshll.u32 %v8205_v44, 16 }
 0x290   : > { %v4190_v57 = vrot.slane %v4188_v36, 1  ;;  %v2895_v52 = vshrl.u32 %v8205_v44, 16  ;;  %v8242_v43 = vld [vmem:[#allocation3 + $0x38] ss:$0 sps:$4 sm:$0x11]  }
 0x291   : > { %v3266_v12 = vsel %vm1043_vm9, %v3261_v19, %v3265_v59  ;;  %v2888_v56 = vor.u32 %v2887_v26, %v2883_v8  ;;  %v4184_v17 = vsel %vm1043_vm9, %v4179_v34, %v4183_v2  ;;  %v8222_v59 = vcombine.low %v4063_v40, %v8092_v60  ;;  %v8251_v34 = vld [vmem:[#allocation3 + $0x40] sm:$0xf] }
 0x292   : > { %3612 = vmatprep.mubr.bf16.mxu1 %v3266_v12  ;;  %v4186_v19 = vshrl.u32 %v8195_v47, 16  ;;  %v2899_v29 = vrot.slane %v2897_v49, 1  ;;  %v8235_v12 = vcombine.low %v2762_v53, %v8230_v9  ;;  %v8248_v26 = vcombine.low %v4065_v45, %v8115_v16  ;;  %v6220_v49 = vld [vmem:[%s8579_s3 + $0xb0] sm:$0xff]  }
 0x293   : > { %3613 = vmatmul.mubr.bf16.gmra.mrb[48].mxu1 %v5198_v4  ;;  %v2890_v4 = vshll.u32 %v8189_v39, 16  ;;  %v4200_v10 = vshll.u32 %v8222_v59, 16  ;;  %v2914_v2 = vshll.u32 %v8242_v43, 16 }
 0x294   : > { %4546 = vmatprep.mubr.bf16.mxu1 %v4172_v18  ;;  %v2900_v18 = vor.u32 %v2899_v29, %v2895_v52  ;;  %v2766_v29 = vld [vmem:[#allocation3 + $0x48] sm:$0xf] }
 0x295   : > { %v2892_v46 = vrot.slane %v2890_v4, 1  ;;  %v4202_v22 = vrot.slane %v4200_v10, 1  ;;  %v2764_v4 = vld [vmem:[#allocation3 + $0x3c] sm:$0xf]  ;;  %v8282_v10 = vld [vmem:[#allocation3 + $0x4c] sm:$0xf] }
 0x296   : > { %3895 = vmatmul.mubr.bf16.vlgmr.msra.gmra.mrb[16].mxu0 %v8073_v33  ;;  %v8215_v33 = vld [vmem:[#allocation3 + $0x2c] ss:$0 sps:$4 sm:$0x11]   ;;  %v8259_v36 = vcombine.low %v2764_v4, %v8251_v34 }
 0x297   : > { %3902 = vmatprep.mubr.bf16.mxu0 %v2881_v28  ;;  %5763 = vmatpush3.bf16.msra.mxu0 %v7980_v58  ;;  %v4193_v58 = vshll.u32 %v8039_v27, 16  ;;  %v2902_v11 = vshll.u32 %v8215_v33, 16  ;;  %v4191_v27 = vor.u32 %v4190_v57, %v4186_v19  ;;  %v4198_v28 = vshrl.u32 %v8222_v59, 16  ;;  %v8267_v57 = vld [vmem:[#allocation3 + $0x44] ss:$0 sps:$4 sm:$0x11]  }
 0x298   : > { %5764 = vmatprep.subr.bf16.mxu0 %v6195_v25 }
 0x299   : > { %v4195_v60 = vrot.slane %v4193_v58, 1  ;;  %v2904_v41 = vrot.slane %v2902_v11, 1  ;;  %v4203_v16 = vor.u32 %v4202_v22, %v4198_v28  ;;  %v4210_v11 = vshrl.u32 %v8248_v26, 16 }
 0x29b   : > { %4547 = vmatmul.mubr.bf16.vlgmr.msra.gmra.mrb[52].mxu1 %v8141_v30  ;;  %5765 = vmatpush3.bf16.msra.mxu0 %v6195_v25  ;;  %v2893_v30 = vsel %vm1043_vm9, %v2888_v56, %v2892_v46  ;;  %v4196_v38 = vsel %vm1043_vm9, %v4191_v27, %v4195_v60  ;;  %v2909_v25 = vshll.u32 %v8235_v12, 16  ;;  %v4067_v56 = vld [vmem:[#allocation3 + $0x54] sm:$0xf]  ;;  %v2907_v46 = vshrl.u32 %v8235_v12, 16  ;;  %v6225_v27 = vld [vmem:[%s8579_s3 + $0xb8] sm:$0xff]  }
 0x29c   : > { %4554 = vmatprep.mubr.bf16.mxu1 %v4184_v17  ;;  %5766 = vmatprep.subr.bf16.mxu0 %v6200_v3  ;;  %v2916_v17 = vrot.slane %v2914_v2, 1  ;;  %v8271_v58 = vcombine.low %v4067_v56, %v8120_v35  ;;  %v2926_v60 = vshll.u32 %v8267_v57, 16  ;;  %v2768_v2 = vld [vmem:[#allocation3 + $0x54] sm:$0xf] }
 0x29d   : > { %v2911_v40 = vrot.slane %v2909_v25, 1  ;;  %v8294_v25 = vld [vmem:[#allocation3 + $0x50] ss:$0 sps:$4 sm:$0x11]  }
 0x29e   : > { %3903 = vmatmul.mubr.bf16.gmra.mrb[20].mxu0 %v8118_v7  ;;  %v4205_v7 = vshll.u32 %v8096_v1, 16  ;;  %v6215_v1 = vld [vmem:[%s8579_s3 + $0xa8] sm:$0xff]   ;;  %v2928_v28 = vrot.slane %v2926_v60, 1 }
 0x29f   : > { %3910 = vmatprep.mubr.bf16.mxu0 %v2893_v30  ;;  %5767 = vmatpush3.bf16.msra.mxu0 %v6200_v3  ;;  %v4212_v3 = vshll.u32 %v8248_v26, 16  ;;  %v2912_v19 = vor.u32 %v2911_v40, %v2907_v46  ;;  %v4217_v30 = vshll.u32 %v8130_v23, 16 }
 0x2a0   : > { %5768 = vmatprep.subr.bf16.mxu0 %v6205_v15  ;;  %v4207_v8 = vrot.slane %v4205_v7, 1  ;;  %v8291_v7 = vld [vmem:[%s8579_s3 + $0x200] sm:$0xff]  }
 0x2a1   : > { %v2917_v23 = vsel %vm1043_vm9, %v2912_v19, %v2916_v17  ;;  %v4219_v45 = vrot.slane %v4217_v30, 1  ;;  %v8308_v19 = vld [vmem:[#allocation3 + $0x5c] ss:$0 sps:$4 sm:$0x11]  }
 0x2a2   : > { %v4208_v53 = vsel %vm1043_vm9, %v4203_v16, %v4207_v8  ;;  %v4222_v16 = vshrl.u32 %v8271_v58, 16  ;;  %v8300_v8 = vld [vmem:[#allocation3 + $0x58] sm:$0xf]  ;;  %v2950_v60 = vshll.u32 %v8308_v19, 16 }
 0x2a3   : > { %4555 = vmatmul.mubr.bf16.gmra.mrb[56].mxu1 %v8154_v24  ;;  %5769 = vmatpush3.bf16.msra.mxu0 %v6205_v15  ;;  %v2905_v24 = vsel %vm1043_vm9, %v2900_v18, %v2904_v41  ;;  %v4214_v15 = vrot.slane %v4212_v3, 1  ;;  %v2919_v18 = vshrl.u32 %v8259_v36, 16  ;;  %v4069_v41 = vld [vmem:[#allocation3 + $0x60] sm:$0xf]  ;;  %v2938_v3 = vshll.u32 %v8294_v25, 16 }
 0x2a4   : > { %4562 = vmatprep.mubr.bf16.mxu1 %v4196_v38  ;;  %5770 = vmatprep.subr.bf16.mxu0 %v6210_v14 }
 0x2a5   : > { %v4215_v52 = vor.u32 %v4214_v15, %v4210_v11  ;;  %v4241_v11 = vshll.u32 %v8171_v31, 16 }
 0x2a6   : > { %3911 = vmatmul.mubr.bf16.gmra.mrb[24].mxu0 %v8178_v61  ;;  %v2921_v61 = vshll.u32 %v8259_v36, 16 }
 0x2a7   : > { %3918 = vmatprep.mubr.bf16.mxu0 %v2905_v24  ;;  %5771 = vmatpush3.bf16.msra.mxu0 %v6210_v14  ;;  %v5173_v14 = vcombine.low %v2766_v29, %v8282_v10  ;;  %v4220_v4 = vsel %vm1043_vm9, %v4215_v52, %v4219_v45  ;;  %v5317_v24 = vcombine.low %v4069_v41, %v8161_v54  ;;  %v4243_v52 = vrot.slane %v4241_v11, 1 }
 0x2a8   : > { %5772 = vmatprep.subr.bf16.mxu0 %v6215_v1  ;;  %v2923_v35 = vrot.slane %v2921_v61, 1 }
 0x2a9   : > { %v4236_v46 = vshll.u32 %v5317_v24, 16  ;;  %v2931_v17 = vshrl.u32 %v5173_v14, 16 }
 0x2aa   : > { %v2924_v38 = vor.u32 %v2923_v35, %v2919_v18  ;;  %v2952_v18 = vrot.slane %v2950_v60, 1 }
 0x2ab   : > { %4563 = vmatmul.mubr.bf16.gmra.mrb[60].mxu1 %v8195_v47  ;;  %5773 = vmatpush3.bf16.msra.mxu0 %v6215_v1  ;;  %v4224_v47 = vshll.u32 %v8271_v58, 16  ;;  %v2933_v1 = vshll.u32 %v5173_v14, 16  ;;  %v4238_v29 = vrot.slane %v4236_v46, 1 }
 0x2ac   : > { %4570 = vmatprep.mubr.bf16.mxu1 %v4208_v53  ;;  %5774 = vmatprep.subr.bf16.mxu0 %v6220_v49  ;;  %v2929_v56 = vsel %vm1043_vm9, %v2924_v38, %v2928_v28  ;;  %v2940_v53 = vrot.slane %v2938_v3, 1  ;;  %v4253_v38 = vshll.u32 %v8164_v42, 16  ;;  %v2993_v42 = vrot.slane %v8189_v39, 1 }
 0x2ad   : > { %v4226_v22 = vrot.slane %v4224_v47, 1  ;;  %v2935_v54 = vrot.slane %v2933_v1, 1 }
 0x2ae   : > { %3919 = vmatmul.mubr.bf16.gmra.mrb[28].mxu0 %v8205_v44  ;;  %v4229_v44 = vshll.u32 %v8135_v37, 16 }
 0x2af   : > { %3926 = vmatprep.mubr.bf16.mxu0 %v2917_v23  ;;  %5775 = vmatpush3.bf16.msra.mxu0 %v6220_v49  ;;  %v4227_v37 = vor.u32 %v4226_v22, %v4222_v16  ;;  %v4071_v49 = vld [vmem:[#allocation3 + $0x6c] sm:$0xf]  ;;  %v2936_v30 = vor.u32 %v2935_v54, %v2931_v17  ;;  %v2781_v16 = vld [vmem:[#allocation3 + $0x24] sm:$0xe]  ;;  %v2783_v54 = vld [vmem:[#allocation3 + $0x3c] sm:$0xe] }
 0x2b0   : > { %5776 = vmatprep.subr.bf16.mxu0 %v6225_v27  ;;  %v4231_v40 = vrot.slane %v4229_v44, 1  ;;  %v3005_v17 = vrot.slane %v8294_v25, 1  ;;  %v6240_v25 = vld [vmem:[%s8579_s3 + $0x230] sm:$0xff]  }
 0x2b1   : > { %v2941_v47 = vsel %vm1043_vm9, %v2936_v30, %v2940_v53 }
 0x2b2   : > { %v4232_v61 = vsel %vm1043_vm9, %v4227_v37, %v4231_v40  ;;  %v2782_v37 = vld [vmem:[#allocation3 + $0x30] sm:$0xe]  ;;  %v2996_v40 = vrot.slane %v8215_v33, 1  ;;  %v5188_v33 = vcombine.low %v2783_v54, %v8251_v34  ;;  %v6238_v34 = vld [vmem:[%s8579_s3 + $0x228] sm:$0xff]  }
 0x2b3   : > { %4571 = vmatmul.mubr.bf16.gmra.mrb[64].mxu1 %v8222_v59  ;;  %5777 = vmatpush3.bf16.msra.mxu0 %v6225_v27  ;;  %v5174_v59 = vcombine.low %v2768_v2, %v8300_v8  ;;  %v4234_v27 = vshrl.u32 %v5317_v24, 16  ;;  %v5187_v39 = vcombine.low %v2782_v37, %v8230_v9  ;;  %v2784_v9 = vld [vmem:[#allocation3 + $0x48] sm:$0xe] }
 0x2b4   : > { %4578 = vmatprep.mubr.bf16.mxu1 %v4220_v4  ;;  %5794 = vmatprep.subr.bf16.mxu0 %v8291_v7  ;;  %v4255_v4 = vrot.slane %v4253_v38, 1  ;;  %v5189_v46 = vcombine.low %v2784_v9, %v8282_v10 }
 0x2b5   : > { %v2945_v15 = vshll.u32 %v5174_v59, 16  ;;  %v4239_v23 = vor.u32 %v4238_v29, %v4234_v27  ;;  %v2785_v29 = vld [vmem:[#allocation3 + $0x54] sm:$0xe] }
 0x2b6   : > { %3927 = vmatmul.mubr.bf16.gmra.mrb[32].mxu0 %v8235_v12  ;;  %v5318_v12 = vcombine.low %v4071_v49, %v8156_v62  ;;  %v3002_v49 = vrot.slane %v8267_v57, 1  ;;  %v3004_v53 = vrot.slane %v5189_v46, 1  ;;  %v5190_v57 = vcombine.low %v2785_v29, %v8300_v8  ;;  %v6242_v8 = vld [vmem:[%s8579_s3 + $0x238] sm:$0xff]  }
 0x2b7   : > { %3934 = vmatprep.mubr.bf16.mxu0 %v2929_v56  ;;  %v2947_v35 = vrot.slane %v2945_v15, 1  ;;  %v4244_v31 = vsel %vm1043_vm9, %v4239_v23, %v4243_v52 }
 0x2b8   : > { %v4248_v45 = vshll.u32 %v5318_v12, 16  ;;  %v4246_v22 = vshrl.u32 %v5318_v12, 16  ;;  %v3006_v30 = vsel %vm1214_vm8, %v3004_v53, %v3005_v17 }
 0x2ba   : > { %v4250_v41 = vrot.slane %v4248_v45, 1 }
 0x2bb   : > { %4579 = vmatmul.mubr.bf16.gmra.mrb[68].mxu1 %v8248_v26  ;;  %v2943_v26 = vshrl.u32 %v5174_v59, 16 }
 0x2bc   : > { %4586 = vmatprep.mubr.bf16.mxu1 %v4232_v61  ;;  %v4251_v44 = vor.u32 %v4250_v41, %v4246_v22  ;;  %v3001_v61 = vrot.slane %v5188_v33, 1 }
 0x2bd   : > { %v2948_v62 = vor.u32 %v2947_v35, %v2943_v26 }
 0x2be   : > { %3935 = vmatmul.mubr.bf16.gmra.mrb[36].mxu0 %v8259_v36  ;;  %v4256_v28 = vsel %vm1043_vm9, %v4251_v44, %v4255_v4  ;;  %v3003_v15 = vsel %vm1214_vm8, %v3001_v61, %v3002_v49 }
 0x2bf   : > { %3942 = vmatprep.mubr.bf16.mxu0 %v2941_v47  ;;  %v2953_v36 = vsel %vm1043_vm9, %v2948_v62, %v2952_v18  ;;  %v3007_v47 = vrot.slane %v5190_v57, 1 }
 0x2c3   : > { %4587 = vmatmul.mubr.bf16.gmra.mrb[72].mxu1 %v8271_v58  ;;  %v2780_v58 = vld [vmem:[#allocation3 + $0x18] sm:$0xe] }
 0x2c4   : > { %4594 = vmatprep.mubr.bf16.mxu1 %v4244_v31  ;;  %v5185_v1 = vcombine.low %v2780_v58, %v8173_v21  ;;  %v6232_v21 = vld [vmem:[%s8579_s3 + $0x210] sm:$0xff]  }
 0x2c6   : > { %3943 = vmatmul.mubr.bf16.gmra.mrb[40].mxu0 %v5173_v14  ;;  %v2992_v2 = vrot.slane %v5185_v1, 1  ;;  %v6230_v14 = vld [vmem:[%s8579_s3 + $0x208] sm:$0xff]  }
 0x2c7   : > { %3950 = vmatprep.mubr.bf16.mxu0 %v2953_v36 }
 0x2cb   : > { %4595 = vmatmul.mubr.bf16.gmra.mrb[76].mxu1 %v5317_v24  ;;  %v2994_v24 = vsel %vm1214_vm8, %v2992_v2, %v2993_v42 }
 0x2cc   : > { %4602 = vmatprep.mubr.bf16.mxu1 %v4256_v28 }
 0x2ce   : > { %3951 = vmatmul.mubr.bf16.gmra.mrb[44].mxu0 %v5174_v59  ;;  %v2998_v59 = vrot.slane %v5187_v39, 1 }
 0x2cf   : > { %5778 = vmatprep.mubr.bf16.mxu0 %v7817_v13  ;;  %v5186_v13 = vcombine.low %v2781_v16, %v8201_v20  ;;  %v6234_v20 = vld [vmem:[%s8579_s3 + $0x218] sm:$0xff]  }
 0x2d1   : > { %v2995_v3 = vrot.slane %v5186_v13, 1 }
 0x2d3   : > { %4603 = vmatmul.mubr.bf16.gmra.mrb[80].mxu1 %v5318_v12  ;;  %v3008_v12 = vrot.slane %v8308_v19, 1 }
 0x2d5   : > { %v3009_v52 = vsel %vm1214_vm8, %v3007_v47, %v3008_v12 }
 0x2d6   : > { %5779 = vmatmul.mubr.bf16.vlgmr.msra.gmra.mrb[0].mxu0 %v7820_v6  ;;  %v2999_v6 = vrot.slane %v8242_v43, 1  ;;  %v6236_v43 = vld [vmem:[%s8579_s3 + $0x220] sm:$0xff]  }
 0x2d7   : > { %5782 = vmatprep.mubr.bf16.mxu0 %v2994_v24  ;;  %5795 = vmatpush3.bf16.msra.mxu0 %v8291_v7  ;;  %v2997_v7 = vsel %vm1214_vm8, %v2995_v3, %v2996_v40 }
 0x2d8   : > { %5796 = vmatprep.subr.bf16.mxu0 %v6230_v14  ;;  %v3000_v56 = vsel %vm1214_vm8, %v2998_v59, %v2999_v6  ;;  %vm6357_vm8 = vmmov 0  }
 0x2db   : > { %5797 = vmatpush3.bf16.msra.mxu0 %v6230_v14 }
 0x2dc   : > { %5798 = vmatprep.subr.bf16.mxu0 %v6232_v21 }
 0x2de   : > { %5783 = vmatmul.mubr.bf16.gmra.mrb[4].mxu0 %v2997_v7 }
 0x2df   : > { %5786 = vmatprep.mubr.bf16.mxu0 %v3000_v56  ;;  %5799 = vmatpush3.bf16.msra.mxu0 %v6232_v21 }
 0x2e0   : > { %5800 = vmatprep.subr.bf16.mxu0 %v6234_v20 }
 0x2e3   : > { %5801 = vmatpush3.bf16.msra.mxu0 %v6234_v20  ;;  %v6356_v20 = vmov 0.0  }
 0x2e4   : > { %5802 = vmatprep.subr.bf16.mxu0 %v6236_v43  ;;  %5826 = vmatprep.subr.bf16.mxu1 %v6356_v20 }
 0x2e5   : > { %5842 = vmatprep.mubr.msk.bf16.mxu1 %vm6357_vm8, %v6356_v20 }
 0x2e6   : > { %5787 = vmatmul.mubr.bf16.gmra.mrb[8].mxu0 %v3003_v15 }
 0x2e7   : > { %5790 = vmatprep.mubr.bf16.mxu0 %v3006_v30  ;;  %5803 = vmatpush3.bf16.msra.mxu0 %v6236_v43 }
 0x2e8   : > { %v5467_v10 = vpop.f32.mrb[20].mxu1  ;;  %5804 = vmatprep.subr.bf16.mxu0 %v6238_v34 }
 0x2e9   : > { %v5468_v11 = vpop.f32.mrb[21].mxu1 }
 0x2ea   : > { %v8359_v27 = vadd.f32 %v5468_v11, %v5467_v10  ;;  %v5470_v35 = vpop.f32.mrb[22].mxu1 }
 0x2eb   : > { %v5471_v60 = vpop.f32.mrb[23].mxu1  ;;  %5805 = vmatpush3.bf16.msra.mxu0 %v6238_v34 }
 0x2ec   : > { %v8361_v23 = vadd.f32 %v5471_v60, %v5470_v35  ;;  %5806 = vmatprep.subr.bf16.mxu0 %v6240_v25 }
 0x2ee   : > { %5791 = vmatmul.mubr.bf16.gmra.mrb[12].mxu0 %v3009_v52 }
 0x2ef   : > { %5807 = vmatpush3.bf16.msra.mxu0 %v6240_v25  ;;  %5810 = vmatprep.mubr.bf16.mxu0 %v7975_v48 }
 0x2f0   : > { %5808 = vmatprep.subr.bf16.mxu0 %v6242_v8 }
 0x2f3   : > { %5809 = vmatpush3.bf16.msra.mxu0 %v6242_v8 }
 0x2f6   : > { %5811 = vmatmul.mubr.bf16.vlgmr.msra.gmra.mrb[0].mxu0 %v7986_v5 }
 0x2f7   : > { %5814 = vmatprep.mubr.bf16.mxu0 %v8059_v51 }
 0x2fe   : > { %5815 = vmatmul.mubr.bf16.gmra.mrb[4].mxu0 %v8126_v50 }
 0x2ff   : > { %5818 = vmatprep.mubr.bf16.mxu0 %v8151_v32 }
 0x306   : > { %5819 = vmatmul.mubr.bf16.gmra.mrb[8].mxu0 %v8159_v63 }
 0x307   : > { %5822 = vmatprep.mubr.bf16.mxu0 %v8187_v55 }
 0x30b   : > { %v5473_v19 = vpop.f32.mrb[24].mxu1 }
 0x30c   : > { %v5474_v45 = vpop.f32.mrb[25].mxu1 }
 0x30d   : > { %v8374_v26 = vadd.f32 %v5474_v45, %v5473_v19  ;;  %v5476_v18 = vpop.f32.mrb[26].mxu1 }
 0x30e   : > { %v5477_v48 = vpop.f32.mrb[27].mxu1  ;;  %5823 = vmatmul.mubr.bf16.gmra.mrb[12].mxu0 %v8183_v0 }
 0x30f   : > { %v8376_v31 = vadd.f32 %v5477_v48, %v5476_v18 }
 0x313   : > { %v5479_v5 = vpop.f32.mrb[28].mxu1 }
 0x314   : > { %v5480_v51 = vpop.f32.mrb[29].mxu1 }
 0x315   : > { %v8379_v62 = vadd.f32 %v5480_v51, %v5479_v5  ;;  %v5482_v50 = vpop.f32.mrb[30].mxu1 }
 0x316   : > { %v5483_v32 = vpop.f32.mrb[31].mxu1 }
 0x317   : > { %v8381_v41 = vadd.f32 %v5483_v32, %v5482_v50 }
 0x32b   : > { %v5485_v63 = vpop.f32.mrb[32].mxu1 }
 0x32c   : > { %v5486_v55 = vpop.f32.mrb[33].mxu1 }
 0x32d   : > { %v8383_v38 = vadd.f32 %v5486_v55, %v5485_v63  ;;  %v5488_v22 = vpop.f32.mrb[34].mxu1 }
 0x32e   : > { %v5489_v36 = vpop.f32.mrb[35].mxu1 }
 0x32f   : > { %v8385_v44 = vadd.f32 %v5489_v36, %v5488_v22 }
 0x333   : > { %v5491_v4 = vpop.f32.mrb[36].mxu1 }
 0x334   : > { %v5492_v28 = vpop.f32.mrb[37].mxu1 }
 0x335   : > { %v8387_v58 = vadd.f32 %v5492_v28, %v5491_v4  ;;  %v5494_v0 = vpop.f32.mrb[38].mxu1 }
 0x336   : > { %v5495_v1 = vpop.f32.mrb[39].mxu1 }
 0x337   : > { %v8389_v42 = vadd.f32 %v5495_v1, %v5494_v0 }
 0x34e   : > { %v5497_v2 = vpop.f32.mrb[40].mxu1 }
 0x34f   : > { %v5498_v14 = vpop.f32.mrb[41].mxu1 }
 0x350   : > { %v8391_v24 = vadd.f32 %v5498_v14, %v5497_v2  ;;  %v5500_v16 = vpop.f32.mrb[42].mxu1 }
 0x351   : > { %v5501_v13 = vpop.f32.mrb[43].mxu1 }
 0x352   : > { %v8393_v37 = vadd.f32 %v5501_v13, %v5500_v16 }
 0x356   : > { %v5503_v21 = vpop.f32.mrb[44].mxu1 }
 0x357   : > { %v5504_v39 = vpop.f32.mrb[45].mxu1 }
 0x358   : > { %v8395_v40 = vadd.f32 %v5504_v39, %v5503_v21  ;;  %v5506_v6 = vpop.f32.mrb[46].mxu1 }
 0x359   : > { %v5507_v3 = vpop.f32.mrb[47].mxu1 }
 0x35a   : > { %v8397_v59 = vadd.f32 %v5507_v3, %v5506_v6 }
 0x366   : > { %v5509_v7 = vpop.f32.mrb[48].mxu1 }
 0x367   : > { %v5510_v56 = vpop.f32.mrb[49].mxu1 }
 0x368   : > { %v8400_v54 = vadd.f32 %v5510_v56, %v5509_v7  ;;  %v5512_v33 = vpop.f32.mrb[50].mxu1 }
 0x369   : > { %v5513_v9 = vpop.f32.mrb[51].mxu1  ;;  %v5547_v46 = vpop.f32.mrb[16].mxu0 }
 0x36a   : > { %v8402_v43 = vadd.f32 %v5513_v9, %v5512_v33  ;;  %v5548_v49 = vpop.f32.mrb[17].mxu0 }
 0x36b   : > { %v5549_v17 = vadd.f32 %v5548_v49, %v5547_v46  ;;  %v5550_v61 = vpop.f32.mrb[18].mxu0 }
 0x36c   : > { %v5551_v53 = vpop.f32.mrb[19].mxu0 }
 0x36d   : > { %v5849_v34 = vadd.f32 %v5549_v17, %v8359_v27  ;;  %v5552_v15 = vadd.f32 %v5551_v53, %v5550_v61 }
 0x36e   : > { %v5627_v30 = vpop.f32.mrb[52].mxu1 }
 0x36f   : > { %v5628_v29 = vpop.f32.mrb[53].mxu1  ;;  %v5855_v57 = vadd.f32 %v5552_v15, %v8361_v23 }
 0x370   : > { %v5629_v10 = vadd.f32 %v5628_v29, %v5627_v30  ;;  %v5630_v25 = vpop.f32.mrb[54].mxu1 }
 0x371   : > { %v5631_v11 = vpop.f32.mrb[55].mxu1  ;;  %v5553_v35 = vpop.f32.mrb[20].mxu0 }
 0x372   : > { %v5632_v12 = vadd.f32 %v5631_v11, %v5630_v25  ;;  %v8406_v60 = vadd.f32 %v5849_v34, %v5629_v10  ;;  %v5554_v47 = vpop.f32.mrb[21].mxu0 }
 0x373   : > { %v5555_v8 = vadd.f32 %v5554_v47, %v5553_v35  ;;  %v5556_v52 = vpop.f32.mrb[22].mxu0 }
 0x374   : > { %v8408_v19 = vadd.f32 %v5855_v57, %v5632_v12  ;;  %v5557_v45 = vpop.f32.mrb[23].mxu0 }
 0x375   : > { %v5846_v27 = vadd.f32 %v5555_v8, %v8374_v26  ;;  %v5558_v18 = vadd.f32 %v5557_v45, %v5556_v52 }
 0x376   : > { %v5633_v48 = vpop.f32.mrb[56].mxu1 }
 0x377   : > { %v5634_v5 = vpop.f32.mrb[57].mxu1  ;;  %v5852_v23 = vadd.f32 %v5558_v18, %v8376_v31 }
 0x378   : > { %v5635_v51 = vadd.f32 %v5634_v5, %v5633_v48  ;;  %v5636_v50 = vpop.f32.mrb[58].mxu1 }
 0x379   : > { %v5637_v32 = vpop.f32.mrb[59].mxu1  ;;  %v5559_v55 = vpop.f32.mrb[24].mxu0 }
 0x37a   : > { %v5638_v63 = vadd.f32 %v5637_v32, %v5636_v50  ;;  %v8412_v22 = vadd.f32 %v5846_v27, %v5635_v51  ;;  %v5560_v36 = vpop.f32.mrb[25].mxu0 }
 0x37b   : > { %v5561_v4 = vadd.f32 %v5560_v36, %v5559_v55  ;;  %v5562_v28 = vpop.f32.mrb[26].mxu0 }
 0x37c   : > { %v8414_v0 = vadd.f32 %v5852_v23, %v5638_v63  ;;  %v5563_v1 = vpop.f32.mrb[27].mxu0 }
 0x37d   : > { %v5861_v26 = vadd.f32 %v5561_v4, %v8379_v62  ;;  %v5564_v2 = vadd.f32 %v5563_v1, %v5562_v28  ;;  %v4772_v28 = vld [vmem:[%s8582_s6] sm:$0xff] }
 0x37e   : > { %v5639_v14 = vpop.f32.mrb[60].mxu1 }
 0x37f   : > { %v5640_v16 = vpop.f32.mrb[61].mxu1  ;;  %v5867_v31 = vadd.f32 %v5564_v2, %v8381_v41 }
 0x380   : > { %v5641_v13 = vadd.f32 %v5640_v16, %v5639_v14  ;;  %v5642_v21 = vpop.f32.mrb[62].mxu1 }
 0x381   : > { %v5643_v39 = vpop.f32.mrb[63].mxu1  ;;  %v5565_v3 = vpop.f32.mrb[28].mxu0 }
 0x382   : > { %v5644_v6 = vadd.f32 %v5643_v39, %v5642_v21  ;;  %v8418_v7 = vadd.f32 %v5861_v26, %v5641_v13  ;;  %v5566_v56 = vpop.f32.mrb[29].mxu0  ;;  %v6358_v26 = vmov 0  }
 0x383   : > { %v5567_v33 = vadd.f32 %v5566_v56, %v5565_v3  ;;  %v5568_v9 = vpop.f32.mrb[30].mxu0  ;;  %6010 = vset.pattern.permute.xlu0 %v6358_v26 }
 0x384   : > { %v8420_v46 = vadd.f32 %v5867_v31, %v5644_v6  ;;  %v5569_v49 = vpop.f32.mrb[31].mxu0  ;;  %4775 = vperm.xlu0 %6010, %v4772_v28  }
 0x385   : > { %v5858_v62 = vadd.f32 %v5567_v33, %v8383_v38  ;;  %v5570_v17 = vadd.f32 %v5569_v49, %v5568_v9 }
 0x386   : > { %v5645_v61 = vpop.f32.mrb[64].mxu1 }
 0x387   : > { %v5646_v53 = vpop.f32.mrb[65].mxu1  ;;  %v5864_v41 = vadd.f32 %v5570_v17, %v8385_v44 }
 0x388   : > { %v5647_v34 = vadd.f32 %v5646_v53, %v5645_v61  ;;  %v5648_v15 = vpop.f32.mrb[66].mxu1 }
 0x389   : > { %v5649_v30 = vpop.f32.mrb[67].mxu1  ;;  %v5571_v57 = vpop.f32.mrb[32].mxu0 }
 0x38a   : > { %v5650_v29 = vadd.f32 %v5649_v30, %v5648_v15  ;;  %v8424_v10 = vadd.f32 %v5858_v62, %v5647_v34  ;;  %v5572_v25 = vpop.f32.mrb[33].mxu0 }
 0x38b   : > { %v5573_v11 = vadd.f32 %v5572_v25, %v5571_v57  ;;  %v5574_v12 = vpop.f32.mrb[34].mxu0 }
 0x38c   : > { %v8426_v35 = vadd.f32 %v5864_v41, %v5650_v29  ;;  %v5575_v47 = vpop.f32.mrb[35].mxu0 }
 0x38d   : > { %v5873_v38 = vadd.f32 %v5573_v11, %v8387_v58  ;;  %v5576_v8 = vadd.f32 %v5575_v47, %v5574_v12 }
 0x38e   : > { %v5651_v52 = vpop.f32.mrb[68].mxu1 }
 0x38f   : > { %v5652_v45 = vpop.f32.mrb[69].mxu1  ;;  %v5879_v44 = vadd.f32 %v5576_v8, %v8389_v42 }
 0x390   : > { %v5653_v27 = vadd.f32 %v5652_v45, %v5651_v52  ;;  %v5654_v18 = vpop.f32.mrb[70].mxu1 }
 0x391   : > { %v5655_v48 = vpop.f32.mrb[71].mxu1  ;;  %v5577_v23 = vpop.f32.mrb[36].mxu0 }
 0x392   : > { %v5656_v5 = vadd.f32 %v5655_v48, %v5654_v18  ;;  %v8431_v51 = vadd.f32 %v5873_v38, %v5653_v27  ;;  %v5578_v50 = vpop.f32.mrb[37].mxu0 }
 0x393   : > { %v5579_v32 = vadd.f32 %v5578_v50, %v5577_v23  ;;  %v5580_v63 = vpop.f32.mrb[38].mxu0  ;;  %v8459_v23 = vld [vmem:[%s8580_s4] ss:$0 sm:$0xff] }
 0x394   : > { %v8433_v55 = vadd.f32 %v5879_v44, %v5656_v5  ;;  %v5581_v58 = vpop.f32.mrb[39].mxu0 }
 0x395   : > { %v5870_v36 = vadd.f32 %v5579_v32, %v8391_v24  ;;  %v5582_v4 = vadd.f32 %v5581_v58, %v5580_v63 }
 0x396   : > { %v5657_v42 = vpop.f32.mrb[72].mxu1 }
 0x397   : > { %v5658_v1 = vpop.f32.mrb[73].mxu1  ;;  %v5876_v2 = vadd.f32 %v5582_v4, %v8393_v37 }
 0x398   : > { %v5659_v14 = vadd.f32 %v5658_v1, %v5657_v42  ;;  %v5660_v16 = vpop.f32.mrb[74].mxu1 }
 0x399   : > { %v5661_v31 = vpop.f32.mrb[75].mxu1  ;;  %v5583_v21 = vpop.f32.mrb[40].mxu0 }
 0x39a   : > { %v5662_v13 = vadd.f32 %v5661_v31, %v5660_v16  ;;  %v8440_v39 = vadd.f32 %v5870_v36, %v5659_v14  ;;  %v5584_v24 = vpop.f32.mrb[41].mxu0 }
 0x39b   : > { %v5585_v6 = vadd.f32 %v5584_v24, %v5583_v21  ;;  %v5586_v3 = vpop.f32.mrb[42].mxu0 }
 0x39c   : > { %v8442_v56 = vadd.f32 %v5876_v2, %v5662_v13  ;;  %v5587_v33 = vpop.f32.mrb[43].mxu0 }
 0x39d   : > { %v5885_v9 = vadd.f32 %v5585_v6, %v8395_v40  ;;  %v5588_v49 = vadd.f32 %v5587_v33, %v5586_v3 }
 0x39e   : > { %v5663_v62 = vpop.f32.mrb[76].mxu1 }
 0x39f   : > { %v5664_v17 = vpop.f32.mrb[77].mxu1  ;;  %v5891_v37 = vadd.f32 %v5588_v49, %v8397_v59 }
 0x3a0   : > { %v5665_v61 = vadd.f32 %v5664_v17, %v5663_v62  ;;  %v5666_v53 = vpop.f32.mrb[78].mxu1 }
 0x3a1   : > { %v5667_v41 = vpop.f32.mrb[79].mxu1  ;;  %v5589_v15 = vpop.f32.mrb[44].mxu0 }
 0x3a2   : > { %v5668_v34 = vadd.f32 %v5667_v41, %v5666_v53  ;;  %v8446_v30 = vadd.f32 %v5885_v9, %v5665_v61  ;;  %v5590_v29 = vpop.f32.mrb[45].mxu0 }
 0x3a3   : > { %v5591_v57 = vadd.f32 %v5590_v29, %v5589_v15  ;;  %v5592_v25 = vpop.f32.mrb[46].mxu0 }
 0x3a4   : > { %v8448_v11 = vadd.f32 %v5891_v37, %v5668_v34  ;;  %v5593_v12 = vpop.f32.mrb[47].mxu0 }
 0x3a5   : > { %v5882_v40 = vadd.f32 %v5591_v57, %v8400_v54  ;;  %v5594_v47 = vadd.f32 %v5593_v12, %v5592_v25 }
 0x3a6   : > { %v5669_v38 = vpop.f32.mrb[80].mxu1 }
 0x3a7   : > { %v5670_v8 = vpop.f32.mrb[81].mxu1  ;;  %v5888_v59 = vadd.f32 %v5594_v47, %v8402_v43 }
 0x3a8   : > { %v5671_v52 = vadd.f32 %v5670_v8, %v5669_v38  ;;  %v5672_v45 = vpop.f32.mrb[82].mxu1 }
 0x3a9   : > { %v5673_v44 = vpop.f32.mrb[83].mxu1 }
 0x3aa   : > { %v5674_v27 = vadd.f32 %v5673_v44, %v5672_v45  ;;  %v8452_v18 = vadd.f32 %v5882_v40, %v5671_v52 }
 0x3ac   : > { %v8454_v48 = vadd.f32 %v5888_v59, %v5674_v27 }
 0x3c9   : > { %v5812_v5 = vpop.f32.mrb[0].mxu0 }
 0x3ca   : > { %v5848_v54 = vadd.f32 %v8412_v22, %v5812_v5  ;;  %v4645_v50 = vpop.f32.mrb[1].mxu0 }
 0x3cb   : > { %v5851_v32 = vadd.f32 %v8406_v60, %v4645_v50  ;;  %v5813_v43 = vpop.f32.mrb[2].mxu0 }
 0x3cc   : > { %v4733_v63 = vadd.f32 %v5848_v54, %v8459_v23  ;;  %v5854_v58 = vadd.f32 %v8414_v0, %v5813_v43  ;;  %v4648_v36 = vpop.f32.mrb[3].mxu0 }
 0x3cd   : > { %v4731_v4 = vadd.f32 %v5851_v32, %v8459_v23  ;;  %v5857_v42 = vadd.f32 %v8408_v19, %v4648_v36 }
 0x3ce   : > { %v4734_v28 = vadd.f32 %v5854_v58, %v8459_v23  ;;  %v4749_v26 = vmax.f32 %v4733_v63, 0.0 }
 0x3cf   : > { %v4732_v1 = vadd.f32 %v5857_v42, %v8459_v23  ;;  %v4747_v22 = vmax.f32 %v4731_v4, 0.0 }
 0x3d0   : > { %v4750_v2 = vmax.f32 %v4734_v28, 0.0 }
 0x3d1   : > { %v4748_v14 = vmax.f32 %v4732_v1, 0.0  ;;  %v5816_v16 = vpop.f32.mrb[4].mxu0 }
 0x3d2   : > { %v4765_v60 = vpack.c.bf16 %v4750_v2, %v4749_v26  ;;  %v5860_v31 = vadd.f32 %v8424_v10, %v5816_v16  ;;  %v4661_v13 = vpop.f32.mrb[5].mxu0 }
 0x3d3   : > { %v4764_v21 = vpack.c.bf16 %v4748_v14, %v4747_v22  ;;  %v5863_v0 = vadd.f32 %v8418_v7, %v4661_v13  ;;  %v5817_v24 = vpop.f32.mrb[6].mxu0 }
 0x3d4   : > { %v4737_v6 = vadd.f32 %v5860_v31, %v8459_v23  ;;  %v5866_v19 = vadd.f32 %v8426_v35, %v5817_v24  ;;  %v4664_v3 = vpop.f32.mrb[7].mxu0  ;;  %v4785_v38 = vsel %vm2052_vm1, %v4765_v60, 0  ;;  %v4763_v60 = vld [vmem:[%s8581_s5] sm:$0xf] }
 0x3d5   : > { %v4735_v33 = vadd.f32 %v5863_v0, %v8459_v23  ;;  %v5869_v9 = vadd.f32 %v8420_v46, %v4664_v3  ;;  %v4782_v49 = vsel %vm2052_vm1, %v4764_v21, 0 }
 0x3d6   : > { %v4738_v62 = vadd.f32 %v5866_v19, %v8459_v23  ;;  %5827 = vmatpush3.bf16.xpose.msra.mxu1 %v4782_v49  ;;  %v4753_v7 = vmax.f32 %v4737_v6, 0.0 }
 0x3d7   : > { %v4736_v10 = vadd.f32 %v5869_v9, %v8459_v23  ;;  %5828 = vmatprep.subr.bf16.mxu1 %v6356_v20  ;;  %v4751_v37 = vmax.f32 %v4735_v33, 0.0 }
 0x3d8   : > { %v4754_v17 = vmax.f32 %v4738_v62, 0.0 }
 0x3d9   : > { %v4752_v61 = vmax.f32 %v4736_v10, 0.0  ;;  %v5820_v53 = vpop.f32.mrb[8].mxu0 }
 0x3da   : > { %v4767_v35 = vpack.c.bf16 %v4754_v17, %v4753_v7  ;;  %v5872_v41 = vadd.f32 %v8440_v39, %v5820_v53  ;;  %v4677_v34 = vpop.f32.mrb[9].mxu0 }
 0x3db   : > { %v4766_v15 = vpack.c.bf16 %v4752_v61, %v4751_v37  ;;  %v5875_v46 = vadd.f32 %v8431_v51, %v4677_v34  ;;  %v5821_v29 = vpop.f32.mrb[10].mxu0 }
 0x3dc   : > { %v4741_v57 = vadd.f32 %v5872_v41, %v8459_v23  ;;  %v5878_v25 = vadd.f32 %v8442_v56, %v5821_v29  ;;  %v4680_v12 = vpop.f32.mrb[11].mxu0  ;;  %v4791_v22 = vsel %vm2052_vm1, %v4767_v35, 0 }
 0x3dd   : > { %v4739_v40 = vadd.f32 %v5875_v46, %v8459_v23  ;;  %v5881_v47 = vadd.f32 %v8433_v55, %v4680_v12  ;;  %v4788_v4 = vsel %vm2052_vm1, %v4766_v15, 0 }
 0x3de   : > { %v4742_v8 = vadd.f32 %v5878_v25, %v8459_v23  ;;  %5829 = vmatpush3.bf16.xpose.msra.mxu1 %v4785_v38  ;;  %v4757_v51 = vmax.f32 %v4741_v57, 0.0 }
 0x3df   : > { %v4740_v39 = vadd.f32 %v5881_v47, %v8459_v23  ;;  %5830 = vmatprep.subr.bf16.mxu1 %v6356_v20  ;;  %v4755_v52 = vmax.f32 %v4739_v40, 0.0 }
 0x3e0   : > { %v4758_v59 = vmax.f32 %v4742_v8, 0.0 }
 0x3e1   : > { %v4756_v45 = vmax.f32 %v4740_v39, 0.0  ;;  %v5824_v44 = vpop.f32.mrb[12].mxu0 }
 0x3e2   : > { %v4769_v56 = vpack.c.bf16 %v4758_v59, %v4757_v51  ;;  %v5884_v27 = vadd.f32 %v8452_v18, %v5824_v44  ;;  %v4693_v5 = vpop.f32.mrb[13].mxu0 }
 0x3e3   : > { %v4768_v54 = vpack.c.bf16 %v4756_v45, %v4755_v52  ;;  %v5887_v55 = vadd.f32 %v8446_v30, %v4693_v5  ;;  %v5825_v50 = vpop.f32.mrb[14].mxu0 }
 0x3e4   : > { %v4745_v32 = vadd.f32 %v5884_v27, %v8459_v23  ;;  %v5890_v43 = vadd.f32 %v8454_v48, %v5825_v50  ;;  %v4696_v63 = vpop.f32.mrb[15].mxu0 }
 0x3e5   : > { %v4743_v58 = vadd.f32 %v5887_v55, %v8459_v23  ;;  %v5893_v36 = vadd.f32 %v8448_v11, %v4696_v63  ;;  %v4794_v11 = vsel %vm2052_vm1, %v4768_v54, 0 }
 0x3e6   : > { %v4746_v42 = vadd.f32 %v5890_v43, %v8459_v23  ;;  %5831 = vmatpush3.bf16.xpose.msra.mxu1 %v4788_v4  ;;  %v4761_v30 = vmax.f32 %v4745_v32, 0.0 }
 0x3e7   : > { %v4744_v18 = vadd.f32 %v5893_v36, %v8459_v23  ;;  %5832 = vmatprep.subr.bf16.mxu1 %v6356_v20  ;;  %v4759_v1 = vmax.f32 %v4743_v58, 0.0  ;;  %v4797_v23 = vsel %vm2052_vm1, %v4769_v56, 0 }
 0x3e8   : > { %v4762_v28 = vmax.f32 %v4746_v42, 0.0 }
 0x3e9   : > { %v4760_v26 = vmax.f32 %v4744_v18, 0.0 }
 0x3ea   : > { %v4771_v2 = vpack.c.bf16 %v4762_v28, %v4761_v30 }
 0x3eb   : > { %v4770_v48 = vpack.c.bf16 %v4760_v26, %v4759_v1 }
 0x3ec   : > { %v4803_v16 = vsel %vm2052_vm1, %v4771_v2, 0 }
 0x3ed   : > { %v4800_v14 = vsel %vm2052_vm1, %v4770_v48, 0 }
 0x3ee   : > { %5833 = vmatpush3.bf16.xpose.msra.mxu1 %v4791_v22 }
 0x3ef   : > { %5834 = vmatprep.subr.bf16.mxu1 %v6356_v20 }
 0x3f6   : > { %5835 = vmatpush3.bf16.xpose.msra.mxu1 %v4794_v11 }
 0x3f7   : > { %5836 = vmatprep.subr.bf16.mxu1 %v6356_v20 }
 0x3fe   : > { %5837 = vmatpush3.bf16.xpose.msra.mxu1 %v4797_v23 }
 0x3ff   : > { %5838 = vmatprep.subr.bf16.mxu1 %v6356_v20 }
 0x403   : > { %v4776_v31 = vpop.permute.xlu0 %4775 }
 0x406   : > { %5839 = vmatpush3.bf16.xpose.msra.mxu1 %v4800_v14 }
 0x407   : > { %5840 = vmatprep.subr.bf16.mxu1 %v6356_v20 }
 0x40e   : > { %5841 = vmatpush3.bf16.xpose.msra.mxu1 %v4803_v16 }
 0x415   : > { %5843 = vmatmul.mubr.msk.bf16.vlgmr.msra.gmra.mrb[84].mxu1 %vm2052_vm1, %v4763_v60 }
 0x4e8   : > { %v4839_v13 = vpop.f32.mrb[84].mxu1 }
 0x4e9   : > { %v5844_v20 = vpop.f32.mrb[85].mxu1  ;;  %v4840_v21 = vadd.f32 %v4839_v13, %v4776_v31 }
 0x4ea   : > { %v4842_v0 = vpop.f32.mrb[86].mxu1 }
 0x4eb   : > { %4845 = vst [vmem:[%s8670_s28] sm:$0xff] %v4840_v21  ;;  %v5845_v24 = vpop.f32.mrb[87].mxu1 }
 0x4ec   : > { %6264 = shalt.err (!%p6261_p7)
}
 0x4ed   : > { %s6265_s21 = scalar_lea.hbm %s8519_s0, 128  ;;  %s6269_s22 = scalar_lea.hbm %s8583_s7, 512 }
 0x4ee   : > { %p6266_p9 = scmp.ne.s32.totalorder %s8519_s0, %s6265_s21  ;;  %p6270_p12 = scmp.lt.u32.totalorder %s8519_s0, %s8583_s7 }
 0x4ef   : > { %p6271_p13 = scmp.lt.u32.totalorder %s6269_s22, %s6265_s21  ;;  %p6273_p1 = scmp.lt.u32.totalorder %s6265_s21, %s8519_s0 }
 0x4f0   : > { %p6267_p10 = pnand %p6266_p9, %p6451_p3 }
 0x4f1   : > { %p6272_p0 = por %p6271_p13, %p6270_p12 }
 0x4f2   : > { %p6268_p11 = pneg %p6267_p10 }
 0x4f3   : > { %p6274_p2 = por %p6273_p1, %p6272_p0 }
 0x4f5   : > { %p6275_p4 = pnand %p6274_p2, %p6268_p11 }
 0x4f7   : > { %6278 = shalt.err (!%p6275_p4)
}
 0x4f8   : > { %5927 = dma.vmem_to_hbm [thread:$0]  (%p6451_p3), %s8521_s16, 128, %s8519_s0, %s4847_s23  }
 0x4f9 PF: > { %p5933_p5 = scmp.ge.s32.totalorder %s6345_s8, 2  ;;  %s4874_s9 = sand.u32 1, %s6317_s24  }
 0x4fa   : > { %s4875_s10 = scalar_lea.sflag [#allocation5], %s4874_s9 }
 0x4fb   : > { %p5930_p6 = pnand %p5933_p5, %p6460_p8 }
 0x4fd   : > { %6312 = dma.done.wait (!%p5930_p6), %s4875_s10, 128  }
 0x4fe   : > { %6314 = vsyncadd (!%p5930_p6), %s4875_s10, 4294967168  ;;  %s20_s8 = sadd.s32 1, %s6345_s8   ;;  %s8672_s24 = smov %s6321_s25 }
 0x4ff   : > { %p17_p7 = scmp.ge.s32.totalorder %s20_s8, 6   ;;  %s8673_s25 = smov %s6325_s26 }
 0x500   : > { %s8674_s26 = smov %s6469_s19  ;;  %s8675_s27 = smov %s6337_s29 }
 0x501   : > { %s8676_s28 = smov %s6341_s30  ;;  %s8677_s29 = smov %s8680_s11 }
 0x502   : > { %s8678_s30 = smov %s8684_s12  ;;  %19 = sbr.rel (!%p17_p7) target bundleno = 7 (0x7), region = 95 }
 0x509   :  { %4880 = vsyncpa [#allocation5], 1 }
 0x50a   :  { %4882 = vsyncpa [#allocation5 + $0x1], 1 }

</bundles_post_ra>
